<compile_context>
chip_gen: v7x
topology: tpu7x:2x2x1
jax: 0.10.0
libtpu: 0.0.40
codegen_flags: <defaults>
</compile_context>

<pallas_src>
import functools

import jax
import jax.numpy as jnp
from jax.experimental import pallas as pl
from jax.experimental.pallas import tpu as pltpu

TB = 8  # batch tile per grid step (keeps the (8,128) output block fully aligned)


# ------------------------------ fused kernel ------------------------------- #

def lenet_fused_kernel(x_ref, l1_ref, r1_ref, b1_ref, ph1_ref, pw1_ref,
                       l2_ref, r2_ref, b2_ref, ph2_ref, pw2_ref,
                       sf_ref, w1h_ref, bfc1_ref, w2_ref, bfc2_ref,
                       w3_ref, bfc3_ref, o_ref, *, tb):
    """Whole LeNet forward for one batch tile of `tb` images.

    Activation layout: rows = (image, row), cols = (channel, col) -- every step
    is a plain 2-D matmul, so no in-kernel reshapes/transposes are needed.
    """
    f32, bf16 = jnp.float32, jnp.bfloat16

    x = x_ref[...].astype(bf16)                                    # (tb*32, 32)

    # ---- Conv1 (1->6, k5; spatial pad=2 already applied) + bias + ReLU ----
    y1 = jnp.zeros((tb * 28, 6 * 28), f32)
    for di in range(5):
        rows = jnp.dot(l1_ref[di], x,                              # (tb*28, 32)
                       preferred_element_type=f32).astype(bf16)
        y1 = y1 + jnp.dot(rows, r1_ref[di],                        # (tb*28, 168)
                          preferred_element_type=f32)
    y1 = jnp.maximum(y1 + b1_ref[...], 0.0).astype(bf16)

    # ---- AvgPool 2x2 fused as epilogue (rows via PH1, cols via PW1) ----
    p1 = jnp.dot(ph1_ref[...], y1, preferred_element_type=f32).astype(bf16)   # (tb*14, 168)
    p1 = jnp.dot(p1, pw1_ref[...], preferred_element_type=f32).astype(bf16)   # (tb*14, 84)

    # ---- Conv2 (6->16, k5, valid) + bias + ReLU ----
    y2 = jnp.zeros((tb * 10, 16 * 10), f32)
    for di in range(5):
        rows = jnp.dot(l2_ref[di], p1,                             # (tb*10, 84)
                       preferred_element_type=f32).astype(bf16)
        y2 = y2 + jnp.dot(rows, r2_ref[di],                        # (tb*10, 160)
                          preferred_element_type=f32)
    y2 = jnp.maximum(y2 + b2_ref[...], 0.0).astype(bf16)

    # ---- AvgPool 2x2 ----
    p2 = jnp.dot(ph2_ref[...], y2, preferred_element_type=f32).astype(bf16)   # (tb*5, 160)
    p2 = jnp.dot(p2, pw2_ref[...], preferred_element_type=f32).astype(bf16)   # (tb*5, 80)

    # ---- Flatten + FC1 + ReLU (Dropout = identity in eval mode) ----
    h = jnp.zeros((tb, 120), f32)
    for r in range(5):
        rows = jnp.dot(sf_ref[r], p2,                              # (tb, 80)
                       preferred_element_type=f32).astype(bf16)
        h = h + jnp.dot(rows, w1h_ref[r], preferred_element_type=f32)          # (tb, 120)
    h = jnp.maximum(h + bfc1_ref[...], 0.0).astype(bf16)

    # ---- FC2 + ReLU ----
    h = jnp.dot(h, w2_ref[...], preferred_element_type=f32)
    h = jnp.maximum(h + bfc2_ref[...], 0.0).astype(bf16)

    # ---- FC3 (output padded to 128 lanes -> unmasked lane-dense store) ----
    out = jnp.dot(h, w3_ref[...], preferred_element_type=f32) + bfc3_ref[...]
    o_ref[...] = out.astype(o_ref.dtype)


# ------------------------- weight-derived constants ------------------------ #

def _pool_cols(n):
    """(n, n//2) matrix: 0.5 where col == row//2  (2x average pool)."""
    return 0.5 * (jnp.arange(n)[:, None] // 2 ==
                  jnp.arange(n // 2)[None, :]).astype(jnp.float32)


def _conv_band(w, di, in_w, out_w):
    """Band matrix (Cin*in_w, Cout*out_w) so that a k5 conv along the lane
    axis (width) + channel mixing becomes a single right-matmul per row shift
    di:  out[h, co*out_w + wo] = sum_{ci,dj} in[h+di, ci*in_w + wo+dj] * w[co,ci,di,dj]."""
    c_out, c_in, _, kw = w.shape
    d = jnp.arange(in_w)[:, None] - jnp.arange(out_w)[None, :]      # (in_w, out_w)
    valid = (d >= 0) & (d < kw)
    dcl = jnp.clip(d, 0, kw - 1)
    vals = w[:, :, di, :][:, :, dcl]                                # (Cout, Cin, in_w, out_w)
    vals = jnp.where(valid[None, None], vals, 0.0)
    return vals.transpose(1, 2, 0, 3).reshape(c_in * in_w, c_out * out_w)


def _build_operands(params, tb):
    """All VMEM-resident kernel operands (matmul operands in bf16, biases f32)."""
    f32, bf16 = jnp.float32, jnp.bfloat16
    eye_tb = jnp.eye(tb, dtype=f32)
    bd = lambda m: m.astype(bf16)

    # conv1: row-shift selectors, width/channel band matrices, bias per (c,w) col
    l1 = bd(jnp.stack([jnp.kron(eye_tb, jnp.eye(28, 32, k=d, dtype=f32)) for d in range(5)]))
    r1 = bd(jnp.stack([_conv_band(params['conv1_w'], d, 32, 28) for d in range(5)]))
    b1 = jnp.repeat(params['conv1_b'], 28)[None, :].astype(f32)               # (1, 168)
    ph1 = bd(jnp.kron(eye_tb, _pool_cols(28).T))                              # (tb*14, tb*28)
    pw1 = bd(jnp.kron(jnp.eye(6, dtype=f32), _pool_cols(28)))                 # (168, 84)

    # conv2
    l2 = bd(jnp.stack([jnp.kron(eye_tb, jnp.eye(10, 14, k=d, dtype=f32)) for d in range(5)]))
    r2 = bd(jnp.stack([_conv_band(params['conv2_w'], d, 14, 10) for d in range(5)]))
    b2 = jnp.repeat(params['conv2_b'], 10)[None, :].astype(f32)               # (1, 160)
    ph2 = bd(jnp.kron(eye_tb, _pool_cols(10).T))                              # (tb*5, tb*10)
    pw2 = bd(jnp.kron(jnp.eye(16, dtype=f32), _pool_cols(10)))                # (160, 80)

    # flatten + fc1: row selector per pooled row + permuted per-row weight slabs
    sf = bd(jnp.stack([jnp.kron(eye_tb, jnp.eye(5, dtype=f32)[r:r + 1]) for r in range(5)]))
    w1h = bd(params['fc1_w'].reshape(120, 16, 5, 5)
             .transpose(2, 1, 3, 0).reshape(5, 80, 120))
    bfc1 = params['fc1_b'][None, :].astype(f32)                               # (1, 120)

    w2 = bd(params['fc2_w'].T)                                                # (120, 84)
    bfc2 = params['fc2_b'][None, :].astype(f32)                               # (1, 84)

    # fc3 padded to 128 output lanes (zeros beyond col 9)
    w3 = bd(jnp.zeros((84, 128), f32).at[:, :10].set(params['fc3_w'].T))
    bfc3 = jnp.zeros((1, 128), f32).at[0, :10].set(params['fc3_b'])

    return [l1, r1, b1, ph1, pw1, l2, r2, b2, ph2, pw2,
            sf, w1h, bfc1, w2, bfc2, w3, bfc3]


def _flops_per_block(tb):
    f = 5 * 2 * (tb * 28) * (tb * 32) * 32 + 5 * 2 * (tb * 28) * 32 * 168       # conv1
    f += 2 * (tb * 14) * (tb * 28) * 168 + 2 * (tb * 14) * 168 * 84             # pool1
    f += 5 * 2 * (tb * 10) * (tb * 14) * 84 + 5 * 2 * (tb * 10) * 84 * 160      # conv2
    f += 2 * (tb * 5) * (tb * 10) * 160 + 2 * (tb * 5) * 160 * 80               # pool2
    f += 5 * 2 * tb * (tb * 5) * 80 + 5 * 2 * tb * 80 * 120                     # fc1
    f += 2 * tb * 120 * 84 + 2 * tb * 84 * 128                                  # fc2/fc3
    return f


# --------------------------------- forward --------------------------------- #

def forward(params, x, tb=TB):
    """x: (B, 1, 28, 28) float32 NCHW -> logits (B, 10)."""
    B = x.shape[0]
    b_pad = ((B + tb - 1) // tb) * tb

    # conv1 spatial padding (=2) + batch padding, laid out as (b_pad*32, 32)
    xp = jnp.pad(x, ((0, 0), (0, 0), (2, 2), (2, 2))).reshape(B, 32, 32)
    xp = jnp.pad(xp, ((0, b_pad - B), (0, 0), (0, 0)))
    x2d = xp.reshape(b_pad * 32, 32)

    ops = _build_operands(params, tb)
    num_blocks = b_pad // tb

    const_specs = [pl.BlockSpec(m.shape, lambda i, z=(0,) * m.ndim: z) for m in ops]

    bytes_in = x2d.size * x2d.dtype.itemsize + sum(m.size * m.dtype.itemsize for m in ops)
    cost = pl.CostEstimate(flops=int(num_blocks * _flops_per_block(tb)),
                           transcendentals=0,
                           bytes_accessed=int(bytes_in + b_pad * 128 * 4))

    out = pl.pallas_call(
        functools.partial(lenet_fused_kernel, tb=tb),
        out_shape=jax.ShapeDtypeStruct((b_pad, 128), jnp.float32),
        grid=(num_blocks,),
        in_specs=[pl.BlockSpec((tb * 32, 32), lambda i: (i, 0))] + const_specs,
        out_specs=pl.BlockSpec((tb, 128), lambda i: (i, 0)),
        compiler_params=pltpu.CompilerParams(
            dimension_semantics=("parallel",),
            vmem_limit_bytes=32 * 1024 * 1024),
        cost_estimate=cost,
    )(x2d, *ops)

    return out[:B, :10]


# ---------------------------- plain-JAX reference --------------------------- #

def reference_forward(params, x):
    B = x.shape[0]
    y = jax.lax.conv_general_dilated(x, params['conv1_w'], (1, 1), ((2, 2), (2, 2)),
                                     dimension_numbers=('NCHW', 'OIHW', 'NCHW'))
    y = jax.nn.relu(y + params['conv1_b'][None, :, None, None])
    y = y.reshape(B, 6, 14, 2, 14, 2).mean(axis=(3, 5))
    y = jax.lax.conv_general_dilated(y, params['conv2_w'], (1, 1), ((0, 0), (0, 0)),
                                     dimension_numbers=('NCHW', 'OIHW', 'NCHW'))
    y = jax.nn.relu(y + params['conv2_b'][None, :, None, None])
    y = y.reshape(B, 16, 5, 2, 5, 2).mean(axis=(3, 5))
    f = y.reshape(B, 400)
    h = jax.nn.relu(f @ params['fc1_w'].T + params['fc1_b'])
    h = jax.nn.relu(h @ params['fc2_w'].T + params['fc2_b'])
    return h @ params['fc3_w'].T + params['fc3_b']


# --------------------------------- params ---------------------------------- #

def init_params(key):
    """Deterministic synthetic parameters (PyTorch-style uniform fan-in init)."""
    ks = jax.random.split(key, 10)

    def u(k, shape, fan_in):
        bound = float(fan_in) ** -0.5
        return jax.random.uniform(k, shape, jnp.float32, -bound, bound)

    return {
        'conv1_w': u(ks[0], (6, 1, 5, 5), 1 * 5 * 5),
        'conv1_b': u(ks[1], (6,), 1 * 5 * 5),
        'conv2_w': u(ks[2], (16, 6, 5, 5), 6 * 5 * 5),
        'conv2_b': u(ks[3], (16,), 6 * 5 * 5),
        'fc1_w':   u(ks[4], (120, 400), 400),
        'fc1_b':   u(ks[5], (120,), 400),
        'fc2_w':   u(ks[6], (84, 120), 120),
        'fc2_b':   u(ks[7], (84,), 120),
        'fc3_w':   u(ks[8], (10, 84), 84),
        'fc3_b':   u(ks[9], (10,), 84),
    }


if __name__ == "__main__":
    key = jax.random.PRNGKey(0)
    k_param, k_x = jax.random.split(key)
    params = init_params(k_param)
    x = jax.random.normal(k_x, (2, 1, 28, 28), dtype=jnp.float32)

    logits = jax.jit(forward)(params, x)
    logits = jax.block_until_ready(logits)

    assert logits.shape == (2, 10), logits.shape
    assert logits.dtype == jnp.float32
    assert bool(jnp.all(jnp.isfinite(logits)))

    # cross-check the fused bf16/f32 kernel against the f32 plain-JAX reference
    ref = jax.block_until_ready(jax.jit(reference_forward)(params, x))
    err = float(jnp.max(jnp.abs(logits - ref)))
    assert err < 5e-2, f"max |pallas - reference| = {err}"

    print("KERNEL_OK")
</pallas_src>

<mosaic_0001>
module attributes {stable_mosaic.version = 11 : i64} {
  func.func @lenet_fused_kernel(%arg0: i32, %arg1: memref<256x32xf32, #tpu.memory_space<vmem>>, %arg2: memref<5x224x256xbf16, #tpu.memory_space<vmem>>, %arg3: memref<5x32x168xbf16, #tpu.memory_space<vmem>>, %arg4: memref<1x168xf32, #tpu.memory_space<vmem>>, %arg5: memref<112x224xbf16, #tpu.memory_space<vmem>>, %arg6: memref<168x84xbf16, #tpu.memory_space<vmem>>, %arg7: memref<5x80x112xbf16, #tpu.memory_space<vmem>>, %arg8: memref<5x84x160xbf16, #tpu.memory_space<vmem>>, %arg9: memref<1x160xf32, #tpu.memory_space<vmem>>, %arg10: memref<40x80xbf16, #tpu.memory_space<vmem>>, %arg11: memref<160x80xbf16, #tpu.memory_space<vmem>>, %arg12: memref<5x8x40xbf16, #tpu.memory_space<vmem>>, %arg13: memref<5x80x120xbf16, #tpu.memory_space<vmem>>, %arg14: memref<1x120xf32, #tpu.memory_space<vmem>>, %arg15: memref<120x84xbf16, #tpu.memory_space<vmem>>, %arg16: memref<1x84xf32, #tpu.memory_space<vmem>>, %arg17: memref<84x128xbf16, #tpu.memory_space<vmem>>, %arg18: memref<1x128xf32, #tpu.memory_space<vmem>>, %arg19: memref<8x128xf32, #tpu.memory_space<vmem>>) attributes {dimension_semantics = [#tpu.dimension_semantics<parallel>], iteration_bounds = array<i64: 1>, scalar_prefetch = 0 : i64, scratch_operands = 0 : i64, tpu.core_type = #tpu.core_type<tc>, window_params = [{transform_indices = @transform_0, window_bounds = array<i64: 256, 32>}, {pipeline_mode = #tpu.pipeline_mode<synchronous>, transform_indices = @transform_1, window_bounds = array<i64: 5, 224, 256>}, {pipeline_mode = #tpu.pipeline_mode<synchronous>, transform_indices = @transform_2, window_bounds = array<i64: 5, 32, 168>}, {pipeline_mode = #tpu.pipeline_mode<synchronous>, transform_indices = @transform_3, window_bounds = array<i64: 1, 168>}, {pipeline_mode = #tpu.pipeline_mode<synchronous>, transform_indices = @transform_4, window_bounds = array<i64: 112, 224>}, {pipeline_mode = #tpu.pipeline_mode<synchronous>, transform_indices = @transform_5, window_bounds = array<i64: 168, 84>}, {pipeline_mode = #tpu.pipeline_mode<synchronous>, transform_indices = @transform_6, window_bounds = array<i64: 5, 80, 112>}, {pipeline_mode = #tpu.pipeline_mode<synchronous>, transform_indices = @transform_7, window_bounds = array<i64: 5, 84, 160>}, {pipeline_mode = #tpu.pipeline_mode<synchronous>, transform_indices = @transform_8, window_bounds = array<i64: 1, 160>}, {pipeline_mode = #tpu.pipeline_mode<synchronous>, transform_indices = @transform_9, window_bounds = array<i64: 40, 80>}, {pipeline_mode = #tpu.pipeline_mode<synchronous>, transform_indices = @transform_10, window_bounds = array<i64: 160, 80>}, {pipeline_mode = #tpu.pipeline_mode<synchronous>, transform_indices = @transform_11, window_bounds = array<i64: 5, 8, 40>}, {pipeline_mode = #tpu.pipeline_mode<synchronous>, transform_indices = @transform_12, window_bounds = array<i64: 5, 80, 120>}, {pipeline_mode = #tpu.pipeline_mode<synchronous>, transform_indices = @transform_13, window_bounds = array<i64: 1, 120>}, {pipeline_mode = #tpu.pipeline_mode<synchronous>, transform_indices = @transform_14, window_bounds = array<i64: 120, 84>}, {pipeline_mode = #tpu.pipeline_mode<synchronous>, transform_indices = @transform_15, window_bounds = array<i64: 1, 84>}, {pipeline_mode = #tpu.pipeline_mode<synchronous>, transform_indices = @transform_16, window_bounds = array<i64: 84, 128>}, {pipeline_mode = #tpu.pipeline_mode<synchronous>, transform_indices = @transform_17, window_bounds = array<i64: 1, 128>}, {transform_indices = @transform_18, window_bounds = array<i64: 8, 128>}]} {
    %c0 = arith.constant 0 : index
    %c0_0 = arith.constant 0 : index
    %0 = vector.load %arg1[%c0, %c0_0] : memref<256x32xf32, #tpu.memory_space<vmem>>, vector<256x32xf32>
    %1 = arith.truncf %0 : vector<256x32xf32> to vector<256x32xbf16>
    %cst = arith.constant 0.000000e+00 : f32
    %2 = vector.broadcast %cst : f32 to vector<224x168xf32>
    %c0_1 = arith.constant 0 : index
    %c0_2 = arith.constant 0 : index
    %c0_3 = arith.constant 0 : index
    %3 = vector.load %arg2[%c0_1, %c0_2, %c0_3] : memref<5x224x256xbf16, #tpu.memory_space<vmem>>, vector<1x224x256xbf16>
    %4 = vector.shape_cast %3 : vector<1x224x256xbf16> to vector<224x256xbf16>
    %cst_4 = arith.constant dense<0.000000e+00> : vector<224x32xf32>
    %5 = tpu.matmul %4, %1, %cst_4 {dimension_numbers = #tpu.dot_dimension_numbers<[1], [0], [0], [1], [0, 0, 1, 1], [], []>} : vector<224x256xbf16>, vector<256x32xbf16>, vector<224x32xf32> -> vector<224x32xf32>
    %6 = arith.truncf %5 : vector<224x32xf32> to vector<224x32xbf16>
    %c0_5 = arith.constant 0 : index
    %c0_6 = arith.constant 0 : index
    %c0_7 = arith.constant 0 : index
    %7 = vector.load %arg3[%c0_5, %c0_6, %c0_7] : memref<5x32x168xbf16, #tpu.memory_space<vmem>>, vector<1x32x168xbf16>
    %8 = vector.shape_cast %7 : vector<1x32x168xbf16> to vector<32x168xbf16>
    %cst_8 = arith.constant dense<0.000000e+00> : vector<224x168xf32>
    %9 = tpu.matmul %6, %8, %cst_8 {dimension_numbers = #tpu.dot_dimension_numbers<[1], [0], [0], [1], [0, 0, 1, 1], [], []>} : vector<224x32xbf16>, vector<32x168xbf16>, vector<224x168xf32> -> vector<224x168xf32>
    %10 = arith.addf %2, %9 : vector<224x168xf32>
    %c1 = arith.constant 1 : index
    %c0_9 = arith.constant 0 : index
    %c0_10 = arith.constant 0 : index
    %11 = vector.load %arg2[%c1, %c0_9, %c0_10] : memref<5x224x256xbf16, #tpu.memory_space<vmem>>, vector<1x224x256xbf16>
    %12 = vector.shape_cast %11 : vector<1x224x256xbf16> to vector<224x256xbf16>
    %cst_11 = arith.constant dense<0.000000e+00> : vector<224x32xf32>
    %13 = tpu.matmul %12, %1, %cst_11 {dimension_numbers = #tpu.dot_dimension_numbers<[1], [0], [0], [1], [0, 0, 1, 1], [], []>} : vector<224x256xbf16>, vector<256x32xbf16>, vector<224x32xf32> -> vector<224x32xf32>
    %14 = arith.truncf %13 : vector<224x32xf32> to vector<224x32xbf16>
    %c1_12 = arith.constant 1 : index
    %c0_13 = arith.constant 0 : index
    %c0_14 = arith.constant 0 : index
    %15 = vector.load %arg3[%c1_12, %c0_13, %c0_14] : memref<5x32x168xbf16, #tpu.memory_space<vmem>>, vector<1x32x168xbf16>
    %16 = vector.shape_cast %15 : vector<1x32x168xbf16> to vector<32x168xbf16>
    %cst_15 = arith.constant dense<0.000000e+00> : vector<224x168xf32>
    %17 = tpu.matmul %14, %16, %cst_15 {dimension_numbers = #tpu.dot_dimension_numbers<[1], [0], [0], [1], [0, 0, 1, 1], [], []>} : vector<224x32xbf16>, vector<32x168xbf16>, vector<224x168xf32> -> vector<224x168xf32>
    %18 = arith.addf %10, %17 : vector<224x168xf32>
    %c2 = arith.constant 2 : index
    %c0_16 = arith.constant 0 : index
    %c0_17 = arith.constant 0 : index
    %19 = vector.load %arg2[%c2, %c0_16, %c0_17] : memref<5x224x256xbf16, #tpu.memory_space<vmem>>, vector<1x224x256xbf16>
    %20 = vector.shape_cast %19 : vector<1x224x256xbf16> to vector<224x256xbf16>
    %cst_18 = arith.constant dense<0.000000e+00> : vector<224x32xf32>
    %21 = tpu.matmul %20, %1, %cst_18 {dimension_numbers = #tpu.dot_dimension_numbers<[1], [0], [0], [1], [0, 0, 1, 1], [], []>} : vector<224x256xbf16>, vector<256x32xbf16>, vector<224x32xf32> -> vector<224x32xf32>
    %22 = arith.truncf %21 : vector<224x32xf32> to vector<224x32xbf16>
    %c2_19 = arith.constant 2 : index
    %c0_20 = arith.constant 0 : index
    %c0_21 = arith.constant 0 : index
    %23 = vector.load %arg3[%c2_19, %c0_20, %c0_21] : memref<5x32x168xbf16, #tpu.memory_space<vmem>>, vector<1x32x168xbf16>
    %24 = vector.shape_cast %23 : vector<1x32x168xbf16> to vector<32x168xbf16>
    %cst_22 = arith.constant dense<0.000000e+00> : vector<224x168xf32>
    %25 = tpu.matmul %22, %24, %cst_22 {dimension_numbers = #tpu.dot_dimension_numbers<[1], [0], [0], [1], [0, 0, 1, 1], [], []>} : vector<224x32xbf16>, vector<32x168xbf16>, vector<224x168xf32> -> vector<224x168xf32>
    %26 = arith.addf %18, %25 : vector<224x168xf32>
    %c3 = arith.constant 3 : index
    %c0_23 = arith.constant 0 : index
    %c0_24 = arith.constant 0 : index
    %27 = vector.load %arg2[%c3, %c0_23, %c0_24] : memref<5x224x256xbf16, #tpu.memory_space<vmem>>, vector<1x224x256xbf16>
    %28 = vector.shape_cast %27 : vector<1x224x256xbf16> to vector<224x256xbf16>
    %cst_25 = arith.constant dense<0.000000e+00> : vector<224x32xf32>
    %29 = tpu.matmul %28, %1, %cst_25 {dimension_numbers = #tpu.dot_dimension_numbers<[1], [0], [0], [1], [0, 0, 1, 1], [], []>} : vector<224x256xbf16>, vector<256x32xbf16>, vector<224x32xf32> -> vector<224x32xf32>
    %30 = arith.truncf %29 : vector<224x32xf32> to vector<224x32xbf16>
    %c3_26 = arith.constant 3 : index
    %c0_27 = arith.constant 0 : index
    %c0_28 = arith.constant 0 : index
    %31 = vector.load %arg3[%c3_26, %c0_27, %c0_28] : memref<5x32x168xbf16, #tpu.memory_space<vmem>>, vector<1x32x168xbf16>
    %32 = vector.shape_cast %31 : vector<1x32x168xbf16> to vector<32x168xbf16>
    %cst_29 = arith.constant dense<0.000000e+00> : vector<224x168xf32>
    %33 = tpu.matmul %30, %32, %cst_29 {dimension_numbers = #tpu.dot_dimension_numbers<[1], [0], [0], [1], [0, 0, 1, 1], [], []>} : vector<224x32xbf16>, vector<32x168xbf16>, vector<224x168xf32> -> vector<224x168xf32>
    %34 = arith.addf %26, %33 : vector<224x168xf32>
    %c4 = arith.constant 4 : index
    %c0_30 = arith.constant 0 : index
    %c0_31 = arith.constant 0 : index
    %35 = vector.load %arg2[%c4, %c0_30, %c0_31] : memref<5x224x256xbf16, #tpu.memory_space<vmem>>, vector<1x224x256xbf16>
    %36 = vector.shape_cast %35 : vector<1x224x256xbf16> to vector<224x256xbf16>
    %cst_32 = arith.constant dense<0.000000e+00> : vector<224x32xf32>
    %37 = tpu.matmul %36, %1, %cst_32 {dimension_numbers = #tpu.dot_dimension_numbers<[1], [0], [0], [1], [0, 0, 1, 1], [], []>} : vector<224x256xbf16>, vector<256x32xbf16>, vector<224x32xf32> -> vector<224x32xf32>
    %38 = arith.truncf %37 : vector<224x32xf32> to vector<224x32xbf16>
    %c4_33 = arith.constant 4 : index
    %c0_34 = arith.constant 0 : index
    %c0_35 = arith.constant 0 : index
    %39 = vector.load %arg3[%c4_33, %c0_34, %c0_35] : memref<5x32x168xbf16, #tpu.memory_space<vmem>>, vector<1x32x168xbf16>
    %40 = vector.shape_cast %39 : vector<1x32x168xbf16> to vector<32x168xbf16>
    %cst_36 = arith.constant dense<0.000000e+00> : vector<224x168xf32>
    %41 = tpu.matmul %38, %40, %cst_36 {dimension_numbers = #tpu.dot_dimension_numbers<[1], [0], [0], [1], [0, 0, 1, 1], [], []>} : vector<224x32xbf16>, vector<32x168xbf16>, vector<224x168xf32> -> vector<224x168xf32>
    %42 = arith.addf %34, %41 : vector<224x168xf32>
    %c0_37 = arith.constant 0 : index
    %c0_38 = arith.constant 0 : index
    %43 = vector.load %arg4[%c0_37, %c0_38] : memref<1x168xf32, #tpu.memory_space<vmem>>, vector<1x168xf32>
    %44 = vector.broadcast %43 : vector<1x168xf32> to vector<224x168xf32>
    %45 = arith.addf %42, %44 : vector<224x168xf32>
    %cst_39 = arith.constant 0.000000e+00 : f32
    %46 = vector.broadcast %cst_39 : f32 to vector<224x168xf32>
    %47 = arith.maximumf %45, %46 : vector<224x168xf32>
    %48 = arith.truncf %47 : vector<224x168xf32> to vector<224x168xbf16>
    %c0_40 = arith.constant 0 : index
    %c0_41 = arith.constant 0 : index
    %49 = vector.load %arg5[%c0_40, %c0_41] : memref<112x224xbf16, #tpu.memory_space<vmem>>, vector<112x224xbf16>
    %cst_42 = arith.constant dense<0.000000e+00> : vector<112x168xf32>
    %50 = tpu.matmul %49, %48, %cst_42 {dimension_numbers = #tpu.dot_dimension_numbers<[1], [0], [0], [1], [0, 0, 1, 1], [], []>} : vector<112x224xbf16>, vector<224x168xbf16>, vector<112x168xf32> -> vector<112x168xf32>
    %51 = arith.truncf %50 : vector<112x168xf32> to vector<112x168xbf16>
    %c0_43 = arith.constant 0 : index
    %c0_44 = arith.constant 0 : index
    %52 = vector.load %arg6[%c0_43, %c0_44] : memref<168x84xbf16, #tpu.memory_space<vmem>>, vector<168x84xbf16>
    %cst_45 = arith.constant dense<0.000000e+00> : vector<112x84xf32>
    %53 = tpu.matmul %51, %52, %cst_45 {dimension_numbers = #tpu.dot_dimension_numbers<[1], [0], [0], [1], [0, 0, 1, 1], [], []>} : vector<112x168xbf16>, vector<168x84xbf16>, vector<112x84xf32> -> vector<112x84xf32>
    %54 = arith.truncf %53 : vector<112x84xf32> to vector<112x84xbf16>
    %cst_46 = arith.constant 0.000000e+00 : f32
    %55 = vector.broadcast %cst_46 : f32 to vector<80x160xf32>
    %c0_47 = arith.constant 0 : index
    %c0_48 = arith.constant 0 : index
    %c0_49 = arith.constant 0 : index
    %56 = vector.load %arg7[%c0_47, %c0_48, %c0_49] : memref<5x80x112xbf16, #tpu.memory_space<vmem>>, vector<1x80x112xbf16>
    %57 = vector.shape_cast %56 : vector<1x80x112xbf16> to vector<80x112xbf16>
    %cst_50 = arith.constant dense<0.000000e+00> : vector<80x84xf32>
    %58 = tpu.matmul %57, %54, %cst_50 {dimension_numbers = #tpu.dot_dimension_numbers<[1], [0], [0], [1], [0, 0, 1, 1], [], []>} : vector<80x112xbf16>, vector<112x84xbf16>, vector<80x84xf32> -> vector<80x84xf32>
    %59 = arith.truncf %58 : vector<80x84xf32> to vector<80x84xbf16>
    %c0_51 = arith.constant 0 : index
    %c0_52 = arith.constant 0 : index
    %c0_53 = arith.constant 0 : index
    %60 = vector.load %arg8[%c0_51, %c0_52, %c0_53] : memref<5x84x160xbf16, #tpu.memory_space<vmem>>, vector<1x84x160xbf16>
    %61 = vector.shape_cast %60 : vector<1x84x160xbf16> to vector<84x160xbf16>
    %cst_54 = arith.constant dense<0.000000e+00> : vector<80x160xf32>
    %62 = tpu.matmul %59, %61, %cst_54 {dimension_numbers = #tpu.dot_dimension_numbers<[1], [0], [0], [1], [0, 0, 1, 1], [], []>} : vector<80x84xbf16>, vector<84x160xbf16>, vector<80x160xf32> -> vector<80x160xf32>
    %63 = arith.addf %55, %62 : vector<80x160xf32>
    %c1_55 = arith.constant 1 : index
    %c0_56 = arith.constant 0 : index
    %c0_57 = arith.constant 0 : index
    %64 = vector.load %arg7[%c1_55, %c0_56, %c0_57] : memref<5x80x112xbf16, #tpu.memory_space<vmem>>, vector<1x80x112xbf16>
    %65 = vector.shape_cast %64 : vector<1x80x112xbf16> to vector<80x112xbf16>
    %cst_58 = arith.constant dense<0.000000e+00> : vector<80x84xf32>
    %66 = tpu.matmul %65, %54, %cst_58 {dimension_numbers = #tpu.dot_dimension_numbers<[1], [0], [0], [1], [0, 0, 1, 1], [], []>} : vector<80x112xbf16>, vector<112x84xbf16>, vector<80x84xf32> -> vector<80x84xf32>
    %67 = arith.truncf %66 : vector<80x84xf32> to vector<80x84xbf16>
    %c1_59 = arith.constant 1 : index
    %c0_60 = arith.constant 0 : index
    %c0_61 = arith.constant 0 : index
    %68 = vector.load %arg8[%c1_59, %c0_60, %c0_61] : memref<5x84x160xbf16, #tpu.memory_space<vmem>>, vector<1x84x160xbf16>
    %69 = vector.shape_cast %68 : vector<1x84x160xbf16> to vector<84x160xbf16>
    %cst_62 = arith.constant dense<0.000000e+00> : vector<80x160xf32>
    %70 = tpu.matmul %67, %69, %cst_62 {dimension_numbers = #tpu.dot_dimension_numbers<[1], [0], [0], [1], [0, 0, 1, 1], [], []>} : vector<80x84xbf16>, vector<84x160xbf16>, vector<80x160xf32> -> vector<80x160xf32>
    %71 = arith.addf %63, %70 : vector<80x160xf32>
    %c2_63 = arith.constant 2 : index
    %c0_64 = arith.constant 0 : index
    %c0_65 = arith.constant 0 : index
    %72 = vector.load %arg7[%c2_63, %c0_64, %c0_65] : memref<5x80x112xbf16, #tpu.memory_space<vmem>>, vector<1x80x112xbf16>
    %73 = vector.shape_cast %72 : vector<1x80x112xbf16> to vector<80x112xbf16>
    %cst_66 = arith.constant dense<0.000000e+00> : vector<80x84xf32>
    %74 = tpu.matmul %73, %54, %cst_66 {dimension_numbers = #tpu.dot_dimension_numbers<[1], [0], [0], [1], [0, 0, 1, 1], [], []>} : vector<80x112xbf16>, vector<112x84xbf16>, vector<80x84xf32> -> vector<80x84xf32>
    %75 = arith.truncf %74 : vector<80x84xf32> to vector<80x84xbf16>
    %c2_67 = arith.constant 2 : index
    %c0_68 = arith.constant 0 : index
    %c0_69 = arith.constant 0 : index
    %76 = vector.load %arg8[%c2_67, %c0_68, %c0_69] : memref<5x84x160xbf16, #tpu.memory_space<vmem>>, vector<1x84x160xbf16>
    %77 = vector.shape_cast %76 : vector<1x84x160xbf16> to vector<84x160xbf16>
    %cst_70 = arith.constant dense<0.000000e+00> : vector<80x160xf32>
    %78 = tpu.matmul %75, %77, %cst_70 {dimension_numbers = #tpu.dot_dimension_numbers<[1], [0], [0], [1], [0, 0, 1, 1], [], []>} : vector<80x84xbf16>, vector<84x160xbf16>, vector<80x160xf32> -> vector<80x160xf32>
    %79 = arith.addf %71, %78 : vector<80x160xf32>
    %c3_71 = arith.constant 3 : index
    %c0_72 = arith.constant 0 : index
    %c0_73 = arith.constant 0 : index
    %80 = vector.load %arg7[%c3_71, %c0_72, %c0_73] : memref<5x80x112xbf16, #tpu.memory_space<vmem>>, vector<1x80x112xbf16>
    %81 = vector.shape_cast %80 : vector<1x80x112xbf16> to vector<80x112xbf16>
    %cst_74 = arith.constant dense<0.000000e+00> : vector<80x84xf32>
    %82 = tpu.matmul %81, %54, %cst_74 {dimension_numbers = #tpu.dot_dimension_numbers<[1], [0], [0], [1], [0, 0, 1, 1], [], []>} : vector<80x112xbf16>, vector<112x84xbf16>, vector<80x84xf32> -> vector<80x84xf32>
    %83 = arith.truncf %82 : vector<80x84xf32> to vector<80x84xbf16>
    %c3_75 = arith.constant 3 : index
    %c0_76 = arith.constant 0 : index
    %c0_77 = arith.constant 0 : index
    %84 = vector.load %arg8[%c3_75, %c0_76, %c0_77] : memref<5x84x160xbf16, #tpu.memory_space<vmem>>, vector<1x84x160xbf16>
    %85 = vector.shape_cast %84 : vector<1x84x160xbf16> to vector<84x160xbf16>
    %cst_78 = arith.constant dense<0.000000e+00> : vector<80x160xf32>
    %86 = tpu.matmul %83, %85, %cst_78 {dimension_numbers = #tpu.dot_dimension_numbers<[1], [0], [0], [1], [0, 0, 1, 1], [], []>} : vector<80x84xbf16>, vector<84x160xbf16>, vector<80x160xf32> -> vector<80x160xf32>
    %87 = arith.addf %79, %86 : vector<80x160xf32>
    %c4_79 = arith.constant 4 : index
    %c0_80 = arith.constant 0 : index
    %c0_81 = arith.constant 0 : index
    %88 = vector.load %arg7[%c4_79, %c0_80, %c0_81] : memref<5x80x112xbf16, #tpu.memory_space<vmem>>, vector<1x80x112xbf16>
    %89 = vector.shape_cast %88 : vector<1x80x112xbf16> to vector<80x112xbf16>
    %cst_82 = arith.constant dense<0.000000e+00> : vector<80x84xf32>
    %90 = tpu.matmul %89, %54, %cst_82 {dimension_numbers = #tpu.dot_dimension_numbers<[1], [0], [0], [1], [0, 0, 1, 1], [], []>} : vector<80x112xbf16>, vector<112x84xbf16>, vector<80x84xf32> -> vector<80x84xf32>
    %91 = arith.truncf %90 : vector<80x84xf32> to vector<80x84xbf16>
    %c4_83 = arith.constant 4 : index
    %c0_84 = arith.constant 0 : index
    %c0_85 = arith.constant 0 : index
    %92 = vector.load %arg8[%c4_83, %c0_84, %c0_85] : memref<5x84x160xbf16, #tpu.memory_space<vmem>>, vector<1x84x160xbf16>
    %93 = vector.shape_cast %92 : vector<1x84x160xbf16> to vector<84x160xbf16>
    %cst_86 = arith.constant dense<0.000000e+00> : vector<80x160xf32>
    %94 = tpu.matmul %91, %93, %cst_86 {dimension_numbers = #tpu.dot_dimension_numbers<[1], [0], [0], [1], [0, 0, 1, 1], [], []>} : vector<80x84xbf16>, vector<84x160xbf16>, vector<80x160xf32> -> vector<80x160xf32>
    %95 = arith.addf %87, %94 : vector<80x160xf32>
    %c0_87 = arith.constant 0 : index
    %c0_88 = arith.constant 0 : index
    %96 = vector.load %arg9[%c0_87, %c0_88] : memref<1x160xf32, #tpu.memory_space<vmem>>, vector<1x160xf32>
    %97 = vector.broadcast %96 : vector<1x160xf32> to vector<80x160xf32>
    %98 = arith.addf %95, %97 : vector<80x160xf32>
    %cst_89 = arith.constant 0.000000e+00 : f32
    %99 = vector.broadcast %cst_89 : f32 to vector<80x160xf32>
    %100 = arith.maximumf %98, %99 : vector<80x160xf32>
    %101 = arith.truncf %100 : vector<80x160xf32> to vector<80x160xbf16>
    %c0_90 = arith.constant 0 : index
    %c0_91 = arith.constant 0 : index
    %102 = vector.load %arg10[%c0_90, %c0_91] : memref<40x80xbf16, #tpu.memory_space<vmem>>, vector<40x80xbf16>
    %cst_92 = arith.constant dense<0.000000e+00> : vector<40x160xf32>
    %103 = tpu.matmul %102, %101, %cst_92 {dimension_numbers = #tpu.dot_dimension_numbers<[1], [0], [0], [1], [0, 0, 1, 1], [], []>} : vector<40x80xbf16>, vector<80x160xbf16>, vector<40x160xf32> -> vector<40x160xf32>
    %104 = arith.truncf %103 : vector<40x160xf32> to vector<40x160xbf16>
    %c0_93 = arith.constant 0 : index
    %c0_94 = arith.constant 0 : index
    %105 = vector.load %arg11[%c0_93, %c0_94] : memref<160x80xbf16, #tpu.memory_space<vmem>>, vector<160x80xbf16>
    %cst_95 = arith.constant dense<0.000000e+00> : vector<40x80xf32>
    %106 = tpu.matmul %104, %105, %cst_95 {dimension_numbers = #tpu.dot_dimension_numbers<[1], [0], [0], [1], [0, 0, 1, 1], [], []>} : vector<40x160xbf16>, vector<160x80xbf16>, vector<40x80xf32> -> vector<40x80xf32>
    %107 = arith.truncf %106 : vector<40x80xf32> to vector<40x80xbf16>
    %cst_96 = arith.constant 0.000000e+00 : f32
    %108 = vector.broadcast %cst_96 : f32 to vector<8x120xf32>
    %c0_97 = arith.constant 0 : index
    %c0_98 = arith.constant 0 : index
    %c0_99 = arith.constant 0 : index
    %109 = vector.load %arg12[%c0_97, %c0_98, %c0_99] : memref<5x8x40xbf16, #tpu.memory_space<vmem>>, vector<1x8x40xbf16>
    %110 = vector.shape_cast %109 : vector<1x8x40xbf16> to vector<8x40xbf16>
    %cst_100 = arith.constant dense<0.000000e+00> : vector<8x80xf32>
    %111 = tpu.matmul %110, %107, %cst_100 {dimension_numbers = #tpu.dot_dimension_numbers<[1], [0], [0], [1], [0, 0, 1, 1], [], []>} : vector<8x40xbf16>, vector<40x80xbf16>, vector<8x80xf32> -> vector<8x80xf32>
    %112 = arith.truncf %111 : vector<8x80xf32> to vector<8x80xbf16>
    %c0_101 = arith.constant 0 : index
    %c0_102 = arith.constant 0 : index
    %c0_103 = arith.constant 0 : index
    %113 = vector.load %arg13[%c0_101, %c0_102, %c0_103] : memref<5x80x120xbf16, #tpu.memory_space<vmem>>, vector<1x80x120xbf16>
    %114 = vector.shape_cast %113 : vector<1x80x120xbf16> to vector<80x120xbf16>
    %cst_104 = arith.constant dense<0.000000e+00> : vector<8x120xf32>
    %115 = tpu.matmul %112, %114, %cst_104 {dimension_numbers = #tpu.dot_dimension_numbers<[1], [0], [0], [1], [0, 0, 1, 1], [], []>} : vector<8x80xbf16>, vector<80x120xbf16>, vector<8x120xf32> -> vector<8x120xf32>
    %116 = arith.addf %108, %115 : vector<8x120xf32>
    %c1_105 = arith.constant 1 : index
    %c0_106 = arith.constant 0 : index
    %c0_107 = arith.constant 0 : index
    %117 = vector.load %arg12[%c1_105, %c0_106, %c0_107] : memref<5x8x40xbf16, #tpu.memory_space<vmem>>, vector<1x8x40xbf16>
    %118 = vector.shape_cast %117 : vector<1x8x40xbf16> to vector<8x40xbf16>
    %cst_108 = arith.constant dense<0.000000e+00> : vector<8x80xf32>
    %119 = tpu.matmul %118, %107, %cst_108 {dimension_numbers = #tpu.dot_dimension_numbers<[1], [0], [0], [1], [0, 0, 1, 1], [], []>} : vector<8x40xbf16>, vector<40x80xbf16>, vector<8x80xf32> -> vector<8x80xf32>
    %120 = arith.truncf %119 : vector<8x80xf32> to vector<8x80xbf16>
    %c1_109 = arith.constant 1 : index
    %c0_110 = arith.constant 0 : index
    %c0_111 = arith.constant 0 : index
    %121 = vector.load %arg13[%c1_109, %c0_110, %c0_111] : memref<5x80x120xbf16, #tpu.memory_space<vmem>>, vector<1x80x120xbf16>
    %122 = vector.shape_cast %121 : vector<1x80x120xbf16> to vector<80x120xbf16>
    %cst_112 = arith.constant dense<0.000000e+00> : vector<8x120xf32>
    %123 = tpu.matmul %120, %122, %cst_112 {dimension_numbers = #tpu.dot_dimension_numbers<[1], [0], [0], [1], [0, 0, 1, 1], [], []>} : vector<8x80xbf16>, vector<80x120xbf16>, vector<8x120xf32> -> vector<8x120xf32>
    %124 = arith.addf %116, %123 : vector<8x120xf32>
    %c2_113 = arith.constant 2 : index
    %c0_114 = arith.constant 0 : index
    %c0_115 = arith.constant 0 : index
    %125 = vector.load %arg12[%c2_113, %c0_114, %c0_115] : memref<5x8x40xbf16, #tpu.memory_space<vmem>>, vector<1x8x40xbf16>
    %126 = vector.shape_cast %125 : vector<1x8x40xbf16> to vector<8x40xbf16>
    %cst_116 = arith.constant dense<0.000000e+00> : vector<8x80xf32>
    %127 = tpu.matmul %126, %107, %cst_116 {dimension_numbers = #tpu.dot_dimension_numbers<[1], [0], [0], [1], [0, 0, 1, 1], [], []>} : vector<8x40xbf16>, vector<40x80xbf16>, vector<8x80xf32> -> vector<8x80xf32>
    %128 = arith.truncf %127 : vector<8x80xf32> to vector<8x80xbf16>
    %c2_117 = arith.constant 2 : index
    %c0_118 = arith.constant 0 : index
    %c0_119 = arith.constant 0 : index
    %129 = vector.load %arg13[%c2_117, %c0_118, %c0_119] : memref<5x80x120xbf16, #tpu.memory_space<vmem>>, vector<1x80x120xbf16>
    %130 = vector.shape_cast %129 : vector<1x80x120xbf16> to vector<80x120xbf16>
    %cst_120 = arith.constant dense<0.000000e+00> : vector<8x120xf32>
    %131 = tpu.matmul %128, %130, %cst_120 {dimension_numbers = #tpu.dot_dimension_numbers<[1], [0], [0], [1], [0, 0, 1, 1], [], []>} : vector<8x80xbf16>, vector<80x120xbf16>, vector<8x120xf32> -> vector<8x120xf32>
    %132 = arith.addf %124, %131 : vector<8x120xf32>
    %c3_121 = arith.constant 3 : index
    %c0_122 = arith.constant 0 : index
    %c0_123 = arith.constant 0 : index
    %133 = vector.load %arg12[%c3_121, %c0_122, %c0_123] : memref<5x8x40xbf16, #tpu.memory_space<vmem>>, vector<1x8x40xbf16>
    %134 = vector.shape_cast %133 : vector<1x8x40xbf16> to vector<8x40xbf16>
    %cst_124 = arith.constant dense<0.000000e+00> : vector<8x80xf32>
    %135 = tpu.matmul %134, %107, %cst_124 {dimension_numbers = #tpu.dot_dimension_numbers<[1], [0], [0], [1], [0, 0, 1, 1], [], []>} : vector<8x40xbf16>, vector<40x80xbf16>, vector<8x80xf32> -> vector<8x80xf32>
    %136 = arith.truncf %135 : vector<8x80xf32> to vector<8x80xbf16>
    %c3_125 = arith.constant 3 : index
    %c0_126 = arith.constant 0 : index
    %c0_127 = arith.constant 0 : index
    %137 = vector.load %arg13[%c3_125, %c0_126, %c0_127] : memref<5x80x120xbf16, #tpu.memory_space<vmem>>, vector<1x80x120xbf16>
    %138 = vector.shape_cast %137 : vector<1x80x120xbf16> to vector<80x120xbf16>
    %cst_128 = arith.constant dense<0.000000e+00> : vector<8x120xf32>
    %139 = tpu.matmul %136, %138, %cst_128 {dimension_numbers = #tpu.dot_dimension_numbers<[1], [0], [0], [1], [0, 0, 1, 1], [], []>} : vector<8x80xbf16>, vector<80x120xbf16>, vector<8x120xf32> -> vector<8x120xf32>
    %140 = arith.addf %132, %139 : vector<8x120xf32>
    %c4_129 = arith.constant 4 : index
    %c0_130 = arith.constant 0 : index
    %c0_131 = arith.constant 0 : index
    %141 = vector.load %arg12[%c4_129, %c0_130, %c0_131] : memref<5x8x40xbf16, #tpu.memory_space<vmem>>, vector<1x8x40xbf16>
    %142 = vector.shape_cast %141 : vector<1x8x40xbf16> to vector<8x40xbf16>
    %cst_132 = arith.constant dense<0.000000e+00> : vector<8x80xf32>
    %143 = tpu.matmul %142, %107, %cst_132 {dimension_numbers = #tpu.dot_dimension_numbers<[1], [0], [0], [1], [0, 0, 1, 1], [], []>} : vector<8x40xbf16>, vector<40x80xbf16>, vector<8x80xf32> -> vector<8x80xf32>
    %144 = arith.truncf %143 : vector<8x80xf32> to vector<8x80xbf16>
    %c4_133 = arith.constant 4 : index
    %c0_134 = arith.constant 0 : index
    %c0_135 = arith.constant 0 : index
    %145 = vector.load %arg13[%c4_133, %c0_134, %c0_135] : memref<5x80x120xbf16, #tpu.memory_space<vmem>>, vector<1x80x120xbf16>
    %146 = vector.shape_cast %145 : vector<1x80x120xbf16> to vector<80x120xbf16>
    %cst_136 = arith.constant dense<0.000000e+00> : vector<8x120xf32>
    %147 = tpu.matmul %144, %146, %cst_136 {dimension_numbers = #tpu.dot_dimension_numbers<[1], [0], [0], [1], [0, 0, 1, 1], [], []>} : vector<8x80xbf16>, vector<80x120xbf16>, vector<8x120xf32> -> vector<8x120xf32>
    %148 = arith.addf %140, %147 : vector<8x120xf32>
    %c0_137 = arith.constant 0 : index
    %c0_138 = arith.constant 0 : index
    %149 = vector.load %arg14[%c0_137, %c0_138] : memref<1x120xf32, #tpu.memory_space<vmem>>, vector<1x120xf32>
    %150 = vector.broadcast %149 : vector<1x120xf32> to vector<8x120xf32>
    %151 = arith.addf %148, %150 : vector<8x120xf32>
    %cst_139 = arith.constant 0.000000e+00 : f32
    %152 = vector.broadcast %cst_139 : f32 to vector<8x120xf32>
    %153 = arith.maximumf %151, %152 : vector<8x120xf32>
    %154 = arith.truncf %153 : vector<8x120xf32> to vector<8x120xbf16>
    %c0_140 = arith.constant 0 : index
    %c0_141 = arith.constant 0 : index
    %155 = vector.load %arg15[%c0_140, %c0_141] : memref<120x84xbf16, #tpu.memory_space<vmem>>, vector<120x84xbf16>
    %cst_142 = arith.constant dense<0.000000e+00> : vector<8x84xf32>
    %156 = tpu.matmul %154, %155, %cst_142 {dimension_numbers = #tpu.dot_dimension_numbers<[1], [0], [0], [1], [0, 0, 1, 1], [], []>} : vector<8x120xbf16>, vector<120x84xbf16>, vector<8x84xf32> -> vector<8x84xf32>
    %c0_143 = arith.constant 0 : index
    %c0_144 = arith.constant 0 : index
    %157 = vector.load %arg16[%c0_143, %c0_144] : memref<1x84xf32, #tpu.memory_space<vmem>>, vector<1x84xf32>
    %158 = vector.broadcast %157 : vector<1x84xf32> to vector<8x84xf32>
    %159 = arith.addf %156, %158 : vector<8x84xf32>
    %cst_145 = arith.constant 0.000000e+00 : f32
    %160 = vector.broadcast %cst_145 : f32 to vector<8x84xf32>
    %161 = arith.maximumf %159, %160 : vector<8x84xf32>
    %162 = arith.truncf %161 : vector<8x84xf32> to vector<8x84xbf16>
    %c0_146 = arith.constant 0 : index
    %c0_147 = arith.constant 0 : index
    %163 = vector.load %arg17[%c0_146, %c0_147] : memref<84x128xbf16, #tpu.memory_space<vmem>>, vector<84x128xbf16>
    %cst_148 = arith.constant dense<0.000000e+00> : vector<8x128xf32>
    %164 = tpu.matmul %162, %163, %cst_148 {dimension_numbers = #tpu.dot_dimension_numbers<[1], [0], [0], [1], [0, 0, 1, 1], [], []>} : vector<8x84xbf16>, vector<84x128xbf16>, vector<8x128xf32> -> vector<8x128xf32>
    %c0_149 = arith.constant 0 : index
    %c0_150 = arith.constant 0 : index
    %165 = vector.load %arg18[%c0_149, %c0_150] : memref<1x128xf32, #tpu.memory_space<vmem>>, vector<1x128xf32>
    %166 = vector.broadcast %165 : vector<1x128xf32> to vector<8x128xf32>
    %167 = arith.addf %164, %166 : vector<8x128xf32>
    %c0_151 = arith.constant 0 : index
    %c0_152 = arith.constant 0 : index
    %168 = vector.load %arg19[%c0_151, %c0_152] : memref<8x128xf32, #tpu.memory_space<vmem>>, vector<8x128xf32>
    tpu.vector_store %arg19[%c0_151, %c0_152], %167 {strides = array<i32>} : memref<8x128xf32, #tpu.memory_space<vmem>>, vector<8x128xf32>,
    return
  }
  func.func @transform_0(%arg0: i32) -> (i32, i32) {
    %c0_i32 = arith.constant 0 : i32
    %c0_i32_0 = arith.constant 0 : i32
    return %arg0, %c0_i32 : i32, i32
  }
  func.func @transform_1(%arg0: i32) -> (i32, i32, i32) {
    %c0_i32 = arith.constant 0 : i32
    %c0_i32_0 = arith.constant 0 : i32
    %c0_i32_1 = arith.constant 0 : i32
    %c0_i32_2 = arith.constant 0 : i32
    return %c0_i32, %c0_i32_0, %c0_i32_1 : i32, i32, i32
  }
  func.func @transform_2(%arg0: i32) -> (i32, i32, i32) {
    %c0_i32 = arith.constant 0 : i32
    %c0_i32_0 = arith.constant 0 : i32
    %c0_i32_1 = arith.constant 0 : i32
    %c0_i32_2 = arith.constant 0 : i32
    return %c0_i32, %c0_i32_0, %c0_i32_1 : i32, i32, i32
  }
  func.func @transform_3(%arg0: i32) -> (i32, i32) {
    %c0_i32 = arith.constant 0 : i32
    %c0_i32_0 = arith.constant 0 : i32
    %c0_i32_1 = arith.constant 0 : i32
    return %c0_i32, %c0_i32_0 : i32, i32
  }
  func.func @transform_4(%arg0: i32) -> (i32, i32) {
    %c0_i32 = arith.constant 0 : i32
    %c0_i32_0 = arith.constant 0 : i32
    %c0_i32_1 = arith.constant 0 : i32
    return %c0_i32, %c0_i32_0 : i32, i32
  }
  func.func @transform_5(%arg0: i32) -> (i32, i32) {
    %c0_i32 = arith.constant 0 : i32
    %c0_i32_0 = arith.constant 0 : i32
    %c0_i32_1 = arith.constant 0 : i32
    return %c0_i32, %c0_i32_0 : i32, i32
  }
  func.func @transform_6(%arg0: i32) -> (i32, i32, i32) {
    %c0_i32 = arith.constant 0 : i32
    %c0_i32_0 = arith.constant 0 : i32
    %c0_i32_1 = arith.constant 0 : i32
    %c0_i32_2 = arith.constant 0 : i32
    return %c0_i32, %c0_i32_0, %c0_i32_1 : i32, i32, i32
  }
  func.func @transform_7(%arg0: i32) -> (i32, i32, i32) {
    %c0_i32 = arith.constant 0 : i32
    %c0_i32_0 = arith.constant 0 : i32
    %c0_i32_1 = arith.constant 0 : i32
    %c0_i32_2 = arith.constant 0 : i32
    return %c0_i32, %c0_i32_0, %c0_i32_1 : i32, i32, i32
  }
  func.func @transform_8(%arg0: i32) -> (i32, i32) {
    %c0_i32 = arith.constant 0 : i32
    %c0_i32_0 = arith.constant 0 : i32
    %c0_i32_1 = arith.constant 0 : i32
    return %c0_i32, %c0_i32_0 : i32, i32
  }
  func.func @transform_9(%arg0: i32) -> (i32, i32) {
    %c0_i32 = arith.constant 0 : i32
    %c0_i32_0 = arith.constant 0 : i32
    %c0_i32_1 = arith.constant 0 : i32
    return %c0_i32, %c0_i32_0 : i32, i32
  }
  func.func @transform_10(%arg0: i32) -> (i32, i32) {
    %c0_i32 = arith.constant 0 : i32
    %c0_i32_0 = arith.constant 0 : i32
    %c0_i32_1 = arith.constant 0 : i32
    return %c0_i32, %c0_i32_0 : i32, i32
  }
  func.func @transform_11(%arg0: i32) -> (i32, i32, i32) {
    %c0_i32 = arith.constant 0 : i32
    %c0_i32_0 = arith.constant 0 : i32
    %c0_i32_1 = arith.constant 0 : i32
    %c0_i32_2 = arith.constant 0 : i32
    return %c0_i32, %c0_i32_0, %c0_i32_1 : i32, i32, i32
  }
  func.func @transform_12(%arg0: i32) -> (i32, i32, i32) {
    %c0_i32 = arith.constant 0 : i32
    %c0_i32_0 = arith.constant 0 : i32
    %c0_i32_1 = arith.constant 0 : i32
    %c0_i32_2 = arith.constant 0 : i32
    return %c0_i32, %c0_i32_0, %c0_i32_1 : i32, i32, i32
  }
  func.func @transform_13(%arg0: i32) -> (i32, i32) {
    %c0_i32 = arith.constant 0 : i32
    %c0_i32_0 = arith.constant 0 : i32
    %c0_i32_1 = arith.constant 0 : i32
    return %c0_i32, %c0_i32_0 : i32, i32
  }
  func.func @transform_14(%arg0: i32) -> (i32, i32) {
    %c0_i32 = arith.constant 0 : i32
    %c0_i32_0 = arith.constant 0 : i32
    %c0_i32_1 = arith.constant 0 : i32
    return %c0_i32, %c0_i32_0 : i32, i32
  }
  func.func @transform_15(%arg0: i32) -> (i32, i32) {
    %c0_i32 = arith.constant 0 : i32
    %c0_i32_0 = arith.constant 0 : i32
    %c0_i32_1 = arith.constant 0 : i32
    return %c0_i32, %c0_i32_0 : i32, i32
  }
  func.func @transform_16(%arg0: i32) -> (i32, i32) {
    %c0_i32 = arith.constant 0 : i32
    %c0_i32_0 = arith.constant 0 : i32
    %c0_i32_1 = arith.constant 0 : i32
    return %c0_i32, %c0_i32_0 : i32, i32
  }
  func.func @transform_17(%arg0: i32) -> (i32, i32) {
    %c0_i32 = arith.constant 0 : i32
    %c0_i32_0 = arith.constant 0 : i32
    %c0_i32_1 = arith.constant 0 : i32
    return %c0_i32, %c0_i32_0 : i32, i32
  }
  func.func @transform_18(%arg0: i32) -> (i32, i32) {
    %c0_i32 = arith.constant 0 : i32
    %c0_i32_0 = arith.constant 0 : i32
    return %arg0, %c0_i32 : i32, i32
  }
}

</mosaic_0001>

<bundles_post_ra>
// kernel: forward.1
= control target key start
LH: loop header
LB: loop body
LE: loop exit
PB: predicated region body
PF: predicated region fallthrough
CT: control target
= control target key end

     0   :  { %vm792_vm0 = vcmask 261120   ;;  %vm3344_vm1 = vcmask 785408   ;;  %vm3589_vm2 = vcmask 1043456   ;;  %vm3567_vm3 = vcmask 326656   ;;  %s11413_s0 = inlined_call_operand.vmem [shape: f32[256,32], index: 0, kind: input, shape index: {}]   ;;  %s11414_s1 = inlined_call_operand.vmem [shape: bf16[5,224,256], index: 1, kind: input, shape index: {}]   ;;  %s11415_s2 = inlined_call_operand.vmem [shape: bf16[5,32,168], index: 2, kind: input, shape index: {}]   ;;  %s11416_s4 = inlined_call_operand.vmem [shape: bf16[112,224], index: 4, kind: input, shape index: {}]   ;;  %s11417_s3 = inlined_call_operand.vmem [shape: f32[1,168], index: 3, kind: input, shape index: {}]   ;;  %s11418_s5 = inlined_call_operand.vmem [shape: bf16[168,84], index: 5, kind: input, shape index: {}]   ;;  %s11419_s6 = inlined_call_operand.vmem [shape: bf16[5,80,112], index: 6, kind: input, shape index: {}]   ;;  %s11420_s7 = inlined_call_operand.vmem [shape: bf16[5,84,160], index: 7, kind: input, shape index: {}]   ;;  %s11421_s9 = inlined_call_operand.vmem [shape: bf16[40,80], index: 9, kind: input, shape index: {}]   ;;  %s11422_s10 = inlined_call_operand.vmem [shape: bf16[160,80], index: 10, kind: input, shape index: {}]   ;;  %s11423_s8 = inlined_call_operand.vmem [shape: f32[1,160], index: 8, kind: input, shape index: {}]   ;;  %s11424_s12 = inlined_call_operand.vmem [shape: bf16[5,80,120], index: 12, kind: input, shape index: {}]   ;;  %s11425_s11 = inlined_call_operand.vmem [shape: bf16[5,8,40], index: 11, kind: input, shape index: {}]   ;;  %s11426_s14 = inlined_call_operand.vmem [shape: bf16[120,84], index: 14, kind: input, shape index: {}]   ;;  %s11427_s16 = inlined_call_operand.vmem [shape: bf16[84,128], index: 16, kind: input, shape index: {}]   ;;  %s11428_s13 = inlined_call_operand.vmem [shape: f32[1,120], index: 13, kind: input, shape index: {}]   ;;  %s11429_s15 = inlined_call_operand.vmem [shape: f32[1,84], index: 15, kind: input, shape index: {}]   ;;  %s11430_s17 = inlined_call_operand.vmem [shape: f32[1,128], index: 17, kind: input, shape index: {}]   ;;  %s11431_s18 = inlined_call_operand.vmem [shape: f32[8,128], index: 18, kind: output, shape index: {}]  }
   0x1   :  { %11435 = sst [smem:[#allocation2_spill]] %s11413_s0  ;;  %vm8870_vm4 = vmmov 0   ;;  %vm3724_vm5 = vcmask 916480   ;;  %vm4041_vm6 = vcmask 1041408   ;;  %vm4025_vm7 = vcmask 687104  }
   0x2   :  { %11436 = sst [smem:[#allocation3_spill]] %s11414_s1  ;;  %s11438_s29 = sld [smem:[#allocation2_spill]]  ;;  %vm5330_vm8 = vcmask 654336   ;;  %vm6286_vm9 = vcmask 982016  }
   0x3   :  { %11437 = sst [smem:[#allocation4_spill]] %s11415_s2  ;;  %s11439_s23 = sld [smem:[#allocation3_spill]] }
   0x4   :  { %s11440_s24 = sld [smem:[#allocation4_spill]] }
   0x8   :  { %v76_v0 = vld [vmem:[%s11438_s29 + $0x80] sm:$0xff]  ;;  %v77_v1 = vld [vmem:[%s11438_s29 + $0x88] sm:$0xff]  ;;  %v78_v5 = vld [vmem:[%s11438_s29 + $0x90] sm:$0xff] }
   0x9   :  { %v60_v2 = vld [vmem:[%s11438_s29] sm:$0xff]  ;;  %v8975_v3 = vpack.c.bf16 %v77_v1, %v76_v0  ;;  %v61_v4 = vld [vmem:[%s11438_s29 + $0x8] sm:$0xff]  ;;  %v79_v6 = vld [vmem:[%s11438_s29 + $0x98] sm:$0xff] }
   0xa   :  { %v8986_v7 = vpack.c.bf16 %v61_v4, %v60_v2  ;;  %v8988_v8 = vpack.c.bf16 %v79_v6, %v78_v5  ;;  %v62_v9 = vld [vmem:[%s11438_s29 + $0x10] sm:$0xff]  ;;  %v63_v10 = vld [vmem:[%s11438_s29 + $0x18] sm:$0xff]  ;;  %v80_v11 = vld [vmem:[%s11438_s29 + $0xa0] sm:$0xff] }
   0xb   :  { %7275 = vmatprep.subr.bf16.mxu1 %v8975_v3  ;;  %v81_v12 = vld [vmem:[%s11438_s29 + $0xa8] sm:$0xff]  ;;  %7175 = vmatprep.subr.bf16.mxu0 %v8975_v3  ;;  %v9005_v13 = vpack.c.bf16 %v63_v10, %v62_v9  ;;  %v64_v15 = vld [vmem:[%s11438_s29 + $0x20] sm:$0xff]  ;;  %v82_v17 = vld [vmem:[%s11438_s29 + $0xb0] sm:$0xff] }
   0xc   :  { %7276 = vmatpush3.bf16.msra.mxu1 %v8986_v7  ;;  %7176 = vmatpush3.bf16.msra.mxu0 %v8986_v7  ;;  %v9009_v14 = vpack.c.bf16 %v81_v12, %v80_v11  ;;  %v65_v16 = vld [vmem:[%s11438_s29 + $0x28] sm:$0xff]  ;;  %v83_v18 = vld [vmem:[%s11438_s29 + $0xb8] sm:$0xff]  ;;  %v66_v21 = vld [vmem:[%s11438_s29 + $0x30] sm:$0xff] }
   0xd   :  { %7277 = vmatprep.subr.bf16.mxu1 %v8988_v8  ;;  %7177 = vmatprep.subr.bf16.mxu0 %v8988_v8  ;;  %v9025_v19 = vpack.c.bf16 %v65_v16, %v64_v15  ;;  %v9029_v20 = vpack.c.bf16 %v83_v18, %v82_v17  ;;  %v67_v22 = vld [vmem:[%s11438_s29 + $0x38] sm:$0xff]  ;;  %v84_v23 = vld [vmem:[%s11438_s29 + $0xc0] sm:$0xff]  ;;  %v85_v24 = vld [vmem:[%s11438_s29 + $0xc8] sm:$0xff] }
   0xe   :  { %v8436_v25 = vld [vmem:[%s11439_s23 + $0xe4] ss:$8 sps:$4 sm:$0xff]   ;;  %v9048_v26 = vpack.c.bf16 %v67_v22, %v66_v21  ;;  %v9055_v28 = vpack.c.bf16 %v85_v24, %v84_v23  ;;  %v86_v30 = vld [vmem:[%s11438_s29 + $0xd0] sm:$0xff]  ;;  %v87_v31 = vld [vmem:[%s11438_s29 + $0xd8] sm:$0xff] }
   0xf   :  { %v68_v27 = vld [vmem:[%s11438_s29 + $0x40] sm:$0xff]  ;;  %v69_v29 = vld [vmem:[%s11438_s29 + $0x48] sm:$0xff]  ;;  %640 = vmatprep.mubr.bf16.mxu1 %v8436_v25  ;;  %v70_v33 = vld [vmem:[%s11438_s29 + $0x50] sm:$0xff]  ;;  %v9075_v34 = vpack.c.bf16 %v87_v31, %v86_v30 }
  0x10   :  { %7278 = vmatpush3.bf16.msra.mxu1 %v9005_v13  ;;  %7178 = vmatpush3.bf16.msra.mxu0 %v9005_v13  ;;  %v9068_v32 = vpack.c.bf16 %v69_v29, %v68_v27  ;;  %v71_v35 = vld [vmem:[%s11438_s29 + $0x58] sm:$0xff]  ;;  %v88_v36 = vld [vmem:[%s11438_s29 + $0xe0] sm:$0xff]  ;;  %v89_v37 = vld [vmem:[%s11438_s29 + $0xe8] sm:$0xff] }
  0x11   :  { %7279 = vmatprep.subr.bf16.mxu1 %v9009_v14  ;;  %7179 = vmatprep.subr.bf16.mxu0 %v9009_v14  ;;  %v9088_v38 = vpack.c.bf16 %v71_v35, %v70_v33  ;;  %v72_v39 = vld [vmem:[%s11438_s29 + $0x60] sm:$0xff]  ;;  %v9095_v40 = vpack.c.bf16 %v89_v37, %v88_v36  ;;  %v73_v41 = vld [vmem:[%s11438_s29 + $0x68] sm:$0xff]  ;;  %v90_v42 = vld [vmem:[%s11438_s29 + $0xf0] sm:$0xff] }
  0x12   :  { %v91_v43 = vld [vmem:[%s11438_s29 + $0xf8] sm:$0xff]  ;;  %v9108_v44 = vpack.c.bf16 %v73_v41, %v72_v39  ;;  %v74_v45 = vld [vmem:[%s11438_s29 + $0x70] sm:$0xff]  ;;  %v8475_v49 = vld [vmem:[%s11439_s23 + $0x4] ss:$8 sps:$4 sm:$0xff]  }
  0x13   :  { %v9115_v46 = vpack.c.bf16 %v91_v43, %v90_v42  ;;  %v75_v47 = vld [vmem:[%s11438_s29 + $0x78] sm:$0xff]  ;;  %v8434_v50 = vld [vmem:[%s11439_s23 + $0xe0] ss:$8 sps:$4 sm:$0xff]   ;;  %308 = vmatprep.mubr.bf16.mxu0 %v8475_v49  ;;  %v8489_v55 = vld [vmem:[%s11440_s24 + $0x24] ss:$8 sps:$4 sm:$0xff]  }
  0x14   :  { %7280 = vmatpush3.bf16.msra.mxu1 %v9025_v19  ;;  %7180 = vmatpush3.bf16.msra.mxu0 %v9025_v19  ;;  %v9122_v48 = vpack.c.bf16 %v75_v47, %v74_v45  ;;  %v8437_v51 = vld [vmem:[%s11439_s23 + $0xf4] ss:$8 sps:$4 sm:$0xff]   ;;  %v8473_v52 = vld [vmem:[%s11439_s23] ss:$8 sps:$4 sm:$0xff]   ;;  %v8439_v56 = vld [vmem:[%s11439_s23 + $0xf0] ss:$8 sps:$4 sm:$0xff]  }
  0x15   :  { %7281 = vmatprep.subr.bf16.mxu1 %v9029_v20  ;;  %7181 = vmatprep.subr.bf16.mxu0 %v9029_v20  ;;  %v8479_v53 = vld [vmem:[%s11439_s23 + $0x14] ss:$8 sps:$4 sm:$0xff]   ;;  %v8487_v54 = vld [vmem:[%s11440_s24 + $0x20] ss:$8 sps:$4 sm:$0xff]   ;;  %v8440_v57 = vld [vmem:[%s11439_s23 + $0x104] ss:$8 sps:$4 sm:$0xff]  }
  0x16   :  { %v8481_v58 = vld [vmem:[%s11439_s23 + $0x10] ss:$8 sps:$4 sm:$0xff]   ;;  %v8482_v59 = vld [vmem:[%s11439_s23 + $0x24] ss:$8 sps:$4 sm:$0xff]   ;;  %v8442_v61 = vld [vmem:[%s11439_s23 + $0x100] ss:$8 sps:$4 sm:$0xff]  }
  0x17   :  { %v8511_v60 = vld [vmem:[%s11440_s24 + $0x30] ss:$8 sps:$4 sm:$0xff]   ;;  %v8513_v62 = vld [vmem:[%s11440_s24 + $0x34] ss:$8 sps:$4 sm:$0xff]   ;;  %v8484_v0 = vld [vmem:[%s11439_s23 + $0x20] ss:$8 sps:$4 sm:$0xff]  }
  0x18   :  { %7282 = vmatpush3.bf16.msra.mxu1 %v9048_v26  ;;  %7182 = vmatpush3.bf16.msra.mxu0 %v9048_v26  ;;  %v8443_v63 = vld [vmem:[%s11439_s23 + $0x114] ss:$8 sps:$4 sm:$0xff]   ;;  %v8445_v2 = vld [vmem:[%s11439_s23 + $0x110] ss:$8 sps:$4 sm:$0xff]   ;;  %v8446_v5 = vld [vmem:[%s11439_s23 + $0x124] ss:$8 sps:$4 sm:$0xff]  }
  0x19   :  { %7283 = vmatprep.subr.bf16.mxu1 %v9055_v28  ;;  %7183 = vmatprep.subr.bf16.mxu0 %v9055_v28  ;;  %v8485_v1 = vld [vmem:[%s11439_s23 + $0x34] ss:$8 sps:$4 sm:$0xff]   ;;  %v8490_v4 = vld [vmem:[%s11439_s23 + $0x30] ss:$8 sps:$4 sm:$0xff]   ;;  %v8491_v6 = vld [vmem:[%s11439_s23 + $0x44] ss:$8 sps:$4 sm:$0xff]  }
  0x1a   :  { %v8448_v9 = vld [vmem:[%s11439_s23 + $0x120] ss:$8 sps:$4 sm:$0xff]   ;;  %v8449_v11 = vld [vmem:[%s11439_s23 + $0x134] ss:$8 sps:$4 sm:$0xff]   ;;  %v8451_v15 = vld [vmem:[%s11439_s23 + $0x130] ss:$8 sps:$4 sm:$0xff]  }
  0x1b   :  { %v8493_v10 = vld [vmem:[%s11439_s23 + $0x40] ss:$8 sps:$4 sm:$0xff]   ;;  %v8494_v12 = vld [vmem:[%s11439_s23 + $0x54] ss:$8 sps:$4 sm:$0xff]   ;;  %v8496_v16 = vld [vmem:[%s11439_s23 + $0x50] ss:$8 sps:$4 sm:$0xff]  }
  0x1c   :  { %7284 = vmatpush3.bf16.msra.mxu1 %v9068_v32  ;;  %7184 = vmatpush3.bf16.msra.mxu0 %v9068_v32  ;;  %v8452_v17 = vld [vmem:[%s11439_s23 + $0x144] ss:$8 sps:$4 sm:$0xff]   ;;  %v8454_v21 = vld [vmem:[%s11439_s23 + $0x140] ss:$8 sps:$4 sm:$0xff]   ;;  %v8455_v23 = vld [vmem:[%s11439_s23 + $0x154] ss:$8 sps:$4 sm:$0xff]  }
  0x1d   :  { %7285 = vmatprep.subr.bf16.mxu1 %v9075_v34  ;;  %7185 = vmatprep.subr.bf16.mxu0 %v9075_v34  ;;  %v8497_v18 = vld [vmem:[%s11439_s23 + $0x64] ss:$8 sps:$4 sm:$0xff]   ;;  %v8499_v22 = vld [vmem:[%s11439_s23 + $0x60] ss:$8 sps:$4 sm:$0xff]   ;;  %v8500_v24 = vld [vmem:[%s11439_s23 + $0x74] ss:$8 sps:$4 sm:$0xff]  }
  0x1e   :  { %v8457_v25 = vld [vmem:[%s11439_s23 + $0x150] ss:$8 sps:$4 sm:$0xff]   ;;  %v8458_v29 = vld [vmem:[%s11439_s23 + $0x164] ss:$8 sps:$4 sm:$0xff]   ;;  %v8460_v31 = vld [vmem:[%s11439_s23 + $0x160] ss:$8 sps:$4 sm:$0xff]  }
  0x1f   :  { %v8502_v27 = vld [vmem:[%s11439_s23 + $0x70] ss:$8 sps:$4 sm:$0xff]   ;;  %v8503_v30 = vld [vmem:[%s11439_s23 + $0x84] ss:$8 sps:$4 sm:$0xff]   ;;  %v8505_v33 = vld [vmem:[%s11439_s23 + $0x80] ss:$8 sps:$4 sm:$0xff]  }
  0x20   :  { %7286 = vmatpush3.bf16.msra.mxu1 %v9088_v38  ;;  %7186 = vmatpush3.bf16.msra.mxu0 %v9088_v38  ;;  %v8461_v35 = vld [vmem:[%s11439_s23 + $0x174] ss:$8 sps:$4 sm:$0xff]   ;;  %v8463_v37 = vld [vmem:[%s11439_s23 + $0x170] ss:$8 sps:$4 sm:$0xff]   ;;  %v8464_v41 = vld [vmem:[%s11439_s23 + $0x184] ss:$8 sps:$4 sm:$0xff]  }
  0x21   :  { %7287 = vmatprep.subr.bf16.mxu1 %v9095_v40  ;;  %7187 = vmatprep.subr.bf16.mxu0 %v9095_v40  ;;  %v8506_v36 = vld [vmem:[%s11439_s23 + $0x94] ss:$8 sps:$4 sm:$0xff]   ;;  %v8508_v39 = vld [vmem:[%s11439_s23 + $0x90] ss:$8 sps:$4 sm:$0xff]   ;;  %v8509_v42 = vld [vmem:[%s11439_s23 + $0xa4] ss:$8 sps:$4 sm:$0xff]  }
  0x22   :  { %v8466_v43 = vld [vmem:[%s11439_s23 + $0x180] ss:$8 sps:$4 sm:$0xff]   ;;  %v8467_v47 = vld [vmem:[%s11439_s23 + $0x194] ss:$8 sps:$4 sm:$0xff]  }
  0x23   :  { %v8514_v45 = vld [vmem:[%s11439_s23 + $0xa0] ss:$8 sps:$4 sm:$0xff]   ;;  %v8515_v49 = vld [vmem:[%s11439_s23 + $0xb4] ss:$8 sps:$4 sm:$0xff]  }
  0x24   :  { %7288 = vmatpush3.bf16.msra.mxu1 %v9108_v44  ;;  %7188 = vmatpush3.bf16.msra.mxu0 %v9108_v44 }
  0x25   :  { %7289 = vmatprep.subr.bf16.mxu1 %v9115_v46  ;;  %7189 = vmatprep.subr.bf16.mxu0 %v9115_v46 }
  0x28   :  { %7290 = vmatpush3.bf16.msra.mxu1 %v9122_v48  ;;  %7190 = vmatpush3.bf16.msra.mxu0 %v9122_v48 }
  0x29   :  { %7375 = vmatprep.subr.bf16.mxu1 %v8975_v3  ;;  %835 = vmatprep.subr.bf16.mxu0 %v8489_v55  ;;  %v8520_v55 = vld [vmem:[%s11439_s23 + $0xc0] ss:$8 sps:$4 sm:$0xff]  }
  0x2b   :  { %641 = vmatmul.mubr.bf16.vlgmr.msra.gmra.mrb[0].mxu1 %v8434_v50  ;;  %309 = vmatmul.mubr.bf16.vlgmr.msra.gmra.mrb[0].mxu0 %v8473_v52  ;;  %v8469_v50 = vld [vmem:[%s11439_s23 + $0x190] ss:$8 sps:$4 sm:$0xff]   ;;  %v8470_v52 = vld [vmem:[%s11439_s23 + $0x1a4] ss:$8 sps:$4 sm:$0xff]  }
  0x2c   :  { %648 = vmatprep.mubr.bf16.mxu1 %v8437_v51  ;;  %316 = vmatprep.mubr.bf16.mxu0 %v8479_v53  ;;  %v8517_v51 = vld [vmem:[%s11439_s23 + $0xb0] ss:$8 sps:$4 sm:$0xff]   ;;  %v8518_v53 = vld [vmem:[%s11439_s23 + $0xc4] ss:$8 sps:$4 sm:$0xff]  }
  0x2d   :  { %7376 = vmatpush3.bf16.msra.mxu1 %v8986_v7  ;;  %836 = vmatpush1.bf16.msra.mxu0 %v8487_v54  ;;  %v8472_v54 = vld [vmem:[%s11439_s23 + $0x1a0] ss:$8 sps:$4 sm:$0xff]  }
  0x2e   :  { %7377 = vmatprep.subr.bf16.mxu1 %v8988_v8  ;;  %837 = vmatprep.subr.bf16.mxu0 %v8513_v62  ;;  %v8524_v62 = vld [vmem:[%s11439_s23 + $0x1c0] ss:$8 sps:$4 sm:$0xff]  }
  0x31   :  { %7378 = vmatpush3.bf16.msra.mxu1 %v9005_v13  ;;  %838 = vmatpush1.bf16.msra.mxu0 %v8511_v60  ;;  %v8526_v60 = vld [vmem:[%s11439_s23 + $0x1c4] ss:$8 sps:$4 sm:$0xff]  }
  0x32   :  { %7379 = vmatprep.subr.bf16.mxu1 %v9009_v14 }
  0x33   :  { %649 = vmatmul.mubr.bf16.gmra.mrb[4].mxu1 %v8439_v56  ;;  %317 = vmatmul.mubr.bf16.gmra.mrb[4].mxu0 %v8481_v58  ;;  %v8476_v56 = vld [vmem:[%s11439_s23 + $0x1b4] ss:$8 sps:$4 sm:$0xff]   ;;  %v8478_v58 = vld [vmem:[%s11439_s23 + $0x1b0] ss:$8 sps:$4 sm:$0xff]  }
  0x34   :  { %656 = vmatprep.mubr.bf16.mxu1 %v8440_v57  ;;  %324 = vmatprep.mubr.bf16.mxu0 %v8482_v59  ;;  %v8521_v57 = vld [vmem:[%s11439_s23 + $0xd4] ss:$8 sps:$4 sm:$0xff]   ;;  %v8523_v59 = vld [vmem:[%s11439_s23 + $0xd0] ss:$8 sps:$4 sm:$0xff]  }
  0x35   :  { %7380 = vmatpush3.bf16.msra.mxu1 %v9025_v19 }
  0x36   :  { %7381 = vmatprep.subr.bf16.mxu1 %v9029_v20 }
  0x39   :  { %7382 = vmatpush3.bf16.msra.mxu1 %v9048_v26 }
  0x3a   :  { %7383 = vmatprep.subr.bf16.mxu1 %v9055_v28 }
  0x3b   :  { %657 = vmatmul.mubr.bf16.gmra.mrb[8].mxu1 %v8442_v61  ;;  %325 = vmatmul.mubr.bf16.gmra.mrb[8].mxu0 %v8484_v0  ;;  %v8868_v61 = vmov 0   ;;  %v8535_v0 = vld [vmem:[%s11440_s24 + $0x4] ss:$8 sps:$4 sm:$0xff]  }
  0x3c   :  { %664 = vmatprep.mubr.bf16.mxu1 %v8443_v63  ;;  %332 = vmatprep.mubr.bf16.mxu0 %v8485_v1  ;;  %v8527_v63 = vld [vmem:[%s11439_s23 + $0x1d4] ss:$8 sps:$4 sm:$0xff]   ;;  %v8529_v1 = vld [vmem:[%s11439_s23 + $0x1d0] ss:$8 sps:$4 sm:$0xff]  }
  0x3d   :  { %7384 = vmatpush3.bf16.msra.mxu1 %v9068_v32  ;;  %1070 = vmatprep.subr.bf16.mxu0 %v8535_v0  ;;  %v8572_v0 = vld [vmem:[%s11439_s23 + $0x2a0] ss:$8 sps:$4 sm:$0xff]  }
  0x3e   :  { %7385 = vmatprep.subr.bf16.mxu1 %v9075_v34 }
  0x41   :  { %7386 = vmatpush3.bf16.msra.mxu1 %v9088_v38 }
  0x42   :  { %7387 = vmatprep.subr.bf16.mxu1 %v9095_v40 }
  0x43   :  { %665 = vmatmul.mubr.bf16.gmra.mrb[12].mxu1 %v8445_v2  ;;  %333 = vmatmul.mubr.bf16.gmra.mrb[12].mxu0 %v8490_v4  ;;  %v8530_v2 = vld [vmem:[%s11439_s23 + $0x1e4] ss:$8 sps:$4 sm:$0xff]   ;;  %v8532_v4 = vld [vmem:[%s11439_s23 + $0x1e0] ss:$8 sps:$4 sm:$0xff]  }
  0x44   :  { %672 = vmatprep.mubr.bf16.mxu1 %v8446_v5  ;;  %340 = vmatprep.mubr.bf16.mxu0 %v8491_v6  ;;  %v8536_v5 = vld [vmem:[%s11439_s23 + $0x1f4] ss:$8 sps:$4 sm:$0xff]   ;;  %v8538_v6 = vld [vmem:[%s11439_s23 + $0x1f0] ss:$8 sps:$4 sm:$0xff]  }
  0x45   :  { %7388 = vmatpush3.bf16.msra.mxu1 %v9108_v44 }
  0x46   :  { %7389 = vmatprep.subr.bf16.mxu1 %v9115_v46 }
  0x49   :  { %7390 = vmatpush3.bf16.msra.mxu1 %v9122_v48 }
  0x4a   :  { %7475 = vmatprep.subr.bf16.mxu1 %v8975_v3 }
  0x4b   :  { %673 = vmatmul.mubr.bf16.gmra.mrb[16].mxu1 %v8448_v9  ;;  %341 = vmatmul.mubr.bf16.gmra.mrb[16].mxu0 %v8493_v10  ;;  %v8539_v9 = vld [vmem:[%s11439_s23 + $0x204] ss:$8 sps:$4 sm:$0xff]   ;;  %v8541_v10 = vld [vmem:[%s11439_s23 + $0x200] ss:$8 sps:$4 sm:$0xff]  }
  0x4c   :  { %680 = vmatprep.mubr.bf16.mxu1 %v8449_v11  ;;  %348 = vmatprep.mubr.bf16.mxu0 %v8494_v12  ;;  %v8542_v11 = vld [vmem:[%s11439_s23 + $0x214] ss:$8 sps:$4 sm:$0xff]   ;;  %v8544_v12 = vld [vmem:[%s11439_s23 + $0x210] ss:$8 sps:$4 sm:$0xff]  }
  0x53   :  { %681 = vmatmul.mubr.bf16.gmra.mrb[20].mxu1 %v8451_v15  ;;  %349 = vmatmul.mubr.bf16.gmra.mrb[20].mxu0 %v8496_v16  ;;  %v8545_v15 = vld [vmem:[%s11439_s23 + $0x224] ss:$8 sps:$4 sm:$0xff]   ;;  %v8547_v16 = vld [vmem:[%s11439_s23 + $0x220] ss:$8 sps:$4 sm:$0xff]  }
  0x54   :  { %688 = vmatprep.mubr.bf16.mxu1 %v8452_v17  ;;  %356 = vmatprep.mubr.bf16.mxu0 %v8497_v18  ;;  %v8550_v17 = vld [vmem:[%s11439_s23 + $0x230] ss:$8 sps:$4 sm:$0xff]   ;;  %v8551_v18 = vld [vmem:[%s11439_s23 + $0x244] ss:$8 sps:$4 sm:$0xff]  }
  0x5b   :  { %689 = vmatmul.mubr.bf16.gmra.mrb[24].mxu1 %v8454_v21  ;;  %357 = vmatmul.mubr.bf16.gmra.mrb[24].mxu0 %v8499_v22  ;;  %v8553_v21 = vld [vmem:[%s11439_s23 + $0x240] ss:$8 sps:$4 sm:$0xff]   ;;  %v8554_v22 = vld [vmem:[%s11439_s23 + $0x254] ss:$8 sps:$4 sm:$0xff]  }
  0x5c   :  { %696 = vmatprep.mubr.bf16.mxu1 %v8455_v23  ;;  %364 = vmatprep.mubr.bf16.mxu0 %v8500_v24  ;;  %v8556_v23 = vld [vmem:[%s11439_s23 + $0x250] ss:$8 sps:$4 sm:$0xff]   ;;  %v8560_v24 = vld [vmem:[%s11439_s23 + $0x264] ss:$8 sps:$4 sm:$0xff]  }
  0x63   :  { %697 = vmatmul.mubr.bf16.gmra.mrb[28].mxu1 %v8457_v25  ;;  %365 = vmatmul.mubr.bf16.gmra.mrb[28].mxu0 %v8502_v27  ;;  %v8562_v25 = vld [vmem:[%s11439_s23 + $0x260] ss:$8 sps:$4 sm:$0xff]   ;;  %v8563_v27 = vld [vmem:[%s11439_s23 + $0x274] ss:$8 sps:$4 sm:$0xff]  }
  0x64   :  { %704 = vmatprep.mubr.bf16.mxu1 %v8458_v29  ;;  %372 = vmatprep.mubr.bf16.mxu0 %v8503_v30  ;;  %v8565_v29 = vld [vmem:[%s11439_s23 + $0x270] ss:$8 sps:$4 sm:$0xff]   ;;  %v8566_v30 = vld [vmem:[%s11439_s23 + $0x284] ss:$8 sps:$4 sm:$0xff]  }
  0x6b   :  { %705 = vmatmul.mubr.bf16.gmra.mrb[32].mxu1 %v8460_v31  ;;  %373 = vmatmul.mubr.bf16.gmra.mrb[32].mxu0 %v8505_v33  ;;  %v8568_v31 = vld [vmem:[%s11439_s23 + $0x280] ss:$8 sps:$4 sm:$0xff]   ;;  %v8569_v33 = vld [vmem:[%s11439_s23 + $0x294] ss:$8 sps:$4 sm:$0xff]  }
  0x6c   :  { %712 = vmatprep.mubr.bf16.mxu1 %v8461_v35  ;;  %380 = vmatprep.mubr.bf16.mxu0 %v8506_v36 }
  0x73   :  { %713 = vmatmul.mubr.bf16.gmra.mrb[36].mxu1 %v8463_v37  ;;  %381 = vmatmul.mubr.bf16.gmra.mrb[36].mxu0 %v8508_v39 }
  0x74   :  { %720 = vmatprep.mubr.bf16.mxu1 %v8464_v41  ;;  %388 = vmatprep.mubr.bf16.mxu0 %v8509_v42  ;;  %v8571_v41 = vld [vmem:[%s11439_s23 + $0x290] ss:$8 sps:$4 sm:$0xff]  }
  0x7b   :  { %721 = vmatmul.mubr.bf16.gmra.mrb[40].mxu1 %v8466_v43  ;;  %389 = vmatmul.mubr.bf16.gmra.mrb[40].mxu0 %v8514_v45 }
  0x7c   :  { %728 = vmatprep.mubr.bf16.mxu1 %v8467_v47  ;;  %396 = vmatprep.mubr.bf16.mxu0 %v8515_v49  ;;  %v8574_v49 = vld [vmem:[%s11439_s23 + $0x2a4] ss:$8 sps:$4 sm:$0xff]  }
  0x83   :  { %729 = vmatmul.mubr.bf16.gmra.mrb[44].mxu1 %v8469_v50  ;;  %397 = vmatmul.mubr.bf16.gmra.mrb[44].mxu0 %v8517_v51 }
  0x84   :  { %736 = vmatprep.mubr.bf16.mxu1 %v8470_v52  ;;  %404 = vmatprep.mubr.bf16.mxu0 %v8518_v53 }
  0x8b   :  { %737 = vmatmul.mubr.bf16.gmra.mrb[48].mxu1 %v8472_v54  ;;  %405 = vmatmul.mubr.bf16.gmra.mrb[48].mxu0 %v8520_v55  ;;  %v8533_v54 = vld [vmem:[%s11440_s24] ss:$8 sps:$4 sm:$0xff]  }
  0x8c   :  { %744 = vmatprep.mubr.bf16.mxu1 %v8476_v56  ;;  %412 = vmatprep.mubr.bf16.mxu0 %v8521_v57  ;;  %v8559_v56 = vld [vmem:[%s11440_s24 + $0x14] ss:$8 sps:$4 sm:$0xff]  }
  0x93   :  { %745 = vmatmul.mubr.bf16.gmra.mrb[52].mxu1 %v8478_v58  ;;  %413 = vmatmul.mubr.bf16.gmra.mrb[52].mxu0 %v8523_v59 }
  0x94   :  { %867 = vmatprep.mubr.bf16.mxu0 %v8868_v61  ;;  %1444 = vmatprep.mubr.bf16.mxu1 %v8526_v60 }
  0x9b   :  { %1445 = vmatmul.mubr.bf16.vlgmr.msra.gmra.mrb[56].mxu1 %v8524_v62  ;;  %v8557_v62 = vld [vmem:[%s11440_s24 + $0x10] ss:$8 sps:$4 sm:$0xff]  }
  0x9c   :  { %1452 = vmatprep.mubr.bf16.mxu1 %v8527_v63  ;;  %7476 = vmatpush3.bf16.msra.mxu1 %v8986_v7 }
  0x9d   :  { %7477 = vmatprep.subr.bf16.mxu1 %v8988_v8 }
  0xa0   :  { %7478 = vmatpush3.bf16.msra.mxu1 %v9005_v13 }
  0xa1   :  { %7479 = vmatprep.subr.bf16.mxu1 %v9009_v14 }
  0xa3   :  { %1453 = vmatmul.mubr.bf16.gmra.mrb[60].mxu1 %v8529_v1 }
  0xa4   :  { %1460 = vmatprep.mubr.bf16.mxu1 %v8530_v2  ;;  %7480 = vmatpush3.bf16.msra.mxu1 %v9025_v19 }
  0xa5   :  { %7481 = vmatprep.subr.bf16.mxu1 %v9029_v20 }
  0xa8   :  { %7482 = vmatpush3.bf16.msra.mxu1 %v9048_v26 }
  0xa9   :  { %7483 = vmatprep.subr.bf16.mxu1 %v9055_v28 }
  0xab   :  { %1461 = vmatmul.mubr.bf16.gmra.mrb[64].mxu1 %v8532_v4 }
  0xac   :  { %1468 = vmatprep.mubr.bf16.mxu1 %v8536_v5  ;;  %7484 = vmatpush3.bf16.msra.mxu1 %v9068_v32 }
  0xad   :  { %7485 = vmatprep.subr.bf16.mxu1 %v9075_v34 }
  0xb0   :  { %7486 = vmatpush3.bf16.msra.mxu1 %v9088_v38 }
  0xb1   :  { %7487 = vmatprep.subr.bf16.mxu1 %v9095_v40 }
  0xb3   :  { %1469 = vmatmul.mubr.bf16.gmra.mrb[68].mxu1 %v8538_v6  ;;  %v8575_v6 = vld [vmem:[%s11439_s23 + $0x2b4] ss:$8 sps:$4 sm:$0xff]  }
  0xb4   :  { %1476 = vmatprep.mubr.bf16.mxu1 %v8539_v9  ;;  %7488 = vmatpush3.bf16.msra.mxu1 %v9108_v44  ;;  %v8583_v9 = vld [vmem:[%s11440_s24 + $0x44] ss:$8 sps:$4 sm:$0xff]  }
  0xb5   :  { %7489 = vmatprep.subr.bf16.mxu1 %v9115_v46 }
  0xb8   :  { %7490 = vmatpush3.bf16.msra.mxu1 %v9122_v48 }
  0xb9   :  { %7575 = vmatprep.subr.bf16.mxu1 %v8975_v3  ;;  %v8548_v3 = vld [vmem:[%s11439_s23 + $0x234] ss:$8 sps:$4 sm:$0xff]  }
  0xbb   :  { %1477 = vmatmul.mubr.bf16.gmra.mrb[72].mxu1 %v8541_v10 }
  0xbc   :  { %1484 = vmatprep.mubr.bf16.mxu1 %v8542_v11 }
  0xc3   :  { %1485 = vmatmul.mubr.bf16.gmra.mrb[76].mxu1 %v8544_v12 }
  0xc4   :  { %1492 = vmatprep.mubr.bf16.mxu1 %v8545_v15 }
  0xcb   :  { %1493 = vmatmul.mubr.bf16.gmra.mrb[80].mxu1 %v8547_v16 }
  0xcc   :  { %1500 = vmatprep.mubr.bf16.mxu1 %v8548_v3 }
  0xd3   :  { %1501 = vmatmul.mubr.bf16.gmra.mrb[84].mxu1 %v8550_v17 }
  0xd4   :  { %1508 = vmatprep.mubr.bf16.mxu1 %v8551_v18 }
  0xdb   :  { %1509 = vmatmul.mubr.bf16.gmra.mrb[88].mxu1 %v8553_v21 }
  0xdc   :  { %1516 = vmatprep.mubr.bf16.mxu1 %v8554_v22 }
  0xe3   :  { %1517 = vmatmul.mubr.bf16.gmra.mrb[92].mxu1 %v8556_v23  ;;  %v8577_v23 = vld [vmem:[%s11439_s23 + $0x2b0] ss:$8 sps:$4 sm:$0xff]  }
  0xe4   :  { %1524 = vmatprep.mubr.bf16.mxu1 %v8560_v24 }
  0xeb   :  { %1525 = vmatmul.mubr.bf16.gmra.mrb[96].mxu1 %v8562_v25 }
  0xec   :  { %1532 = vmatprep.mubr.bf16.mxu1 %v8563_v27 }
  0xf3   :  { %1533 = vmatmul.mubr.bf16.gmra.mrb[100].mxu1 %v8565_v29 }
  0xf4   :  { %1540 = vmatprep.mubr.bf16.mxu1 %v8566_v30 }
  0xfb   :  { %1541 = vmatmul.mubr.bf16.gmra.mrb[104].mxu1 %v8568_v31 }
  0xfc   :  { %1548 = vmatprep.mubr.bf16.mxu1 %v8569_v33 }
  0xfe   :  { %v7291_v35 = vpop.f32.mrb[0].mxu1  ;;  %v7191_v36 = vpop.f32.mrb[0].mxu0 }
  0xff   :  { %v7292_v37 = vpop.f32.mrb[1].mxu1  ;;  %v7192_v39 = vpop.f32.mrb[1].mxu0 }
 0x100   :  { %v7293_v42 = vadd.f32 %v7292_v37, %v7291_v35  ;;  %v7294_v43 = vpop.f32.mrb[2].mxu1  ;;  %v9427_v45 = vadd.f32 %v7192_v39, %v7191_v36  ;;  %v7194_v47 = vpop.f32.mrb[2].mxu0 }
 0x101   :  { %v7295_v50 = vpop.f32.mrb[3].mxu1  ;;  %v7195_v51 = vpop.f32.mrb[3].mxu0 }
 0x102   :  { %v7296_v52 = vadd.f32 %v7295_v50, %v7294_v43  ;;  %v9432_v53 = vadd.f32 %v7195_v51, %v7194_v47 }
 0x103   :  { %1549 = vmatmul.mubr.bf16.gmra.mrb[108].mxu1 %v8571_v41 }
 0x104   :  { %v753_v55 = vpack.c.bf16 %v7296_v52, %v7293_v42  ;;  %v421_v57 = vpack.c.bf16 %v9432_v53, %v9427_v45  ;;  %2068 = vmatprep.mubr.bf16.mxu1 %v8574_v49  ;;  %v8623_v45 = vld [vmem:[%s11439_s23 + $0x394] ss:$8 sps:$4 sm:$0xff]   ;;  %v8631_v53 = vld [vmem:[%s11440_s24 + $0x64] ss:$8 sps:$4 sm:$0xff]  }
 0x106   :  { %v7297_v58 = vpop.f32.mrb[4].mxu1  ;;  %6529 = vmatmul.mubr.msk.bf16.vlgmr.msra.gmra.mrb[56].mxu0 %vm792_vm0, %v753_v55  ;;  %v7197_v59 = vpop.f32.mrb[4].mxu0 }
 0x107   :  { %v7298_v60 = vpop.f32.mrb[5].mxu1  ;;  %877 = vmatprep.mubr.bf16.mxu0 %v8868_v61  ;;  %1071 = vmatpush1.bf16.msra.mxu0 %v8533_v54  ;;  %v7198_v63 = vpop.f32.mrb[5].mxu0 }
 0x108   :  { %v7299_v1 = vadd.f32 %v7298_v60, %v7297_v58  ;;  %v7300_v2 = vpop.f32.mrb[6].mxu1  ;;  %1072 = vmatprep.subr.bf16.mxu0 %v8559_v56  ;;  %v9450_v4 = vadd.f32 %v7198_v63, %v7197_v59  ;;  %v7200_v5 = vpop.f32.mrb[6].mxu0 }
 0x109   :  { %v7301_v10 = vpop.f32.mrb[7].mxu1  ;;  %v7201_v11 = vpop.f32.mrb[7].mxu0 }
 0x10a   :  { %v7302_v12 = vadd.f32 %v7301_v10, %v7300_v2  ;;  %v9458_v15 = vadd.f32 %v7201_v11, %v7200_v5 }
 0x10b   :  { %1073 = vmatpush1.bf16.msra.mxu0 %v8557_v62  ;;  %2069 = vmatmul.mubr.bf16.vlgmr.msra.gmra.mrb[112].mxu1 %v8572_v0 }
 0x10c   :  { %v754_v16 = vpack.c.bf16 %v7302_v12, %v7299_v1  ;;  %v422_v3 = vpack.c.bf16 %v9458_v15, %v9450_v4  ;;  %2076 = vmatprep.mubr.bf16.mxu1 %v8575_v6  ;;  %1638 = vmatprep.subr.bf16.mxu0 %v8583_v9 }
 0x10d   :  { %7576 = vmatpush3.bf16.msra.mxu1 %v8986_v7  ;;  %v8578_v7 = vld [vmem:[%s11439_s23 + $0x2c4] ss:$8 sps:$4 sm:$0xff]  }
 0x10e   :  { %v7303_v17 = vpop.f32.mrb[8].mxu1  ;;  %6530 = vmatmul.mubr.msk.bf16.gmra.mrb[60].mxu0 %vm792_vm0, %v754_v16  ;;  %v7203_v18 = vpop.f32.mrb[8].mxu0  ;;  %7577 = vmatprep.subr.bf16.mxu1 %v8988_v8 }
 0x10f   :  { %v7304_v21 = vpop.f32.mrb[9].mxu1  ;;  %887 = vmatprep.mubr.bf16.mxu0 %v8868_v61  ;;  %v7204_v22 = vpop.f32.mrb[9].mxu0 }
 0x110   :  { %v7305_v24 = vadd.f32 %v7304_v21, %v7303_v17  ;;  %v7306_v25 = vpop.f32.mrb[10].mxu1  ;;  %v9469_v27 = vadd.f32 %v7204_v22, %v7203_v18  ;;  %v7206_v29 = vpop.f32.mrb[10].mxu0 }
 0x111   :  { %v7307_v30 = vpop.f32.mrb[11].mxu1  ;;  %v7207_v31 = vpop.f32.mrb[11].mxu0  ;;  %7578 = vmatpush3.bf16.msra.mxu1 %v9005_v13 }
 0x112   :  { %v7308_v8 = vadd.f32 %v7307_v30, %v7306_v25  ;;  %v9475_v33 = vadd.f32 %v7207_v31, %v7206_v29  ;;  %7579 = vmatprep.subr.bf16.mxu1 %v9009_v14  ;;  %v8580_v14 = vld [vmem:[%s11439_s23 + $0x2c0] ss:$8 sps:$4 sm:$0xff]  }
 0x113   :  { %2077 = vmatmul.mubr.bf16.gmra.mrb[116].mxu1 %v8577_v23 }
 0x114   :  { %v755_v35 = vpack.c.bf16 %v7308_v8, %v7305_v24  ;;  %v423_v36 = vpack.c.bf16 %v9475_v33, %v9469_v27  ;;  %2084 = vmatprep.mubr.bf16.mxu1 %v8578_v7 }
 0x115   :  { %7580 = vmatpush3.bf16.msra.mxu1 %v9025_v19  ;;  %v8584_v19 = vld [vmem:[%s11439_s23 + $0x2d4] ss:$8 sps:$4 sm:$0xff]  }
 0x116   :  { %v7309_v37 = vpop.f32.mrb[12].mxu1  ;;  %6531 = vmatmul.mubr.msk.bf16.gmra.mrb[64].mxu0 %vm792_vm0, %v755_v35  ;;  %v7209_v39 = vpop.f32.mrb[12].mxu0  ;;  %7581 = vmatprep.subr.bf16.mxu1 %v9029_v20 }
 0x117   :  { %v7310_v13 = vpop.f32.mrb[13].mxu1  ;;  %897 = vmatprep.mubr.bf16.mxu0 %v8868_v61  ;;  %v7210_v41 = vpop.f32.mrb[13].mxu0 }
 0x118   :  { %v7311_v42 = vadd.f32 %v7310_v13, %v7309_v37  ;;  %v7312_v43 = vpop.f32.mrb[14].mxu1  ;;  %v9487_v47 = vadd.f32 %v7210_v41, %v7209_v39  ;;  %v7212_v49 = vpop.f32.mrb[14].mxu0  ;;  %v8593_v41 = vld [vmem:[%s11439_s23 + $0x304] ss:$8 sps:$4 sm:$0xff]  }
 0x119   :  { %v7313_v50 = vpop.f32.mrb[15].mxu1  ;;  %v7213_v51 = vpop.f32.mrb[15].mxu0  ;;  %7582 = vmatpush3.bf16.msra.mxu1 %v9048_v26 }
 0x11a   :  { %v7314_v20 = vadd.f32 %v7313_v50, %v7312_v43  ;;  %v9493_v52 = vadd.f32 %v7213_v51, %v7212_v49  ;;  %7583 = vmatprep.subr.bf16.mxu1 %v9055_v28  ;;  %v8586_v28 = vld [vmem:[%s11439_s23 + $0x2d0] ss:$8 sps:$4 sm:$0xff]  }
 0x11b   :  { %2085 = vmatmul.mubr.bf16.gmra.mrb[120].mxu1 %v8580_v14 }
 0x11c   :  { %v756_v54 = vpack.c.bf16 %v7314_v20, %v7311_v42  ;;  %v424_v55 = vpack.c.bf16 %v9493_v52, %v9487_v47  ;;  %2092 = vmatprep.mubr.bf16.mxu1 %v8584_v19 }
 0x11d   :  { %7584 = vmatpush3.bf16.msra.mxu1 %v9068_v32  ;;  %v8587_v32 = vld [vmem:[%s11439_s23 + $0x2e4] ss:$8 sps:$4 sm:$0xff]  }
 0x11e   :  { %v7315_v56 = vpop.f32.mrb[16].mxu1  ;;  %6532 = vmatmul.mubr.msk.bf16.gmra.mrb[68].mxu0 %vm792_vm0, %v756_v54  ;;  %v7215_v58 = vpop.f32.mrb[16].mxu0  ;;  %7585 = vmatprep.subr.bf16.mxu1 %v9075_v34 }
 0x11f   :  { %v7316_v26 = vpop.f32.mrb[17].mxu1  ;;  %907 = vmatprep.mubr.bf16.mxu0 %v8868_v61  ;;  %v7216_v59 = vpop.f32.mrb[17].mxu0 }
 0x120   :  { %v7317_v60 = vadd.f32 %v7316_v26, %v7315_v56  ;;  %v7318_v62 = vpop.f32.mrb[18].mxu1  ;;  %v9505_v63 = vadd.f32 %v7216_v59, %v7215_v58  ;;  %v7218_v0 = vpop.f32.mrb[18].mxu0  ;;  %v8595_v58 = vld [vmem:[%s11439_s23 + $0x300] ss:$8 sps:$4 sm:$0xff]  }
 0x121   :  { %v7319_v1 = vpop.f32.mrb[19].mxu1  ;;  %v7219_v2 = vpop.f32.mrb[19].mxu0  ;;  %7586 = vmatpush3.bf16.msra.mxu1 %v9088_v38 }
 0x122   :  { %v7320_v34 = vadd.f32 %v7319_v1, %v7318_v62  ;;  %v9511_v5 = vadd.f32 %v7219_v2, %v7218_v0  ;;  %7587 = vmatprep.subr.bf16.mxu1 %v9095_v40  ;;  %v8589_v40 = vld [vmem:[%s11439_s23 + $0x2e0] ss:$8 sps:$4 sm:$0xff]   ;;  %v8596_v62 = vld [vmem:[%s11439_s23 + $0x314] ss:$8 sps:$4 sm:$0xff]  }
 0x123   :  { %2093 = vmatmul.mubr.bf16.gmra.mrb[124].mxu1 %v8586_v28 }
 0x124   :  { %v757_v6 = vpack.c.bf16 %v7320_v34, %v7317_v60  ;;  %v425_v9 = vpack.c.bf16 %v9511_v5, %v9505_v63  ;;  %2100 = vmatprep.mubr.bf16.mxu1 %v8587_v32 }
 0x125   :  { %7588 = vmatpush3.bf16.msra.mxu1 %v9108_v44  ;;  %v8590_v44 = vld [vmem:[%s11439_s23 + $0x2f4] ss:$8 sps:$4 sm:$0xff]  }
 0x126   :  { %v7321_v10 = vpop.f32.mrb[20].mxu1  ;;  %6533 = vmatmul.mubr.msk.bf16.gmra.mrb[72].mxu0 %vm792_vm0, %v757_v6  ;;  %v7221_v11 = vpop.f32.mrb[20].mxu0  ;;  %7589 = vmatprep.subr.bf16.mxu1 %v9115_v46 }
 0x127   :  { %v7322_v38 = vpop.f32.mrb[21].mxu1  ;;  %917 = vmatprep.mubr.bf16.mxu0 %v8868_v61  ;;  %v7222_v12 = vpop.f32.mrb[21].mxu0 }
 0x128   :  { %v7323_v16 = vadd.f32 %v7322_v38, %v7321_v10  ;;  %v7324_v17 = vpop.f32.mrb[22].mxu1  ;;  %v9523_v18 = vadd.f32 %v7222_v12, %v7221_v11  ;;  %v7224_v21 = vpop.f32.mrb[22].mxu0 }
 0x129   :  { %v7325_v22 = vpop.f32.mrb[23].mxu1  ;;  %v7225_v23 = vpop.f32.mrb[23].mxu0  ;;  %7590 = vmatpush3.bf16.msra.mxu1 %v9122_v48  ;;  %v8592_v48 = vld [vmem:[%s11439_s23 + $0x2f0] ss:$8 sps:$4 sm:$0xff]  }
 0x12a   :  { %v7326_v46 = vadd.f32 %v7325_v22, %v7324_v17  ;;  %v9529_v24 = vadd.f32 %v7225_v23, %v7224_v21  ;;  %v8599_v22 = vld [vmem:[%s11439_s23 + $0x324] ss:$8 sps:$4 sm:$0xff]  }
 0x12b   :  { %2101 = vmatmul.mubr.bf16.gmra.mrb[128].mxu1 %v8589_v40  ;;  %v8598_v40 = vld [vmem:[%s11439_s23 + $0x310] ss:$8 sps:$4 sm:$0xff]  }
 0x12c   :  { %v758_v25 = vpack.c.bf16 %v7326_v46, %v7323_v16  ;;  %v426_v29 = vpack.c.bf16 %v9529_v24, %v9523_v18  ;;  %2108 = vmatprep.mubr.bf16.mxu1 %v8590_v44 }
 0x12e   :  { %v7327_v7 = vpop.f32.mrb[24].mxu1  ;;  %6534 = vmatmul.mubr.msk.bf16.gmra.mrb[76].mxu0 %vm792_vm0, %v758_v25  ;;  %v7227_v30 = vpop.f32.mrb[24].mxu0 }
 0x12f   :  { %v7328_v31 = vpop.f32.mrb[25].mxu1  ;;  %927 = vmatprep.mubr.bf16.mxu0 %v8868_v61  ;;  %v7228_v8 = vpop.f32.mrb[25].mxu0 }
 0x130   :  { %v7329_v35 = vadd.f32 %v7328_v31, %v7327_v7  ;;  %v7330_v37 = vpop.f32.mrb[26].mxu1  ;;  %v9538_v39 = vadd.f32 %v7228_v8, %v7227_v30  ;;  %v7230_v13 = vpop.f32.mrb[26].mxu0 }
 0x131   :  { %v7331_v14 = vpop.f32.mrb[27].mxu1  ;;  %v7231_v42 = vpop.f32.mrb[27].mxu0 }
 0x132   :  { %v7332_v43 = vadd.f32 %v7331_v14, %v7330_v37  ;;  %v9543_v49 = vadd.f32 %v7231_v42, %v7230_v13  ;;  %v8601_v13 = vld [vmem:[%s11439_s23 + $0x320] ss:$8 sps:$4 sm:$0xff]  }
 0x133   :  { %2109 = vmatmul.mubr.bf16.gmra.mrb[132].mxu1 %v8592_v48 }
 0x134   :  { %v759_v19 = vpack.c.bf16 %v7332_v43, %v7329_v35  ;;  %v427_v50 = vpack.c.bf16 %v9543_v49, %v9538_v39  ;;  %2116 = vmatprep.mubr.bf16.mxu1 %v8593_v41 }
 0x136   :  { %v7333_v51 = vpop.f32.mrb[28].mxu1  ;;  %6535 = vmatmul.mubr.msk.bf16.gmra.mrb[80].mxu0 %vm792_vm0, %v759_v19  ;;  %v7233_v20 = vpop.f32.mrb[28].mxu0  ;;  %v8602_v19 = vld [vmem:[%s11439_s23 + $0x334] ss:$8 sps:$4 sm:$0xff]  }
 0x137   :  { %v7334_v54 = vpop.f32.mrb[29].mxu1  ;;  %937 = vmatprep.mubr.bf16.mxu0 %v8868_v61  ;;  %v7234_v56 = vpop.f32.mrb[29].mxu0 }
 0x138   :  { %v7335_v26 = vadd.f32 %v7334_v54, %v7333_v51  ;;  %v7336_v59 = vpop.f32.mrb[30].mxu1  ;;  %v9552_v28 = vadd.f32 %v7234_v56, %v7233_v20  ;;  %v7236_v60 = vpop.f32.mrb[30].mxu0 }
 0x139   :  { %v7337_v0 = vpop.f32.mrb[31].mxu1  ;;  %v7237_v32 = vpop.f32.mrb[31].mxu0 }
 0x13a   :  { %v7338_v1 = vadd.f32 %v7337_v0, %v7336_v59  ;;  %v9557_v2 = vadd.f32 %v7237_v32, %v7236_v60  ;;  %v8604_v32 = vld [vmem:[%s11439_s23 + $0x330] ss:$8 sps:$4 sm:$0xff]  }
 0x13b   :  { %2117 = vmatmul.mubr.bf16.gmra.mrb[136].mxu1 %v8595_v58 }
 0x13c   :  { %v760_v34 = vpack.c.bf16 %v7338_v1, %v7335_v26  ;;  %v428_v6 = vpack.c.bf16 %v9557_v2, %v9552_v28  ;;  %2124 = vmatprep.mubr.bf16.mxu1 %v8596_v62 }
 0x13e   :  { %v7339_v10 = vpop.f32.mrb[32].mxu1  ;;  %6536 = vmatmul.mubr.msk.bf16.gmra.mrb[84].mxu0 %vm792_vm0, %v760_v34  ;;  %v7239_v11 = vpop.f32.mrb[32].mxu0 }
 0x13f   :  { %v7340_v38 = vpop.f32.mrb[33].mxu1  ;;  %947 = vmatprep.mubr.bf16.mxu0 %v8868_v61  ;;  %v7240_v12 = vpop.f32.mrb[33].mxu0 }
 0x140   :  { %v7341_v16 = vadd.f32 %v7340_v38, %v7339_v10  ;;  %v7342_v17 = vpop.f32.mrb[34].mxu1  ;;  %v9566_v21 = vadd.f32 %v7240_v12, %v7239_v11  ;;  %v7242_v44 = vpop.f32.mrb[34].mxu0  ;;  %v8608_v38 = vld [vmem:[%s11439_s23 + $0x344] ss:$8 sps:$4 sm:$0xff]  }
 0x141   :  { %v7343_v23 = vpop.f32.mrb[35].mxu1  ;;  %v7243_v46 = vpop.f32.mrb[35].mxu0 }
 0x142   :  { %v7344_v25 = vadd.f32 %v7343_v23, %v7342_v17  ;;  %v9571_v7 = vadd.f32 %v7243_v46, %v7242_v44 }
 0x143   :  { %2125 = vmatmul.mubr.bf16.gmra.mrb[140].mxu1 %v8598_v40 }
 0x144   :  { %v761_v30 = vpack.c.bf16 %v7344_v25, %v7341_v16  ;;  %v429_v31 = vpack.c.bf16 %v9571_v7, %v9566_v21  ;;  %2132 = vmatprep.mubr.bf16.mxu1 %v8599_v22 }
 0x146   :  { %v7345_v8 = vpop.f32.mrb[36].mxu1  ;;  %6537 = vmatmul.mubr.msk.bf16.gmra.mrb[88].mxu0 %vm792_vm0, %v761_v30  ;;  %v7245_v48 = vpop.f32.mrb[36].mxu0 }
 0x147   :  { %v7346_v35 = vpop.f32.mrb[37].mxu1  ;;  %957 = vmatprep.mubr.bf16.mxu0 %v8868_v61  ;;  %v7246_v37 = vpop.f32.mrb[37].mxu0 }
 0x148   :  { %v7347_v41 = vadd.f32 %v7346_v35, %v7345_v8  ;;  %v7348_v14 = vpop.f32.mrb[38].mxu1  ;;  %v9580_v42 = vadd.f32 %v7246_v37, %v7245_v48  ;;  %v7248_v43 = vpop.f32.mrb[38].mxu0  ;;  %v8610_v8 = vld [vmem:[%s11439_s23 + $0x340] ss:$8 sps:$4 sm:$0xff]  }
 0x149   :  { %v7349_v51 = vpop.f32.mrb[39].mxu1  ;;  %v7249_v20 = vpop.f32.mrb[39].mxu0 }
 0x14a   :  { %v7350_v54 = vadd.f32 %v7349_v51, %v7348_v14  ;;  %v9585_v56 = vadd.f32 %v7249_v20, %v7248_v43 }
 0x14b   :  { %2133 = vmatmul.mubr.bf16.gmra.mrb[144].mxu1 %v8601_v13 }
 0x14c   :  { %v762_v58 = vpack.c.bf16 %v7350_v54, %v7347_v41  ;;  %v430_v26 = vpack.c.bf16 %v9585_v56, %v9580_v42  ;;  %2140 = vmatprep.mubr.bf16.mxu1 %v8602_v19  ;;  %v8611_v41 = vld [vmem:[%s11439_s23 + $0x354] ss:$8 sps:$4 sm:$0xff]  }
 0x14e   :  { %v7351_v59 = vpop.f32.mrb[40].mxu1  ;;  %6538 = vmatmul.mubr.msk.bf16.gmra.mrb[92].mxu0 %vm792_vm0, %v762_v58  ;;  %v7251_v60 = vpop.f32.mrb[40].mxu0 }
 0x14f   :  { %v7352_v62 = vpop.f32.mrb[41].mxu1  ;;  %967 = vmatprep.mubr.bf16.mxu0 %v8868_v61  ;;  %v7252_v0 = vpop.f32.mrb[41].mxu0 }
 0x150   :  { %v7353_v1 = vadd.f32 %v7352_v62, %v7351_v59  ;;  %v7354_v34 = vpop.f32.mrb[42].mxu1  ;;  %v9594_v10 = vadd.f32 %v7252_v0, %v7251_v60  ;;  %v7254_v11 = vpop.f32.mrb[42].mxu0  ;;  %v8613_v0 = vld [vmem:[%s11439_s23 + $0x350] ss:$8 sps:$4 sm:$0xff]  }
 0x151   :  { %v7355_v12 = vpop.f32.mrb[43].mxu1  ;;  %v7255_v40 = vpop.f32.mrb[43].mxu0 }
 0x152   :  { %v7356_v16 = vadd.f32 %v7355_v12, %v7354_v34  ;;  %v9599_v17 = vadd.f32 %v7255_v40, %v7254_v11 }
 0x153   :  { %2141 = vmatmul.mubr.bf16.gmra.mrb[148].mxu1 %v8604_v32 }
 0x154   :  { %v763_v44 = vpack.c.bf16 %v7356_v16, %v7353_v1  ;;  %v431_v22 = vpack.c.bf16 %v9599_v17, %v9594_v10  ;;  %2148 = vmatprep.mubr.bf16.mxu1 %v8608_v38  ;;  %v8614_v38 = vld [vmem:[%s11439_s23 + $0x364] ss:$8 sps:$4 sm:$0xff]  }
 0x156   :  { %v7357_v23 = vpop.f32.mrb[44].mxu1  ;;  %6539 = vmatmul.mubr.msk.bf16.gmra.mrb[96].mxu0 %vm792_vm0, %v763_v44  ;;  %v7257_v46 = vpop.f32.mrb[44].mxu0 }
 0x157   :  { %v7358_v25 = vpop.f32.mrb[45].mxu1  ;;  %977 = vmatprep.mubr.bf16.mxu0 %v8868_v61  ;;  %v7258_v30 = vpop.f32.mrb[45].mxu0 }
 0x158   :  { %v7359_v48 = vadd.f32 %v7358_v25, %v7357_v23  ;;  %v7360_v35 = vpop.f32.mrb[46].mxu1  ;;  %v9608_v37 = vadd.f32 %v7258_v30, %v7257_v46  ;;  %v7260_v13 = vpop.f32.mrb[46].mxu0 }
 0x159   :  { %v7361_v14 = vpop.f32.mrb[47].mxu1  ;;  %v7261_v43 = vpop.f32.mrb[47].mxu0 }
 0x15a   :  { %v7362_v19 = vadd.f32 %v7361_v14, %v7360_v35  ;;  %v9613_v51 = vadd.f32 %v7261_v43, %v7260_v13  ;;  %v8616_v35 = vld [vmem:[%s11439_s23 + $0x360] ss:$8 sps:$4 sm:$0xff]  }
 0x15b   :  { %2149 = vmatmul.mubr.bf16.gmra.mrb[152].mxu1 %v8610_v8 }
 0x15c   :  { %v764_v20 = vpack.c.bf16 %v7362_v19, %v7359_v48  ;;  %v432_v54 = vpack.c.bf16 %v9613_v51, %v9608_v37  ;;  %2156 = vmatprep.mubr.bf16.mxu1 %v8611_v41  ;;  %v8617_v19 = vld [vmem:[%s11439_s23 + $0x374] ss:$8 sps:$4 sm:$0xff]  }
 0x15e   :  { %v7363_v58 = vpop.f32.mrb[48].mxu1  ;;  %6540 = vmatmul.mubr.msk.bf16.gmra.mrb[100].mxu0 %vm792_vm0, %v764_v20  ;;  %v7263_v59 = vpop.f32.mrb[48].mxu0 }
 0x15f   :  { %v7364_v60 = vpop.f32.mrb[49].mxu1  ;;  %987 = vmatprep.mubr.bf16.mxu0 %v8868_v61  ;;  %v7264_v62 = vpop.f32.mrb[49].mxu0 }
 0x160   :  { %v7365_v32 = vadd.f32 %v7364_v60, %v7363_v58  ;;  %v7366_v1 = vpop.f32.mrb[50].mxu1  ;;  %v9622_v34 = vadd.f32 %v7264_v62, %v7263_v59  ;;  %v7266_v11 = vpop.f32.mrb[50].mxu0 }
 0x161   :  { %v7367_v12 = vpop.f32.mrb[51].mxu1  ;;  %v7267_v40 = vpop.f32.mrb[51].mxu0 }
 0x162   :  { %v7368_v16 = vadd.f32 %v7367_v12, %v7366_v1  ;;  %v9627_v44 = vadd.f32 %v7267_v40, %v7266_v11  ;;  %v8619_v11 = vld [vmem:[%s11439_s23 + $0x370] ss:$8 sps:$4 sm:$0xff]   ;;  %v8622_v40 = vld [vmem:[%s11439_s23 + $0x384] ss:$8 sps:$4 sm:$0xff]  }
 0x163   :  { %2157 = vmatmul.mubr.bf16.gmra.mrb[156].mxu1 %v8613_v0 }
 0x164   :  { %v765_v23 = vpack.c.bf16 %v7368_v16, %v7365_v32  ;;  %v433_v46 = vpack.c.bf16 %v9627_v44, %v9622_v34  ;;  %2164 = vmatprep.mubr.bf16.mxu1 %v8614_v38 }
 0x166   :  { %v7369_v25 = vpop.f32.mrb[52].mxu1  ;;  %6541 = vmatmul.mubr.msk.bf16.gmra.mrb[104].mxu0 %vm792_vm0, %v765_v23  ;;  %v7269_v30 = vpop.f32.mrb[52].mxu0 }
 0x167   :  { %v7370_v8 = vpop.f32.mrb[53].mxu1  ;;  %997 = vmatprep.mubr.bf16.mxu0 %v8868_v61  ;;  %v7270_v48 = vpop.f32.mrb[53].mxu0 }
 0x168   :  { %v7371_v13 = vadd.f32 %v7370_v8, %v7369_v25  ;;  %v7372_v41 = vpop.f32.mrb[54].mxu1  ;;  %v9636_v14 = vadd.f32 %v7270_v48, %v7269_v30  ;;  %v7272_v43 = vpop.f32.mrb[54].mxu0  ;;  %v8581_v25 = vld [vmem:[%s11440_s24 + $0x40] ss:$8 sps:$4 sm:$0xff]   ;;  %v8607_v30 = vld [vmem:[%s11440_s24 + $0x54] ss:$8 sps:$4 sm:$0xff]  }
 0x169   :  { %v7373_v20 = vpop.f32.mrb[55].mxu1  ;;  %v7273_v58 = vpop.f32.mrb[55].mxu0 }
 0x16a   :  { %v7374_v59 = vadd.f32 %v7373_v20, %v7372_v41  ;;  %v9641_v60 = vadd.f32 %v7273_v58, %v7272_v43  ;;  %v8620_v41 = vld [vmem:[%s11439_s23 + $0x380] ss:$8 sps:$4 sm:$0xff]  }
 0x16b   :  { %2165 = vmatmul.mubr.bf16.gmra.mrb[160].mxu1 %v8616_v35  ;;  %v8605_v35 = vld [vmem:[%s11440_s24 + $0x50] ss:$8 sps:$4 sm:$0xff]  }
 0x16c   :  { %v766_v62 = vpack.c.bf16 %v7374_v59, %v7371_v13  ;;  %v434_v0 = vpack.c.bf16 %v9641_v60, %v9636_v14  ;;  %2172 = vmatprep.mubr.bf16.mxu1 %v8617_v19  ;;  %v8629_v14 = vld [vmem:[%s11440_s24 + $0x60] ss:$8 sps:$4 sm:$0xff]   ;;  %v8655_v60 = vld [vmem:[%s11440_s24 + $0x74] ss:$8 sps:$4 sm:$0xff]  }
 0x16e   :  { %6542 = vmatmul.mubr.msk.bf16.gmra.mrb[108].mxu0 %vm792_vm0, %v766_v62  ;;  %v7391_v32 = vpop.f32.mrb[56].mxu1 }
 0x16f   :  { %1102 = vmatprep.mubr.bf16.mxu0 %v8868_v61  ;;  %v7392_v1 = vpop.f32.mrb[57].mxu1 }
 0x170   :  { %v9650_v38 = vadd.f32 %v7392_v1, %v7391_v32  ;;  %v7394_v12 = vpop.f32.mrb[58].mxu1  ;;  %v8625_v32 = vld [vmem:[%s11439_s23 + $0x390] ss:$8 sps:$4 sm:$0xff]  }
 0x171   :  { %v7395_v16 = vpop.f32.mrb[59].mxu1 }
 0x172   :  { %v9655_v23 = vadd.f32 %v7395_v16, %v7394_v12  ;;  %v8626_v12 = vld [vmem:[%s11439_s23 + $0x3a4] ss:$8 sps:$4 sm:$0xff]  }
 0x173   :  { %2173 = vmatmul.mubr.bf16.gmra.mrb[164].mxu1 %v8619_v11 }
 0x174   :  { %v1557_v8 = vpack.c.bf16 %v9655_v23, %v9650_v38  ;;  %2692 = vmatprep.mubr.bf16.mxu1 %v8622_v40 }
 0x176   :  { %6547 = vmatmul.mubr.msk.bf16.vlgmr.msra.gmra.mrb[56].mxu0 %vm792_vm0, %v421_v57  ;;  %v7397_v48 = vpop.f32.mrb[60].mxu1 }
 0x177   :  { %1112 = vmatprep.mubr.bf16.mxu0 %v8868_v61  ;;  %1639 = vmatpush1.bf16.msra.mxu0 %v8581_v25  ;;  %v7398_v13 = vpop.f32.mrb[61].mxu1  ;;  %v8628_v25 = vld [vmem:[%s11439_s23 + $0x3a0] ss:$8 sps:$4 sm:$0xff]  }
 0x178   :  { %1640 = vmatprep.subr.bf16.mxu0 %v8607_v30  ;;  %v9676_v43 = vadd.f32 %v7398_v13, %v7397_v48  ;;  %v7400_v19 = vpop.f32.mrb[62].mxu1 }
 0x179   :  { %v7401_v57 = vpop.f32.mrb[63].mxu1 }
 0x17a   :  { %v9684_v20 = vadd.f32 %v7401_v57, %v7400_v19  ;;  %v8634_v19 = vld [vmem:[%s11439_s23 + $0x3b0] ss:$8 sps:$4 sm:$0xff]   ;;  %v8635_v57 = vld [vmem:[%s11439_s23 + $0x3c4] ss:$8 sps:$4 sm:$0xff]  }
 0x17b   :  { %1641 = vmatpush1.bf16.msra.mxu0 %v8605_v35  ;;  %2693 = vmatmul.mubr.bf16.vlgmr.msra.gmra.mrb[168].mxu1 %v8620_v41  ;;  %v8632_v35 = vld [vmem:[%s11439_s23 + $0x3b4] ss:$8 sps:$4 sm:$0xff]  }
 0x17c   :  { %v1558_v58 = vpack.c.bf16 %v9684_v20, %v9676_v43  ;;  %2700 = vmatprep.mubr.bf16.mxu1 %v8623_v45  ;;  %2262 = vmatprep.subr.bf16.mxu0 %v8631_v53 }
 0x17e   :  { %6548 = vmatmul.mubr.msk.bf16.gmra.mrb[60].mxu0 %vm792_vm0, %v422_v3  ;;  %v7403_v59 = vpop.f32.mrb[64].mxu1 }
 0x17f   :  { %1122 = vmatprep.mubr.bf16.mxu0 %v8868_v61  ;;  %v7404_v62 = vpop.f32.mrb[65].mxu1 }
 0x180   :  { %v7406_v1 = vpop.f32.mrb[66].mxu1  ;;  %v9696_v11 = vadd.f32 %v7404_v62, %v7403_v59 }
 0x181   :  { %v7407_v40 = vpop.f32.mrb[67].mxu1 }
 0x182   :  { %v9701_v16 = vadd.f32 %v7407_v40, %v7406_v1  ;;  %v8638_v40 = vld [vmem:[%s11439_s23 + $0x3d4] ss:$8 sps:$4 sm:$0xff]  }
 0x183   :  { %2701 = vmatmul.mubr.bf16.gmra.mrb[172].mxu1 %v8625_v32  ;;  %v8637_v32 = vld [vmem:[%s11439_s23 + $0x3c0] ss:$8 sps:$4 sm:$0xff]  }
 0x184   :  { %v1559_v4 = vpack.c.bf16 %v9701_v16, %v9696_v11  ;;  %2708 = vmatprep.mubr.bf16.mxu1 %v8626_v12 }
 0x186   :  { %6549 = vmatmul.mubr.msk.bf16.gmra.mrb[64].mxu0 %vm792_vm0, %v423_v36  ;;  %v7409_v15 = vpop.f32.mrb[68].mxu1 }
 0x187   :  { %1132 = vmatprep.mubr.bf16.mxu0 %v8868_v61  ;;  %v7410_v3 = vpop.f32.mrb[69].mxu1 }
 0x188   :  { %v7412_v30 = vpop.f32.mrb[70].mxu1  ;;  %v9713_v48 = vadd.f32 %v7410_v3, %v7409_v15 }
 0x189   :  { %v7413_v13 = vpop.f32.mrb[71].mxu1 }
 0x18a   :  { %v9718_v41 = vadd.f32 %v7413_v13, %v7412_v30  ;;  %v8641_v13 = vld [vmem:[%s11439_s23 + $0x3e4] ss:$8 sps:$4 sm:$0xff]  }
 0x18b   :  { %2709 = vmatmul.mubr.bf16.gmra.mrb[176].mxu1 %v8628_v25  ;;  %v8640_v25 = vld [vmem:[%s11439_s23 + $0x3d0] ss:$8 sps:$4 sm:$0xff]  }
 0x18c   :  { %v1560_v27 = vpack.c.bf16 %v9718_v41, %v9713_v48  ;;  %2716 = vmatprep.mubr.bf16.mxu1 %v8632_v35 }
 0x18e   :  { %6550 = vmatmul.mubr.msk.bf16.gmra.mrb[68].mxu0 %vm792_vm0, %v424_v55  ;;  %v7415_v33 = vpop.f32.mrb[72].mxu1 }
 0x18f   :  { %1142 = vmatprep.mubr.bf16.mxu0 %v8868_v61  ;;  %v7416_v36 = vpop.f32.mrb[73].mxu1 }
 0x190   :  { %v7418_v45 = vpop.f32.mrb[74].mxu1  ;;  %v9730_v53 = vadd.f32 %v7416_v36, %v7415_v33 }
 0x191   :  { %v7419_v59 = vpop.f32.mrb[75].mxu1 }
 0x192   :  { %v9735_v62 = vadd.f32 %v7419_v59, %v7418_v45  ;;  %v8644_v59 = vld [vmem:[%s11439_s23 + $0x3f4] ss:$8 sps:$4 sm:$0xff]  }
 0x193   :  { %2717 = vmatmul.mubr.bf16.gmra.mrb[180].mxu1 %v8634_v19  ;;  %v8643_v19 = vld [vmem:[%s11439_s23 + $0x3e0] ss:$8 sps:$4 sm:$0xff]  }
 0x194   :  { %v1561_v47 = vpack.c.bf16 %v9735_v62, %v9730_v53  ;;  %2724 = vmatprep.mubr.bf16.mxu1 %v8635_v57 }
 0x196   :  { %6551 = vmatmul.mubr.msk.bf16.gmra.mrb[72].mxu0 %vm792_vm0, %v425_v9  ;;  %v7421_v52 = vpop.f32.mrb[76].mxu1 }
 0x197   :  { %1152 = vmatprep.mubr.bf16.mxu0 %v8868_v61  ;;  %v7422_v55 = vpop.f32.mrb[77].mxu1 }
 0x198   :  { %v7424_v1 = vpop.f32.mrb[78].mxu1  ;;  %v9747_v12 = vadd.f32 %v7422_v55, %v7421_v52 }
 0x199   :  { %v7425_v15 = vpop.f32.mrb[79].mxu1 }
 0x19a   :  { %v9752_v3 = vadd.f32 %v7425_v15, %v7424_v1  ;;  %v8647_v15 = vld [vmem:[%s11439_s23 + $0x404] ss:$8 sps:$4 sm:$0xff]  }
 0x19b   :  { %2725 = vmatmul.mubr.bf16.gmra.mrb[184].mxu1 %v8637_v32  ;;  %v8646_v32 = vld [vmem:[%s11439_s23 + $0x3f0] ss:$8 sps:$4 sm:$0xff]  }
 0x19c   :  { %v1562_v63 = vpack.c.bf16 %v9752_v3, %v9747_v12  ;;  %2732 = vmatprep.mubr.bf16.mxu1 %v8638_v40 }
 0x19e   :  { %6552 = vmatmul.mubr.msk.bf16.gmra.mrb[76].mxu0 %vm792_vm0, %v426_v29  ;;  %v7427_v5 = vpop.f32.mrb[80].mxu1 }
 0x19f   :  { %1162 = vmatprep.mubr.bf16.mxu0 %v8868_v61  ;;  %v7428_v9 = vpop.f32.mrb[81].mxu1 }
 0x1a0   :  { %v7430_v30 = vpop.f32.mrb[82].mxu1  ;;  %v9764_v35 = vadd.f32 %v7428_v9, %v7427_v5 }
 0x1a1   :  { %v7431_v33 = vpop.f32.mrb[83].mxu1 }
 0x1a2   :  { %v9769_v36 = vadd.f32 %v7431_v33, %v7430_v30  ;;  %v8650_v33 = vld [vmem:[%s11439_s23 + $0x414] ss:$8 sps:$4 sm:$0xff]  }
 0x1a3   :  { %2733 = vmatmul.mubr.bf16.gmra.mrb[188].mxu1 %v8640_v25  ;;  %v8649_v25 = vld [vmem:[%s11439_s23 + $0x400] ss:$8 sps:$4 sm:$0xff]  }
 0x1a4   :  { %v1563_v18 = vpack.c.bf16 %v9769_v36, %v9764_v35  ;;  %2740 = vmatprep.mubr.bf16.mxu1 %v8641_v13 }
 0x1a6   :  { %6553 = vmatmul.mubr.msk.bf16.gmra.mrb[80].mxu0 %vm792_vm0, %v427_v50  ;;  %v7433_v24 = vpop.f32.mrb[84].mxu1 }
 0x1a7   :  { %1172 = vmatprep.mubr.bf16.mxu0 %v8868_v61  ;;  %v7434_v29 = vpop.f32.mrb[85].mxu1 }
 0x1a8   :  { %v9781_v45 = vadd.f32 %v7434_v29, %v7433_v24  ;;  %v7436_v57 = vpop.f32.mrb[86].mxu1 }
 0x1a9   :  { %v7437_v52 = vpop.f32.mrb[87].mxu1 }
 0x1aa   :  { %v9786_v55 = vadd.f32 %v7437_v52, %v7436_v57  ;;  %v8656_v52 = vld [vmem:[%s11439_s23 + $0x424] ss:$8 sps:$4 sm:$0xff]  }
 0x1ab   :  { %2741 = vmatmul.mubr.bf16.gmra.mrb[192].mxu1 %v8643_v19  ;;  %v8652_v19 = vld [vmem:[%s11439_s23 + $0x410] ss:$8 sps:$4 sm:$0xff]  }
 0x1ac   :  { %v1564_v39 = vpack.c.bf16 %v9786_v55, %v9781_v45  ;;  %2748 = vmatprep.mubr.bf16.mxu1 %v8644_v59 }
 0x1ae   :  { %6554 = vmatmul.mubr.msk.bf16.gmra.mrb[84].mxu0 %vm792_vm0, %v428_v6  ;;  %v7439_v49 = vpop.f32.mrb[88].mxu1 }
 0x1af   :  { %1182 = vmatprep.mubr.bf16.mxu0 %v8868_v61  ;;  %v7440_v50 = vpop.f32.mrb[89].mxu1 }
 0x1b0   :  { %v9798_v1 = vadd.f32 %v7440_v50, %v7439_v49  ;;  %v7442_v40 = vpop.f32.mrb[90].mxu1 }
 0x1b1   :  { %v7443_v5 = vpop.f32.mrb[91].mxu1 }
 0x1b2   :  { %v9803_v9 = vadd.f32 %v7443_v5, %v7442_v40  ;;  %v8659_v5 = vld [vmem:[%s11439_s23 + $0x434] ss:$8 sps:$4 sm:$0xff]  }
 0x1b3   :  { %2749 = vmatmul.mubr.bf16.gmra.mrb[196].mxu1 %v8646_v32  ;;  %v8658_v32 = vld [vmem:[%s11439_s23 + $0x420] ss:$8 sps:$4 sm:$0xff]  }
 0x1b4   :  { %v1565_v28 = vpack.c.bf16 %v9803_v9, %v9798_v1  ;;  %2756 = vmatprep.mubr.bf16.mxu1 %v8647_v15 }
 0x1b6   :  { %6555 = vmatmul.mubr.msk.bf16.gmra.mrb[88].mxu0 %vm792_vm0, %v429_v31  ;;  %v7445_v2 = vpop.f32.mrb[92].mxu1 }
 0x1b7   :  { %1192 = vmatprep.mubr.bf16.mxu0 %v8868_v61  ;;  %v7446_v6 = vpop.f32.mrb[93].mxu1 }
 0x1b8   :  { %v9815_v30 = vadd.f32 %v7446_v6, %v7445_v2  ;;  %v7448_v13 = vpop.f32.mrb[94].mxu1 }
 0x1b9   :  { %v7449_v24 = vpop.f32.mrb[95].mxu1 }
 0x1ba   :  { %v9820_v29 = vadd.f32 %v7449_v24, %v7448_v13  ;;  %v8662_v24 = vld [vmem:[%s11439_s23 + $0x444] ss:$8 sps:$4 sm:$0xff]  }
 0x1bb   :  { %2757 = vmatmul.mubr.bf16.gmra.mrb[200].mxu1 %v8649_v25  ;;  %v8661_v25 = vld [vmem:[%s11439_s23 + $0x430] ss:$8 sps:$4 sm:$0xff]  }
 0x1bc   :  { %v1566_v21 = vpack.c.bf16 %v9820_v29, %v9815_v30  ;;  %2764 = vmatprep.mubr.bf16.mxu1 %v8650_v33 }
 0x1be   :  { %6556 = vmatmul.mubr.msk.bf16.gmra.mrb[92].mxu0 %vm792_vm0, %v430_v26  ;;  %v7451_v7 = vpop.f32.mrb[96].mxu1 }
 0x1bf   :  { %1202 = vmatprep.mubr.bf16.mxu0 %v8868_v61  ;;  %v7452_v31 = vpop.f32.mrb[97].mxu1 }
 0x1c0   :  { %v9832_v57 = vadd.f32 %v7452_v31, %v7451_v7  ;;  %v7454_v59 = vpop.f32.mrb[98].mxu1 }
 0x1c1   :  { %v7455_v49 = vpop.f32.mrb[99].mxu1 }
 0x1c2   :  { %v9837_v50 = vadd.f32 %v7455_v49, %v7454_v59  ;;  %v8665_v49 = vld [vmem:[%s11439_s23 + $0x454] ss:$8 sps:$4 sm:$0xff]  }
 0x1c3   :  { %2765 = vmatmul.mubr.bf16.gmra.mrb[204].mxu1 %v8652_v19  ;;  %v8664_v19 = vld [vmem:[%s11439_s23 + $0x440] ss:$8 sps:$4 sm:$0xff]  }
 0x1c4   :  { %v1567_v42 = vpack.c.bf16 %v9837_v50, %v9832_v57  ;;  %2772 = vmatprep.mubr.bf16.mxu1 %v8656_v52 }
 0x1c6   :  { %6557 = vmatmul.mubr.msk.bf16.gmra.mrb[96].mxu0 %vm792_vm0, %v431_v22  ;;  %v7457_v56 = vpop.f32.mrb[100].mxu1 }
 0x1c7   :  { %1212 = vmatprep.mubr.bf16.mxu0 %v8868_v61  ;;  %v7458_v26 = vpop.f32.mrb[101].mxu1 }
 0x1c8   :  { %v9849_v40 = vadd.f32 %v7458_v26, %v7457_v56  ;;  %v7460_v15 = vpop.f32.mrb[102].mxu1 }
 0x1c9   :  { %v7461_v2 = vpop.f32.mrb[103].mxu1 }
 0x1ca   :  { %v9854_v6 = vadd.f32 %v7461_v2, %v7460_v15 }
 0x1cb   :  { %2773 = vmatmul.mubr.bf16.gmra.mrb[208].mxu1 %v8658_v32  ;;  %v8667_v32 = vld [vmem:[%s11439_s23 + $0x450] ss:$8 sps:$4 sm:$0xff]  }
 0x1cc   :  { %v1568_v10 = vpack.c.bf16 %v9854_v6, %v9849_v40  ;;  %2780 = vmatprep.mubr.bf16.mxu1 %v8659_v5 }
 0x1ce   :  { %6558 = vmatmul.mubr.msk.bf16.gmra.mrb[100].mxu0 %vm792_vm0, %v432_v54  ;;  %v7463_v17 = vpop.f32.mrb[104].mxu1 }
 0x1cf   :  { %1222 = vmatprep.mubr.bf16.mxu0 %v8868_v61  ;;  %v7464_v22 = vpop.f32.mrb[105].mxu1 }
 0x1d0   :  { %v9866_v13 = vadd.f32 %v7464_v22, %v7463_v17  ;;  %v7466_v33 = vpop.f32.mrb[106].mxu1 }
 0x1d1   :  { %v7467_v7 = vpop.f32.mrb[107].mxu1 }
 0x1d2   :  { %v9871_v31 = vadd.f32 %v7467_v7, %v7466_v33 }
 0x1d3   :  { %2781 = vmatmul.mubr.bf16.gmra.mrb[212].mxu1 %v8661_v25  ;;  %v8653_v25 = vld [vmem:[%s11440_s24 + $0x70] ss:$8 sps:$4 sm:$0xff]  }
 0x1d4   :  { %v1569_v37 = vpack.c.bf16 %v9871_v31, %v9866_v13  ;;  %2788 = vmatprep.mubr.bf16.mxu1 %v8662_v24 }
 0x1d6   :  { %6559 = vmatmul.mubr.msk.bf16.gmra.mrb[104].mxu0 %vm792_vm0, %v433_v46  ;;  %v7469_v51 = vpop.f32.mrb[108].mxu1 }
 0x1d7   :  { %1232 = vmatprep.mubr.bf16.mxu0 %v8868_v61  ;;  %v7470_v54 = vpop.f32.mrb[109].mxu1 }
 0x1d8   :  { %v9883_v59 = vadd.f32 %v7470_v54, %v7469_v51  ;;  %v7472_v52 = vpop.f32.mrb[110].mxu1  ;;  %v8670_v51 = vld [vmem:[%s11440_s24 + $0x84] ss:$8 sps:$4 sm:$0xff]  }
 0x1d9   :  { %v7473_v56 = vpop.f32.mrb[111].mxu1 }
 0x1da   :  { %v9888_v26 = vadd.f32 %v7473_v56, %v7472_v52 }
 0x1db   :  { %2789 = vmatmul.mubr.bf16.gmra.mrb[216].mxu1 %v8664_v19 }
 0x1dc   :  { %v1570_v34 = vpack.c.bf16 %v9888_v26, %v9883_v59  ;;  %2796 = vmatprep.mubr.bf16.mxu1 %v8665_v49  ;;  %v8673_v59 = vld [vmem:[%s11440_s24 + $0x94] ss:$8 sps:$4 sm:$0xff]  }
 0x1de   :  { %6560 = vmatmul.mubr.msk.bf16.gmra.mrb[108].mxu0 %vm792_vm0, %v434_v0  ;;  %v7491_v44 = vpop.f32.mrb[112].mxu1 }
 0x1df   :  { %1670 = vmatprep.mubr.bf16.mxu0 %v8868_v61  ;;  %v7492_v46 = vpop.f32.mrb[113].mxu1 }
 0x1e0   :  { %v9900_v15 = vadd.f32 %v7492_v46, %v7491_v44  ;;  %v7494_v5 = vpop.f32.mrb[114].mxu1 }
 0x1e1   :  { %v7495_v2 = vpop.f32.mrb[115].mxu1 }
 0x1e2   :  { %v9902_v17 = vadd.f32 %v7495_v2, %v7494_v5 }
 0x1e3   :  { %2797 = vmatmul.mubr.bf16.gmra.mrb[220].mxu1 %v8667_v32 }
 0x1e4   :  { %v2181_v0 = vpack.c.bf16 %v9902_v17, %v9900_v15 }
 0x1e6   :  { %6625 = vmatmul.mubr.msk.bf16.vlgmr.msra.gmra.mrb[56].mxu0 %vm792_vm0, %v1557_v8  ;;  %v7497_v22 = vpop.f32.mrb[116].mxu1 }
 0x1e7   :  { %1680 = vmatprep.mubr.bf16.mxu0 %v8868_v61  ;;  %2263 = vmatpush1.bf16.msra.mxu0 %v8629_v14  ;;  %v7498_v33 = vpop.f32.mrb[117].mxu1 }
 0x1e8   :  { %2264 = vmatprep.subr.bf16.mxu0 %v8655_v60  ;;  %v9920_v24 = vadd.f32 %v7498_v33, %v7497_v22  ;;  %v7500_v7 = vpop.f32.mrb[118].mxu1 }
 0x1e9   :  { %v7501_v38 = vpop.f32.mrb[119].mxu1 }
 0x1ea   :  { %v9925_v23 = vadd.f32 %v7501_v38, %v7500_v7 }
 0x1eb   :  { %2265 = vmatpush1.bf16.msra.mxu0 %v8653_v25 }
 0x1ec   :  { %v2182_v8 = vpack.c.bf16 %v9925_v23, %v9920_v24  ;;  %2886 = vmatprep.subr.bf16.mxu0 %v8670_v51 }
 0x1ee   :  { %6626 = vmatmul.mubr.msk.bf16.gmra.mrb[60].mxu0 %vm792_vm0, %v1558_v58  ;;  %v7503_v54 = vpop.f32.mrb[120].mxu1 }
 0x1ef   :  { %1690 = vmatprep.mubr.bf16.mxu0 %v8868_v61  ;;  %v7504_v19 = vpop.f32.mrb[121].mxu1 }
 0x1f0   :  { %v9934_v52 = vadd.f32 %v7504_v19, %v7503_v54  ;;  %v7506_v49 = vpop.f32.mrb[122].mxu1 }
 0x1f1   :  { %v7507_v56 = vpop.f32.mrb[123].mxu1 }
 0x1f2   :  { %v9936_v44 = vadd.f32 %v7507_v56, %v7506_v49 }
 0x1f4   :  { %v2183_v46 = vpack.c.bf16 %v9936_v44, %v9934_v52 }
 0x1f6   :  { %6627 = vmatmul.mubr.msk.bf16.gmra.mrb[64].mxu0 %vm792_vm0, %v1559_v4  ;;  %v7509_v43 = vpop.f32.mrb[124].mxu1 }
 0x1f7   :  { %1700 = vmatprep.mubr.bf16.mxu0 %v8868_v61  ;;  %v7510_v20 = vpop.f32.mrb[125].mxu1 }
 0x1f8   :  { %v9945_v58 = vadd.f32 %v7510_v20, %v7509_v43  ;;  %v7512_v32 = vpop.f32.mrb[126].mxu1 }
 0x1f9   :  { %v7513_v5 = vpop.f32.mrb[127].mxu1 }
 0x1fa   :  { %v9947_v2 = vadd.f32 %v7513_v5, %v7512_v32 }
 0x1fc   :  { %v2184_v14 = vpack.c.bf16 %v9947_v2, %v9945_v58 }
 0x1fe   :  { %6628 = vmatmul.mubr.msk.bf16.gmra.mrb[68].mxu0 %vm792_vm0, %v1560_v27  ;;  %v7515_v11 = vpop.f32.mrb[128].mxu1 }
 0x1ff   :  { %1710 = vmatprep.mubr.bf16.mxu0 %v8868_v61  ;;  %v7516_v16 = vpop.f32.mrb[129].mxu1 }
 0x200   :  { %v9956_v4 = vadd.f32 %v7516_v16, %v7515_v11  ;;  %v7518_v60 = vpop.f32.mrb[130].mxu1 }
 0x201   :  { %v7519_v22 = vpop.f32.mrb[131].mxu1 }
 0x202   :  { %v9958_v25 = vadd.f32 %v7519_v22, %v7518_v60 }
 0x204   :  { %v2185_v33 = vpack.c.bf16 %v9958_v25, %v9956_v4 }
 0x206   :  { %6629 = vmatmul.mubr.msk.bf16.gmra.mrb[72].mxu0 %vm792_vm0, %v1561_v47  ;;  %v7521_v48 = vpop.f32.mrb[132].mxu1 }
 0x207   :  { %1720 = vmatprep.mubr.bf16.mxu0 %v8868_v61  ;;  %v7522_v41 = vpop.f32.mrb[133].mxu1 }
 0x208   :  { %v9967_v27 = vadd.f32 %v7522_v41, %v7521_v48  ;;  %v7524_v7 = vpop.f32.mrb[134].mxu1 }
 0x209   :  { %v7525_v51 = vpop.f32.mrb[135].mxu1 }
 0x20a   :  { %v9969_v38 = vadd.f32 %v7525_v51, %v7524_v7 }
 0x20c   :  { %v2186_v54 = vpack.c.bf16 %v9969_v38, %v9967_v27 }
 0x20e   :  { %6630 = vmatmul.mubr.msk.bf16.gmra.mrb[76].mxu0 %vm792_vm0, %v1562_v63  ;;  %v7527_v53 = vpop.f32.mrb[136].mxu1 }
 0x20f   :  { %1730 = vmatprep.mubr.bf16.mxu0 %v8868_v61  ;;  %v7528_v62 = vpop.f32.mrb[137].mxu1 }
 0x210   :  { %v9978_v47 = vadd.f32 %v7528_v62, %v7527_v53  ;;  %v7530_v19 = vpop.f32.mrb[138].mxu1 }
 0x211   :  { %v7531_v49 = vpop.f32.mrb[139].mxu1 }
 0x212   :  { %v9980_v56 = vadd.f32 %v7531_v49, %v7530_v19 }
 0x214   :  { %v2187_v43 = vpack.c.bf16 %v9980_v56, %v9978_v47 }
 0x216   :  { %6631 = vmatmul.mubr.msk.bf16.gmra.mrb[80].mxu0 %vm792_vm0, %v1563_v18  ;;  %v7533_v12 = vpop.f32.mrb[140].mxu1 }
 0x217   :  { %1740 = vmatprep.mubr.bf16.mxu0 %v8868_v61  ;;  %v7534_v3 = vpop.f32.mrb[141].mxu1 }
 0x218   :  { %v9989_v63 = vadd.f32 %v7534_v3, %v7533_v12  ;;  %v7536_v20 = vpop.f32.mrb[142].mxu1 }
 0x219   :  { %v7537_v32 = vpop.f32.mrb[143].mxu1 }
 0x21a   :  { %v9991_v5 = vadd.f32 %v7537_v32, %v7536_v20 }
 0x21c   :  { %v2188_v11 = vpack.c.bf16 %v9991_v5, %v9989_v63 }
 0x21e   :  { %6632 = vmatmul.mubr.msk.bf16.gmra.mrb[84].mxu0 %vm792_vm0, %v1564_v39  ;;  %v7539_v35 = vpop.f32.mrb[144].mxu1 }
 0x21f   :  { %1750 = vmatprep.mubr.bf16.mxu0 %v8868_v61  ;;  %v7540_v36 = vpop.f32.mrb[145].mxu1 }
 0x220   :  { %v10000_v18 = vadd.f32 %v7540_v36, %v7539_v35  ;;  %v7542_v16 = vpop.f32.mrb[146].mxu1 }
 0x221   :  { %v7543_v60 = vpop.f32.mrb[147].mxu1 }
 0x222   :  { %v10002_v22 = vadd.f32 %v7543_v60, %v7542_v16 }
 0x224   :  { %v2189_v48 = vpack.c.bf16 %v10002_v22, %v10000_v18 }
 0x226   :  { %6633 = vmatmul.mubr.msk.bf16.gmra.mrb[88].mxu0 %vm792_vm0, %v1565_v28  ;;  %v7545_v45 = vpop.f32.mrb[148].mxu1 }
 0x227   :  { %1760 = vmatprep.mubr.bf16.mxu0 %v8868_v61  ;;  %v7546_v55 = vpop.f32.mrb[149].mxu1 }
 0x228   :  { %v10011_v39 = vadd.f32 %v7546_v55, %v7545_v45  ;;  %v7548_v41 = vpop.f32.mrb[150].mxu1 }
 0x229   :  { %v7549_v7 = vpop.f32.mrb[151].mxu1 }
 0x22a   :  { %v10013_v51 = vadd.f32 %v7549_v7, %v7548_v41 }
 0x22c   :  { %v2190_v53 = vpack.c.bf16 %v10013_v51, %v10011_v39 }
 0x22e   :  { %6634 = vmatmul.mubr.msk.bf16.gmra.mrb[92].mxu0 %vm792_vm0, %v1566_v21  ;;  %v7551_v1 = vpop.f32.mrb[152].mxu1 }
 0x22f   :  { %1770 = vmatprep.mubr.bf16.mxu0 %v8868_v61  ;;  %v7552_v9 = vpop.f32.mrb[153].mxu1 }
 0x230   :  { %v10022_v28 = vadd.f32 %v7552_v9, %v7551_v1  ;;  %v7554_v62 = vpop.f32.mrb[154].mxu1 }
 0x231   :  { %v7555_v19 = vpop.f32.mrb[155].mxu1 }
 0x232   :  { %v10024_v49 = vadd.f32 %v7555_v19, %v7554_v62 }
 0x234   :  { %v2191_v12 = vpack.c.bf16 %v10024_v49, %v10022_v28 }
 0x236   :  { %6635 = vmatmul.mubr.msk.bf16.gmra.mrb[96].mxu0 %vm792_vm0, %v1567_v42  ;;  %v7557_v30 = vpop.f32.mrb[156].mxu1 }
 0x237   :  { %1780 = vmatprep.mubr.bf16.mxu0 %v8868_v61  ;;  %v7558_v29 = vpop.f32.mrb[157].mxu1 }
 0x238   :  { %v10033_v21 = vadd.f32 %v7558_v29, %v7557_v30  ;;  %v7560_v3 = vpop.f32.mrb[158].mxu1  ;;  %v8668_v30 = vld [vmem:[%s11440_s24 + $0x80] ss:$8 sps:$4 sm:$0xff]   ;;  %v8671_v29 = vld [vmem:[%s11440_s24 + $0x90] ss:$8 sps:$4 sm:$0xff]  }
 0x239   :  { %v7561_v20 = vpop.f32.mrb[159].mxu1 }
 0x23a   :  { %v10035_v32 = vadd.f32 %v7561_v20, %v7560_v3 }
 0x23c   :  { %v2192_v35 = vpack.c.bf16 %v10035_v32, %v10033_v21 }
 0x23e   :  { %6636 = vmatmul.mubr.msk.bf16.gmra.mrb[100].mxu0 %vm792_vm0, %v1568_v10  ;;  %v7563_v57 = vpop.f32.mrb[160].mxu1 }
 0x23f   :  { %1790 = vmatprep.mubr.bf16.mxu0 %v8868_v61  ;;  %v7564_v50 = vpop.f32.mrb[161].mxu1 }
 0x240   :  { %v10044_v42 = vadd.f32 %v7564_v50, %v7563_v57  ;;  %v7566_v36 = vpop.f32.mrb[162].mxu1 }
 0x241   :  { %v7567_v16 = vpop.f32.mrb[163].mxu1 }
 0x242   :  { %v10046_v60 = vadd.f32 %v7567_v16, %v7566_v36 }
 0x244   :  { %v2193_v45 = vpack.c.bf16 %v10046_v60, %v10044_v42  ;;  %v3117_v42 = vlaneseq  ;;  %v8676_v60 = vld [vmem:[%s11416_s4 + $0x4] ss:$8 sps:$4 sm:$0xff]  }
 0x245   :  { %6809 = vmatprep.mubr.msk.bf16.mxu1 %vm3344_vm1, %v8676_v60 }
 0x246   :  { %6637 = vmatmul.mubr.msk.bf16.gmra.mrb[104].mxu0 %vm792_vm0, %v1569_v37  ;;  %v7569_v40 = vpop.f32.mrb[164].mxu1 }
 0x247   :  { %1800 = vmatprep.mubr.bf16.mxu0 %v8868_v61  ;;  %v7570_v6 = vpop.f32.mrb[165].mxu1 }
 0x248   :  { %v10055_v10 = vadd.f32 %v7570_v6, %v7569_v40  ;;  %v7572_v55 = vpop.f32.mrb[166].mxu1 }
 0x249   :  { %v7573_v41 = vpop.f32.mrb[167].mxu1 }
 0x24a   :  { %v10057_v7 = vadd.f32 %v7573_v41, %v7572_v55 }
 0x24c   :  { %v2194_v1 = vpack.c.bf16 %v10057_v7, %v10055_v10  ;;  %v3115_v7 = vld [vmem:[%s11417_s3] sm:$0x3] }
 0x24e   :  { %6638 = vmatmul.mubr.msk.bf16.gmra.mrb[108].mxu0 %vm792_vm0, %v1570_v34  ;;  %v7591_v13 = vpop.f32.mrb[168].mxu1 }
 0x24f   :  { %2294 = vmatprep.mubr.bf16.mxu0 %v8868_v61  ;;  %v7592_v31 = vpop.f32.mrb[169].mxu1 }
 0x250   :  { %v10066_v37 = vadd.f32 %v7592_v31, %v7591_v13  ;;  %v7594_v9 = vpop.f32.mrb[170].mxu1 }
 0x251   :  { %v7595_v62 = vpop.f32.mrb[171].mxu1 }
 0x252   :  { %v10068_v19 = vadd.f32 %v7595_v62, %v7594_v9 }
 0x254   :  { %v2805_v26 = vpack.c.bf16 %v10068_v19, %v10066_v37 }
 0x256   :  { %6703 = vmatmul.mubr.msk.bf16.vlgmr.msra.gmra.mrb[56].mxu0 %vm792_vm0, %v2181_v0  ;;  %v7597_v34 = vpop.f32.mrb[172].mxu1 }
 0x257   :  { %2304 = vmatprep.mubr.bf16.mxu0 %v8868_v61  ;;  %2887 = vmatpush1.bf16.msra.mxu0 %v8668_v30  ;;  %v7598_v3 = vpop.f32.mrb[173].mxu1 }
 0x258   :  { %2888 = vmatprep.subr.bf16.mxu0 %v8673_v59  ;;  %v10086_v20 = vadd.f32 %v7598_v3, %v7597_v34  ;;  %v7600_v57 = vpop.f32.mrb[174].mxu1 }
 0x259   :  { %v7601_v50 = vpop.f32.mrb[175].mxu1 }
 0x25a   :  { %v10088_v36 = vadd.f32 %v7601_v50, %v7600_v57 }
 0x25b   :  { %2889 = vmatpush1.bf16.msra.mxu0 %v8671_v29 }
 0x25c   :  { %v2806_v15 = vpack.c.bf16 %v10088_v36, %v10086_v20 }
 0x25e   :  { %6704 = vmatmul.mubr.msk.bf16.gmra.mrb[60].mxu0 %vm792_vm0, %v2182_v8  ;;  %v7603_v17 = vpop.f32.mrb[176].mxu1 }
 0x25f   :  { %2314 = vmatprep.mubr.bf16.mxu0 %v8868_v61  ;;  %v7604_v0 = vpop.f32.mrb[177].mxu1 }
 0x260   :  { %v10097_v16 = vadd.f32 %v7604_v0, %v7603_v17  ;;  %v7606_v40 = vpop.f32.mrb[178].mxu1 }
 0x261   :  { %v7607_v6 = vpop.f32.mrb[179].mxu1 }
 0x262   :  { %v10099_v55 = vadd.f32 %v7607_v6, %v7606_v40 }
 0x264   :  { %v2807_v41 = vpack.c.bf16 %v10099_v55, %v10097_v16 }
 0x266   :  { %6705 = vmatmul.mubr.msk.bf16.gmra.mrb[64].mxu0 %vm792_vm0, %v2183_v46  ;;  %v7609_v24 = vpop.f32.mrb[180].mxu1 }
 0x267   :  { %2324 = vmatprep.mubr.bf16.mxu0 %v8868_v61  ;;  %v7610_v23 = vpop.f32.mrb[181].mxu1 }
 0x268   :  { %v10108_v8 = vadd.f32 %v7610_v23, %v7609_v24  ;;  %v7612_v13 = vpop.f32.mrb[182].mxu1 }
 0x269   :  { %v7613_v31 = vpop.f32.mrb[183].mxu1 }
 0x26a   :  { %v10110_v9 = vadd.f32 %v7613_v31, %v7612_v13 }
 0x26c   :  { %v2808_v62 = vpack.c.bf16 %v10110_v9, %v10108_v8 }
 0x26e   :  { %6706 = vmatmul.mubr.msk.bf16.gmra.mrb[68].mxu0 %vm792_vm0, %v2184_v14  ;;  %v7615_v52 = vpop.f32.mrb[184].mxu1 }
 0x26f   :  { %2334 = vmatprep.mubr.bf16.mxu0 %v8868_v61  ;;  %v7616_v44 = vpop.f32.mrb[185].mxu1 }
 0x270   :  { %v10119_v46 = vadd.f32 %v7616_v44, %v7615_v52  ;;  %v7618_v30 = vpop.f32.mrb[186].mxu1 }
 0x271   :  { %v7619_v59 = vpop.f32.mrb[187].mxu1 }
 0x272   :  { %v10121_v34 = vadd.f32 %v7619_v59, %v7618_v30 }
 0x274   :  { %v2809_v29 = vpack.c.bf16 %v10121_v34, %v10119_v46 }
 0x276   :  { %6707 = vmatmul.mubr.msk.bf16.gmra.mrb[72].mxu0 %vm792_vm0, %v2185_v33  ;;  %v7621_v58 = vpop.f32.mrb[188].mxu1 }
 0x277   :  { %2344 = vmatprep.mubr.bf16.mxu0 %v8868_v61  ;;  %v7622_v2 = vpop.f32.mrb[189].mxu1 }
 0x278   :  { %v10130_v14 = vadd.f32 %v7622_v2, %v7621_v58  ;;  %v7624_v3 = vpop.f32.mrb[190].mxu1 }
 0x279   :  { %v7625_v57 = vpop.f32.mrb[191].mxu1 }
 0x27a   :  { %v10132_v50 = vadd.f32 %v7625_v57, %v7624_v3 }
 0x27c   :  { %v2810_v17 = vpack.c.bf16 %v10132_v50, %v10130_v14 }
 0x27e   :  { %6708 = vmatmul.mubr.msk.bf16.gmra.mrb[76].mxu0 %vm792_vm0, %v2186_v54  ;;  %v7627_v4 = vpop.f32.mrb[192].mxu1 }
 0x27f   :  { %2354 = vmatprep.mubr.bf16.mxu0 %v8868_v61  ;;  %v7628_v25 = vpop.f32.mrb[193].mxu1 }
 0x280   :  { %v10141_v33 = vadd.f32 %v7628_v25, %v7627_v4  ;;  %v7630_v0 = vpop.f32.mrb[194].mxu1 }
 0x281   :  { %v7631_v40 = vpop.f32.mrb[195].mxu1 }
 0x282   :  { %v10143_v6 = vadd.f32 %v7631_v40, %v7630_v0 }
 0x284   :  { %v2811_v24 = vpack.c.bf16 %v10143_v6, %v10141_v33 }
 0x286   :  { %6709 = vmatmul.mubr.msk.bf16.gmra.mrb[80].mxu0 %vm792_vm0, %v2187_v43  ;;  %v7633_v27 = vpop.f32.mrb[196].mxu1 }
 0x287   :  { %2364 = vmatprep.mubr.bf16.mxu0 %v8868_v61  ;;  %v7634_v38 = vpop.f32.mrb[197].mxu1 }
 0x288   :  { %v10152_v54 = vadd.f32 %v7634_v38, %v7633_v27  ;;  %v7636_v23 = vpop.f32.mrb[198].mxu1 }
 0x289   :  { %v7637_v13 = vpop.f32.mrb[199].mxu1 }
 0x28a   :  { %v10154_v31 = vadd.f32 %v7637_v13, %v7636_v23 }
 0x28c   :  { %v2812_v52 = vpack.c.bf16 %v10154_v31, %v10152_v54 }
 0x28e   :  { %6710 = vmatmul.mubr.msk.bf16.gmra.mrb[84].mxu0 %vm792_vm0, %v2188_v11  ;;  %v7639_v47 = vpop.f32.mrb[200].mxu1 }
 0x28f   :  { %2374 = vmatprep.mubr.bf16.mxu0 %v8868_v61  ;;  %v7640_v56 = vpop.f32.mrb[201].mxu1 }
 0x290   :  { %v10163_v43 = vadd.f32 %v7640_v56, %v7639_v47  ;;  %v7642_v44 = vpop.f32.mrb[202].mxu1 }
 0x291   :  { %v7643_v30 = vpop.f32.mrb[203].mxu1 }
 0x292   :  { %v10165_v59 = vadd.f32 %v7643_v30, %v7642_v44 }
 0x294   :  { %v2813_v58 = vpack.c.bf16 %v10165_v59, %v10163_v43 }
 0x296   :  { %6711 = vmatmul.mubr.msk.bf16.gmra.mrb[88].mxu0 %vm792_vm0, %v2189_v48  ;;  %v7645_v63 = vpop.f32.mrb[204].mxu1 }
 0x297   :  { %2384 = vmatprep.mubr.bf16.mxu0 %v8868_v61  ;;  %v7646_v5 = vpop.f32.mrb[205].mxu1 }
 0x298   :  { %v7647_v11 = vadd.f32 %v7646_v5, %v7645_v63  ;;  %v7648_v2 = vpop.f32.mrb[206].mxu1 }
 0x299   :  { %v7649_v3 = vpop.f32.mrb[207].mxu1 }
 0x29a   :  { %v7650_v57 = vadd.f32 %v7649_v3, %v7648_v2 }
 0x29c   :  { %v2814_v4 = vpack.c.bf16 %v7650_v57, %v7647_v11 }
 0x29e   :  { %6712 = vmatmul.mubr.msk.bf16.gmra.mrb[92].mxu0 %vm792_vm0, %v2190_v53  ;;  %v7651_v25 = vpop.f32.mrb[208].mxu1 }
 0x29f   :  { %2394 = vmatprep.mubr.bf16.mxu0 %v8868_v61  ;;  %v7652_v18 = vpop.f32.mrb[209].mxu1 }
 0x2a0   :  { %v7653_v22 = vadd.f32 %v7652_v18, %v7651_v25  ;;  %v7654_v48 = vpop.f32.mrb[210].mxu1 }
 0x2a1   :  { %v7655_v0 = vpop.f32.mrb[211].mxu1 }
 0x2a2   :  { %v7656_v40 = vadd.f32 %v7655_v0, %v7654_v48 }
 0x2a4   :  { %v2815_v27 = vpack.c.bf16 %v7656_v40, %v7653_v22 }
 0x2a6   :  { %6713 = vmatmul.mubr.msk.bf16.gmra.mrb[96].mxu0 %vm792_vm0, %v2191_v12  ;;  %v7657_v38 = vpop.f32.mrb[212].mxu1 }
 0x2a7   :  { %2404 = vmatprep.mubr.bf16.mxu0 %v8868_v61  ;;  %v7658_v39 = vpop.f32.mrb[213].mxu1 }
 0x2a8   :  { %v7659_v51 = vadd.f32 %v7658_v39, %v7657_v38  ;;  %v7660_v53 = vpop.f32.mrb[214].mxu1 }
 0x2a9   :  { %v7661_v23 = vpop.f32.mrb[215].mxu1 }
 0x2aa   :  { %v7662_v13 = vadd.f32 %v7661_v23, %v7660_v53 }
 0x2ac   :  { %v2816_v47 = vpack.c.bf16 %v7662_v13, %v7659_v51 }
 0x2ae   :  { %6714 = vmatmul.mubr.msk.bf16.gmra.mrb[100].mxu0 %vm792_vm0, %v2192_v35  ;;  %v7663_v56 = vpop.f32.mrb[216].mxu1 }
 0x2af   :  { %2414 = vmatprep.mubr.bf16.mxu0 %v8868_v61  ;;  %v7664_v28 = vpop.f32.mrb[217].mxu1 }
 0x2b0   :  { %v7665_v49 = vadd.f32 %v7664_v28, %v7663_v56  ;;  %v7666_v12 = vpop.f32.mrb[218].mxu1 }
 0x2b1   :  { %v7667_v44 = vpop.f32.mrb[219].mxu1 }
 0x2b2   :  { %v7668_v30 = vadd.f32 %v7667_v44, %v7666_v12 }
 0x2b4   :  { %v2817_v63 = vpack.c.bf16 %v7668_v30, %v7665_v49 }
 0x2b6   :  { %6715 = vmatmul.mubr.msk.bf16.gmra.mrb[104].mxu0 %vm792_vm0, %v2193_v45  ;;  %v7669_v5 = vpop.f32.mrb[220].mxu1  ;;  %v10256_v45 = vshrl.u32 %v3117_v42, 7 }
 0x2b7   :  { %2424 = vmatprep.mubr.bf16.mxu0 %v8868_v61  ;;  %v7670_v21 = vpop.f32.mrb[221].mxu1 }
 0x2b8   :  { %v7671_v32 = vadd.f32 %v7670_v21, %v7669_v5  ;;  %v7672_v35 = vpop.f32.mrb[222].mxu1  ;;  %v3119_v10 = vsub.s32 0, %v10256_v45 }
 0x2b9   :  { %v7673_v11 = vpop.f32.mrb[223].mxu1 }
 0x2ba   :  { %v7674_v2 = vadd.f32 %v7673_v11, %v7672_v35  ;;  %v10266_v37 = vrot.slane %v3115_v7, %v3119_v10 }
 0x2bc   :  { %v2818_v3 = vpack.c.bf16 %v7674_v2, %v7671_v32 }
 0x2be   :  { %6716 = vmatmul.mubr.msk.bf16.gmra.mrb[108].mxu0 %vm792_vm0, %v2194_v1  ;;  %v3123_v1 = vsub.s32 1, %v10256_v45 }
 0x2bf   :  { %2918 = vmatprep.mubr.bf16.mxu0 %v8868_v61 }
 0x2c0   :  { %v10270_v19 = vrot.slane %v3115_v7, %v3123_v1 }
 0x2c6   :  { %6781 = vmatmul.mubr.msk.bf16.vlgmr.msra.gmra.mrb[56].mxu0 %vm792_vm0, %v2805_v26 }
 0x2c7   :  { %2928 = vmatprep.mubr.bf16.mxu0 %v8868_v61 }
 0x2ce   :  { %6782 = vmatmul.mubr.msk.bf16.gmra.mrb[60].mxu0 %vm792_vm0, %v2806_v15 }
 0x2cf   :  { %2938 = vmatprep.mubr.bf16.mxu0 %v8868_v61 }
 0x2d6   :  { %6783 = vmatmul.mubr.msk.bf16.gmra.mrb[64].mxu0 %vm792_vm0, %v2807_v41 }
 0x2d7   :  { %2948 = vmatprep.mubr.bf16.mxu0 %v8868_v61 }
 0x2de   :  { %6784 = vmatmul.mubr.msk.bf16.gmra.mrb[68].mxu0 %vm792_vm0, %v2808_v62 }
 0x2df   :  { %2958 = vmatprep.mubr.bf16.mxu0 %v8868_v61 }
 0x2e6   :  { %6785 = vmatmul.mubr.msk.bf16.gmra.mrb[72].mxu0 %vm792_vm0, %v2809_v29 }
 0x2e7   :  { %2968 = vmatprep.mubr.bf16.mxu0 %v8868_v61 }
 0x2ee   :  { %6786 = vmatmul.mubr.msk.bf16.gmra.mrb[76].mxu0 %vm792_vm0, %v2810_v17 }
 0x2ef   :  { %2978 = vmatprep.mubr.bf16.mxu0 %v8868_v61 }
 0x2f6   :  { %6787 = vmatmul.mubr.msk.bf16.gmra.mrb[80].mxu0 %vm792_vm0, %v2811_v24 }
 0x2f7   :  { %2988 = vmatprep.mubr.bf16.mxu0 %v8868_v61 }
 0x2fe   :  { %6788 = vmatmul.mubr.msk.bf16.gmra.mrb[84].mxu0 %vm792_vm0, %v2812_v52 }
 0x2ff   :  { %2998 = vmatprep.mubr.bf16.mxu0 %v8868_v61 }
 0x306   :  { %6789 = vmatmul.mubr.msk.bf16.gmra.mrb[88].mxu0 %vm792_vm0, %v2813_v58 }
 0x307   :  { %3008 = vmatprep.mubr.bf16.mxu0 %v8868_v61 }
 0x30e   :  { %6790 = vmatmul.mubr.msk.bf16.gmra.mrb[92].mxu0 %vm792_vm0, %v2814_v4 }
 0x30f   :  { %3018 = vmatprep.mubr.bf16.mxu0 %v8868_v61 }
 0x316   :  { %6791 = vmatmul.mubr.msk.bf16.gmra.mrb[96].mxu0 %vm792_vm0, %v2815_v27 }
 0x317   :  { %3028 = vmatprep.mubr.bf16.mxu0 %v8868_v61 }
 0x31e   :  { %6792 = vmatmul.mubr.msk.bf16.gmra.mrb[100].mxu0 %vm792_vm0, %v2816_v47 }
 0x31f   :  { %3038 = vmatprep.mubr.bf16.mxu0 %v8868_v61 }
 0x326   :  { %6793 = vmatmul.mubr.msk.bf16.gmra.mrb[104].mxu0 %vm792_vm0, %v2817_v63 }
 0x327   :  { %3048 = vmatprep.mubr.bf16.mxu0 %v8868_v61 }
 0x32e   :  { %6794 = vmatmul.mubr.msk.bf16.gmra.mrb[108].mxu0 %vm792_vm0, %v2818_v3 }
 0x399   :  { %v2920_v26 = vpop.f32.mrb[56].mxu0 }
 0x39a   :  { %v3127_v20 = vadd.f32 %v10266_v37, %v2920_v26  ;;  %v2922_v36 = vpop.f32.mrb[57].mxu0 }
 0x39b   :  { %v3128_v15 = vadd.f32 %v10270_v19, %v2922_v36  ;;  %v2924_v16 = vpop.f32.mrb[58].mxu0 }
 0x39c   :  { %v3129_v55 = vadd.f32 %v10266_v37, %v2924_v16  ;;  %v2926_v41 = vpop.f32.mrb[59].mxu0  ;;  %v3183_v9 = vmax.f32 %v3127_v20, 0.0 }
 0x39d   :  { %v3130_v8 = vadd.f32 %v10270_v19, %v2926_v41  ;;  %v3184_v46 = vmax.f32 %v3128_v15, 0.0 }
 0x39e   :  { %v3185_v62 = vmax.f32 %v3129_v55, 0.0 }
 0x39f   :  { %v3186_v34 = vmax.f32 %v3130_v8, 0.0 }
 0x3a0   :  { %v3239_v29 = vpack.c.bf16 %v3185_v62, %v3183_v9 }
 0x3a1   :  { %v3240_v14 = vpack.c.bf16 %v3186_v34, %v3184_v46  ;;  %v2930_v50 = vpop.f32.mrb[60].mxu0 }
 0x3a2   :  { %v3131_v17 = vadd.f32 %v10266_v37, %v2930_v50  ;;  %v2932_v33 = vpop.f32.mrb[61].mxu0 }
 0x3a3   :  { %v3132_v6 = vadd.f32 %v10270_v19, %v2932_v33  ;;  %v2934_v24 = vpop.f32.mrb[62].mxu0  ;;  %3366 = vmatprep.subr.bf16.mxu1 %v3240_v14 }
 0x3a4   :  { %v3133_v54 = vadd.f32 %v10266_v37, %v2934_v24  ;;  %v2936_v31 = vpop.f32.mrb[63].mxu0  ;;  %3367 = vmatpush1.bf16.msra.mxu1 %v3239_v29  ;;  %v3187_v43 = vmax.f32 %v3131_v17, 0.0 }
 0x3a5   :  { %v3134_v52 = vadd.f32 %v10270_v19, %v2936_v31  ;;  %v3188_v58 = vmax.f32 %v3132_v6, 0.0 }
 0x3a6   :  { %v3189_v59 = vmax.f32 %v3133_v54, 0.0 }
 0x3a7   :  { %v3190_v57 = vmax.f32 %v3134_v52, 0.0 }
 0x3a8   :  { %v3241_v4 = vpack.c.bf16 %v3189_v59, %v3187_v43 }
 0x3a9   :  { %v3242_v25 = vpack.c.bf16 %v3190_v57, %v3188_v58  ;;  %v2940_v18 = vpop.f32.mrb[64].mxu0 }
 0x3aa   :  { %v3135_v22 = vadd.f32 %v10266_v37, %v2940_v18  ;;  %v2942_v48 = vpop.f32.mrb[65].mxu0 }
 0x3ab   :  { %v3136_v0 = vadd.f32 %v10270_v19, %v2942_v48  ;;  %v2944_v40 = vpop.f32.mrb[66].mxu0  ;;  %3368 = vmatprep.subr.bf16.mxu1 %v3242_v25 }
 0x3ac   :  { %v3137_v27 = vadd.f32 %v10266_v37, %v2944_v40  ;;  %v2946_v38 = vpop.f32.mrb[67].mxu0  ;;  %3369 = vmatpush1.bf16.msra.mxu1 %v3241_v4  ;;  %v3191_v51 = vmax.f32 %v3135_v22, 0.0 }
 0x3ad   :  { %v3138_v39 = vadd.f32 %v10270_v19, %v2946_v38  ;;  %v3192_v23 = vmax.f32 %v3136_v0, 0.0 }
 0x3ae   :  { %v3193_v53 = vmax.f32 %v3137_v27, 0.0 }
 0x3af   :  { %v3194_v13 = vmax.f32 %v3138_v39, 0.0 }
 0x3b0   :  { %v3243_v47 = vpack.c.bf16 %v3193_v53, %v3191_v51 }
 0x3b1   :  { %v3244_v56 = vpack.c.bf16 %v3194_v13, %v3192_v23  ;;  %v2950_v28 = vpop.f32.mrb[68].mxu0 }
 0x3b2   :  { %v3139_v49 = vadd.f32 %v10266_v37, %v2950_v28  ;;  %v2952_v12 = vpop.f32.mrb[69].mxu0 }
 0x3b3   :  { %v3140_v44 = vadd.f32 %v10270_v19, %v2952_v12  ;;  %v2954_v30 = vpop.f32.mrb[70].mxu0  ;;  %3370 = vmatprep.subr.bf16.mxu1 %v3244_v56 }
 0x3b4   :  { %v3141_v63 = vadd.f32 %v10266_v37, %v2954_v30  ;;  %v2956_v5 = vpop.f32.mrb[71].mxu0  ;;  %3371 = vmatpush1.bf16.msra.mxu1 %v3243_v47  ;;  %v3195_v32 = vmax.f32 %v3139_v49, 0.0 }
 0x3b5   :  { %v3142_v21 = vadd.f32 %v10270_v19, %v2956_v5  ;;  %v3196_v11 = vmax.f32 %v3140_v44, 0.0 }
 0x3b6   :  { %v3197_v35 = vmax.f32 %v3141_v63, 0.0 }
 0x3b7   :  { %v3198_v2 = vmax.f32 %v3142_v21, 0.0 }
 0x3b8   :  { %v3245_v3 = vpack.c.bf16 %v3197_v35, %v3195_v32 }
 0x3b9   :  { %v3246_v42 = vpack.c.bf16 %v3198_v2, %v3196_v11  ;;  %v2960_v60 = vpop.f32.mrb[72].mxu0 }
 0x3ba   :  { %v3143_v7 = vadd.f32 %v10266_v37, %v2960_v60  ;;  %v2962_v26 = vpop.f32.mrb[73].mxu0 }
 0x3bb   :  { %v3144_v20 = vadd.f32 %v10270_v19, %v2962_v26  ;;  %v2964_v36 = vpop.f32.mrb[74].mxu0  ;;  %3372 = vmatprep.subr.bf16.mxu1 %v3246_v42 }
 0x3bc   :  { %v3145_v15 = vadd.f32 %v10266_v37, %v2964_v36  ;;  %v2966_v16 = vpop.f32.mrb[75].mxu0  ;;  %3373 = vmatpush1.bf16.msra.mxu1 %v3245_v3  ;;  %v3199_v41 = vmax.f32 %v3143_v7, 0.0 }
 0x3bd   :  { %v3146_v55 = vadd.f32 %v10270_v19, %v2966_v16  ;;  %v3200_v9 = vmax.f32 %v3144_v20, 0.0 }
 0x3be   :  { %v3201_v8 = vmax.f32 %v3145_v15, 0.0 }
 0x3bf   :  { %v3202_v62 = vmax.f32 %v3146_v55, 0.0 }
 0x3c0   :  { %v3247_v46 = vpack.c.bf16 %v3201_v8, %v3199_v41 }
 0x3c1   :  { %v3248_v34 = vpack.c.bf16 %v3202_v62, %v3200_v9  ;;  %v2970_v29 = vpop.f32.mrb[76].mxu0 }
 0x3c2   :  { %v3147_v14 = vadd.f32 %v10266_v37, %v2970_v29  ;;  %v2972_v50 = vpop.f32.mrb[77].mxu0 }
 0x3c3   :  { %v3148_v17 = vadd.f32 %v10270_v19, %v2972_v50  ;;  %v2974_v33 = vpop.f32.mrb[78].mxu0  ;;  %3374 = vmatprep.subr.bf16.mxu1 %v3248_v34 }
 0x3c4   :  { %v3149_v6 = vadd.f32 %v10266_v37, %v2974_v33  ;;  %v2976_v24 = vpop.f32.mrb[79].mxu0  ;;  %3375 = vmatpush1.bf16.msra.mxu1 %v3247_v46  ;;  %v3203_v31 = vmax.f32 %v3147_v14, 0.0 }
 0x3c5   :  { %v3150_v54 = vadd.f32 %v10270_v19, %v2976_v24  ;;  %v3204_v43 = vmax.f32 %v3148_v17, 0.0 }
 0x3c6   :  { %v3205_v52 = vmax.f32 %v3149_v6, 0.0 }
 0x3c7   :  { %v3206_v59 = vmax.f32 %v3150_v54, 0.0 }
 0x3c8   :  { %v3249_v58 = vpack.c.bf16 %v3205_v52, %v3203_v31 }
 0x3c9   :  { %v3250_v57 = vpack.c.bf16 %v3206_v59, %v3204_v43  ;;  %v2980_v4 = vpop.f32.mrb[80].mxu0 }
 0x3ca   :  { %v3151_v25 = vadd.f32 %v10266_v37, %v2980_v4  ;;  %v2982_v18 = vpop.f32.mrb[81].mxu0 }
 0x3cb   :  { %v3152_v22 = vadd.f32 %v10270_v19, %v2982_v18  ;;  %v2984_v48 = vpop.f32.mrb[82].mxu0  ;;  %3376 = vmatprep.subr.bf16.mxu1 %v3250_v57 }
 0x3cc   :  { %v3153_v0 = vadd.f32 %v10266_v37, %v2984_v48  ;;  %v2986_v40 = vpop.f32.mrb[83].mxu0  ;;  %3377 = vmatpush1.bf16.msra.mxu1 %v3249_v58  ;;  %v3207_v38 = vmax.f32 %v3151_v25, 0.0 }
 0x3cd   :  { %v3154_v27 = vadd.f32 %v10270_v19, %v2986_v40  ;;  %v3208_v51 = vmax.f32 %v3152_v22, 0.0 }
 0x3ce   :  { %v3209_v39 = vmax.f32 %v3153_v0, 0.0 }
 0x3cf   :  { %v3210_v53 = vmax.f32 %v3154_v27, 0.0 }
 0x3d0   :  { %v3251_v23 = vpack.c.bf16 %v3209_v39, %v3207_v38 }
 0x3d1   :  { %v3252_v13 = vpack.c.bf16 %v3210_v53, %v3208_v51  ;;  %v2990_v47 = vpop.f32.mrb[84].mxu0 }
 0x3d2   :  { %v3155_v56 = vadd.f32 %v10266_v37, %v2990_v47  ;;  %v2992_v28 = vpop.f32.mrb[85].mxu0 }
 0x3d3   :  { %v3156_v49 = vadd.f32 %v10270_v19, %v2992_v28  ;;  %v2994_v12 = vpop.f32.mrb[86].mxu0  ;;  %3378 = vmatprep.subr.bf16.mxu1 %v3252_v13 }
 0x3d4   :  { %v3157_v44 = vadd.f32 %v10266_v37, %v2994_v12  ;;  %v2996_v30 = vpop.f32.mrb[87].mxu0  ;;  %3379 = vmatpush1.bf16.msra.mxu1 %v3251_v23  ;;  %v3211_v5 = vmax.f32 %v3155_v56, 0.0 }
 0x3d5   :  { %v3158_v63 = vadd.f32 %v10270_v19, %v2996_v30  ;;  %v3212_v32 = vmax.f32 %v3156_v49, 0.0 }
 0x3d6   :  { %v3213_v21 = vmax.f32 %v3157_v44, 0.0 }
 0x3d7   :  { %v3214_v35 = vmax.f32 %v3158_v63, 0.0 }
 0x3d8   :  { %v3253_v11 = vpack.c.bf16 %v3213_v21, %v3211_v5 }
 0x3d9   :  { %v3254_v2 = vpack.c.bf16 %v3214_v35, %v3212_v32  ;;  %v3000_v3 = vpop.f32.mrb[88].mxu0 }
 0x3da   :  { %v3159_v42 = vadd.f32 %v10266_v37, %v3000_v3  ;;  %v3002_v60 = vpop.f32.mrb[89].mxu0 }
 0x3db   :  { %v3160_v7 = vadd.f32 %v10270_v19, %v3002_v60  ;;  %v3004_v26 = vpop.f32.mrb[90].mxu0  ;;  %3380 = vmatprep.subr.bf16.mxu1 %v3254_v2 }
 0x3dc   :  { %v3161_v20 = vadd.f32 %v10266_v37, %v3004_v26  ;;  %v3006_v36 = vpop.f32.mrb[91].mxu0  ;;  %3381 = vmatpush1.bf16.msra.mxu1 %v3253_v11  ;;  %v3215_v16 = vmax.f32 %v3159_v42, 0.0 }
 0x3dd   :  { %v3162_v15 = vadd.f32 %v10270_v19, %v3006_v36  ;;  %v3216_v41 = vmax.f32 %v3160_v7, 0.0 }
 0x3de   :  { %v3217_v55 = vmax.f32 %v3161_v20, 0.0 }
 0x3df   :  { %v3218_v8 = vmax.f32 %v3162_v15, 0.0 }
 0x3e0   :  { %v3255_v9 = vpack.c.bf16 %v3217_v55, %v3215_v16 }
 0x3e1   :  { %v3256_v62 = vpack.c.bf16 %v3218_v8, %v3216_v41  ;;  %v3010_v46 = vpop.f32.mrb[92].mxu0 }
 0x3e2   :  { %v3163_v34 = vadd.f32 %v10266_v37, %v3010_v46  ;;  %v3012_v29 = vpop.f32.mrb[93].mxu0 }
 0x3e3   :  { %v3164_v14 = vadd.f32 %v10270_v19, %v3012_v29  ;;  %v3014_v50 = vpop.f32.mrb[94].mxu0  ;;  %3382 = vmatprep.subr.bf16.mxu1 %v3256_v62 }
 0x3e4   :  { %v3165_v17 = vadd.f32 %v10266_v37, %v3014_v50  ;;  %v3016_v33 = vpop.f32.mrb[95].mxu0  ;;  %3383 = vmatpush1.bf16.msra.mxu1 %v3255_v9  ;;  %v3219_v24 = vmax.f32 %v3163_v34, 0.0 }
 0x3e5   :  { %v3166_v6 = vadd.f32 %v10270_v19, %v3016_v33  ;;  %v3220_v31 = vmax.f32 %v3164_v14, 0.0 }
 0x3e6   :  { %v3221_v54 = vmax.f32 %v3165_v17, 0.0 }
 0x3e7   :  { %v3222_v52 = vmax.f32 %v3166_v6, 0.0 }
 0x3e8   :  { %v3257_v43 = vpack.c.bf16 %v3221_v54, %v3219_v24 }
 0x3e9   :  { %v3258_v59 = vpack.c.bf16 %v3222_v52, %v3220_v31  ;;  %v3020_v58 = vpop.f32.mrb[96].mxu0 }
 0x3ea   :  { %v3167_v57 = vadd.f32 %v10266_v37, %v3020_v58  ;;  %v3022_v4 = vpop.f32.mrb[97].mxu0  ;;  %v8679_v58 = vld [vmem:[%s11416_s4 + $0x10] ss:$8 sps:$4 sm:$0xff]  }
 0x3eb   :  { %v3168_v25 = vadd.f32 %v10270_v19, %v3022_v4  ;;  %v3024_v18 = vpop.f32.mrb[98].mxu0  ;;  %3384 = vmatprep.subr.bf16.mxu1 %v3258_v59  ;;  %v8696_v59 = vld [vmem:[%s11418_s5 + $0x8] sm:$0xff]   ;;  %v8697_v4 = vld [vmem:[%s11418_s5 + $0x10] sm:$0xff]  }
 0x3ec   :  { %v3169_v22 = vadd.f32 %v10266_v37, %v3024_v18  ;;  %v3026_v48 = vpop.f32.mrb[99].mxu0  ;;  %3385 = vmatpush1.bf16.msra.mxu1 %v3257_v43  ;;  %v3223_v40 = vmax.f32 %v3167_v57, 0.0  ;;  %v8674_v43 = vld [vmem:[%s11416_s4] ss:$8 sps:$4 sm:$0xff]   ;;  %v8680_v57 = vld [vmem:[%s11416_s4 + $0x24] ss:$8 sps:$4 sm:$0xff]  }
 0x3ed   :  { %v3170_v0 = vadd.f32 %v10270_v19, %v3026_v48  ;;  %v3224_v38 = vmax.f32 %v3168_v25, 0.0  ;;  %v8698_v25 = vld [vmem:[%s11418_s5 + $0x18] sm:$0xff]   ;;  %v8682_v18 = vld [vmem:[%s11416_s4 + $0x20] ss:$8 sps:$4 sm:$0xff]  }
 0x3ee   :  { %v3225_v27 = vmax.f32 %v3169_v22, 0.0  ;;  %v8683_v22 = vld [vmem:[%s11416_s4 + $0x34] ss:$8 sps:$4 sm:$0xff]   ;;  %v8699_v48 = vld [vmem:[%s11418_s5 + $0x20] sm:$0xff]  }
 0x3ef   :  { %v3226_v39 = vmax.f32 %v3170_v0, 0.0  ;;  %v8700_v0 = vld [vmem:[%s11418_s5 + $0x28] sm:$0xff]  }
 0x3f0   :  { %v3259_v51 = vpack.c.bf16 %v3225_v27, %v3223_v40  ;;  %v8685_v40 = vld [vmem:[%s11416_s4 + $0x30] ss:$8 sps:$4 sm:$0xff]   ;;  %v8686_v27 = vld [vmem:[%s11416_s4 + $0x44] ss:$8 sps:$4 sm:$0xff]  }
 0x3f1   :  { %v3260_v53 = vpack.c.bf16 %v3226_v39, %v3224_v38  ;;  %v3030_v23 = vpop.f32.mrb[100].mxu0  ;;  %v8701_v38 = vld [vmem:[%s11418_s5 + $0x30] sm:$0xff]   ;;  %v8702_v39 = vld [vmem:[%s11418_s5 + $0x38] sm:$0xff]  }
 0x3f2   :  { %v3171_v13 = vadd.f32 %v10266_v37, %v3030_v23  ;;  %v3032_v47 = vpop.f32.mrb[101].mxu0  ;;  %v8703_v23 = vld [vmem:[%s11418_s5 + $0x40] sm:$0xff]  }
 0x3f3   :  { %v3172_v56 = vadd.f32 %v10270_v19, %v3032_v47  ;;  %v3034_v28 = vpop.f32.mrb[102].mxu0  ;;  %3386 = vmatprep.subr.bf16.mxu1 %v3260_v53  ;;  %v8689_v53 = vld [vmem:[%s11416_s4 + $0x54] ss:$8 sps:$4 sm:$0xff]   ;;  %v8692_v47 = vld [vmem:[%s11416_s4 + $0x64] ss:$8 sps:$4 sm:$0xff]  }
 0x3f4   :  { %v3173_v49 = vadd.f32 %v10266_v37, %v3034_v28  ;;  %v3036_v12 = vpop.f32.mrb[103].mxu0  ;;  %3387 = vmatpush1.bf16.msra.mxu1 %v3259_v51  ;;  %v3227_v30 = vmax.f32 %v3171_v13, 0.0  ;;  %v8688_v51 = vld [vmem:[%s11416_s4 + $0x40] ss:$8 sps:$4 sm:$0xff]   ;;  %v8691_v13 = vld [vmem:[%s11416_s4 + $0x50] ss:$8 sps:$4 sm:$0xff]  }
 0x3f5   :  { %v3174_v44 = vadd.f32 %v10270_v19, %v3036_v12  ;;  %v3228_v5 = vmax.f32 %v3172_v56, 0.0  ;;  %v8694_v56 = vld [vmem:[%s11416_s4 + $0x60] ss:$8 sps:$4 sm:$0xff]  }
 0x3f6   :  { %v3229_v63 = vmax.f32 %v3173_v49, 0.0  ;;  %v8704_v28 = vld [vmem:[%s11418_s5 + $0x48] sm:$0xff]   ;;  %v8705_v49 = vld [vmem:[%s11418_s5 + $0x50] ss:$0 sps:$4 sm:$0xff]  }
 0x3f7   :  { %v3230_v21 = vmax.f32 %v3174_v44, 0.0  ;;  %v3591_v12 = vsel %vm3589_vm2, %v8705_v49, 0 }
 0x3f8   :  { %v3261_v32 = vpack.c.bf16 %v3229_v63, %v3227_v30 }
 0x3f9   :  { %v3262_v35 = vpack.c.bf16 %v3230_v21, %v3228_v5  ;;  %v3040_v11 = vpop.f32.mrb[104].mxu0 }
 0x3fa   :  { %v3175_v2 = vadd.f32 %v10266_v37, %v3040_v11  ;;  %v3042_v3 = vpop.f32.mrb[105].mxu0 }
 0x3fb   :  { %v3176_v42 = vadd.f32 %v10270_v19, %v3042_v3  ;;  %v3044_v60 = vpop.f32.mrb[106].mxu0  ;;  %3388 = vmatprep.subr.bf16.mxu1 %v3262_v35 }
 0x3fc   :  { %v3177_v7 = vadd.f32 %v10266_v37, %v3044_v60  ;;  %v3046_v26 = vpop.f32.mrb[107].mxu0  ;;  %3389 = vmatpush1.bf16.msra.mxu1 %v3261_v32  ;;  %v3231_v36 = vmax.f32 %v3175_v2, 0.0 }
 0x3fd   :  { %v3178_v20 = vadd.f32 %v10270_v19, %v3046_v26  ;;  %v3232_v16 = vmax.f32 %v3176_v42, 0.0 }
 0x3fe   :  { %v3233_v15 = vmax.f32 %v3177_v7, 0.0 }
 0x3ff   :  { %v3234_v55 = vmax.f32 %v3178_v20, 0.0 }
 0x400   :  { %v3263_v41 = vpack.c.bf16 %v3233_v15, %v3231_v36 }
 0x401   :  { %v3264_v8 = vpack.c.bf16 %v3234_v55, %v3232_v16  ;;  %v3050_v9 = vpop.f32.mrb[108].mxu0 }
 0x402   :  { %v3179_v62 = vadd.f32 %v10266_v37, %v3050_v9  ;;  %v3052_v46 = vpop.f32.mrb[109].mxu0 }
 0x403   :  { %v3180_v34 = vadd.f32 %v10270_v19, %v3052_v46  ;;  %v3054_v29 = vpop.f32.mrb[110].mxu0  ;;  %3390 = vmatprep.subr.bf16.mxu1 %v3264_v8 }
 0x404   :  { %v3181_v14 = vadd.f32 %v10266_v37, %v3054_v29  ;;  %v3056_v50 = vpop.f32.mrb[111].mxu0  ;;  %3391 = vmatpush1.bf16.msra.mxu1 %v3263_v41  ;;  %v3235_v33 = vmax.f32 %v3179_v62, 0.0  ;;  %v8677_v37 = vld [vmem:[%s11416_s4 + $0x14] ss:$8 sps:$4 sm:$0xff]  }
 0x405   :  { %v3182_v17 = vadd.f32 %v10270_v19, %v3056_v50  ;;  %v3236_v24 = vmax.f32 %v3180_v34, 0.0  ;;  %v8695_v19 = vld [vmem:[%s11418_s5] sm:$0xff]  }
 0x406   :  { %v3237_v6 = vmax.f32 %v3181_v14, 0.0 }
 0x407   :  { %v3238_v54 = vmax.f32 %v3182_v17, 0.0 }
 0x408   :  { %v3265_v31 = vpack.c.bf16 %v3237_v6, %v3235_v33 }
 0x409   :  { %v3266_v52 = vpack.c.bf16 %v3238_v54, %v3236_v24 }
 0x40b   :  { %3392 = vmatprep.subr.bf16.mxu1 %v3266_v52 }
 0x40c   :  { %3393 = vmatpush1.bf16.msra.mxu1 %v3265_v31 }
 0x40d   :  { %3593 = vmatprep.subr.bf16.mxu1 %v8868_v61 }
 0x40f   :  { %3399 = vmatmul.mubr.bf16.vlgmr.msra.gmra.mrb[224].mxu1 %v8674_v43 }
 0x410   :  { %6810 = vmatprep.mubr.msk.bf16.mxu1 %vm3344_vm1, %v8677_v37  ;;  %3594 = vmatpush1.bf16.msra.mxu1 %v8695_v19 }
 0x411   :  { %3595 = vmatprep.subr.bf16.mxu1 %v8868_v61 }
 0x414   :  { %3596 = vmatpush1.bf16.msra.mxu1 %v8696_v59 }
 0x415   :  { %3597 = vmatprep.subr.bf16.mxu1 %v8868_v61 }
 0x417   :  { %3409 = vmatmul.mubr.bf16.gmra.mrb[228].mxu1 %v8679_v58 }
 0x418   :  { %6811 = vmatprep.mubr.msk.bf16.mxu1 %vm3344_vm1, %v8680_v57  ;;  %3598 = vmatpush1.bf16.msra.mxu1 %v8697_v4 }
 0x419   :  { %3599 = vmatprep.subr.bf16.mxu1 %v8868_v61 }
 0x41c   :  { %3600 = vmatpush1.bf16.msra.mxu1 %v8698_v25  ;;  %v8869_v25 = vmov 0.0  }
 0x41d   :  { %3601 = vmatprep.subr.bf16.mxu1 %v8868_v61  ;;  %7869 = vmatprep.subr.bf16.mxu0 %v8869_v25 }
 0x41e   :  { %7883 = vmatprep.mubr.msk.bf16.mxu0 %vm8870_vm4, %v8869_v25 }
 0x41f   :  { %3419 = vmatmul.mubr.bf16.gmra.mrb[232].mxu1 %v8682_v18 }
 0x420   :  { %6812 = vmatprep.mubr.msk.bf16.mxu1 %vm3344_vm1, %v8683_v22  ;;  %3602 = vmatpush1.bf16.msra.mxu1 %v8699_v48 }
 0x421   :  { %3603 = vmatprep.subr.bf16.mxu1 %v8868_v61 }
 0x424   :  { %3604 = vmatpush1.bf16.msra.mxu1 %v8700_v0 }
 0x425   :  { %3605 = vmatprep.subr.bf16.mxu1 %v8868_v61 }
 0x427   :  { %3429 = vmatmul.mubr.bf16.gmra.mrb[236].mxu1 %v8685_v40 }
 0x428   :  { %6813 = vmatprep.mubr.msk.bf16.mxu1 %vm3344_vm1, %v8686_v27  ;;  %3606 = vmatpush1.bf16.msra.mxu1 %v8701_v38 }
 0x429   :  { %3607 = vmatprep.subr.bf16.mxu1 %v8868_v61 }
 0x42c   :  { %3608 = vmatpush1.bf16.msra.mxu1 %v8702_v39 }
 0x42d   :  { %3609 = vmatprep.subr.bf16.mxu1 %v8868_v61 }
 0x42f   :  { %3439 = vmatmul.mubr.bf16.gmra.mrb[240].mxu1 %v8688_v51 }
 0x430   :  { %6814 = vmatprep.mubr.msk.bf16.mxu1 %vm3344_vm1, %v8689_v53  ;;  %3610 = vmatpush1.bf16.msra.mxu1 %v8703_v23 }
 0x431   :  { %3611 = vmatprep.subr.bf16.mxu1 %v8868_v61 }
 0x434   :  { %3612 = vmatpush1.bf16.msra.mxu1 %v8704_v28 }
 0x435   :  { %3613 = vmatprep.subr.bf16.mxu1 %v8868_v61 }
 0x437   :  { %3449 = vmatmul.mubr.bf16.gmra.mrb[244].mxu1 %v8691_v13 }
 0x438   :  { %6815 = vmatprep.mubr.msk.bf16.mxu1 %vm3344_vm1, %v8692_v47  ;;  %3614 = vmatpush1.bf16.msra.mxu1 %v3591_v12 }
 0x439   :  { %7801 = vmatprep.subr.bf16.mxu1 %v8869_v25 }
 0x43f   :  { %3459 = vmatmul.mubr.bf16.gmra.mrb[248].mxu1 %v8694_v56 }
 0x4e2   :  { %v3400_v44 = vpop.f32.mrb[224].mxu1 }
 0x4e3   :  { %v3402_v30 = vpop.f32.mrb[225].mxu1 }
 0x4e4   :  { %v3404_v63 = vpop.f32.mrb[226].mxu1 }
 0x4e5   :  { %v3469_v5 = vpack.c.bf16 %v3404_v63, %v3400_v44  ;;  %v3406_v21 = vpop.f32.mrb[227].mxu1 }
 0x4e6   :  { %v3470_v32 = vpack.c.bf16 %v3406_v21, %v3402_v30 }
 0x4e8   :  { %6827 = vmatprep.mubr.msk.bf16.mxu1 %vm3567_vm3, %v3470_v32 }
 0x4e9   :  { %3626 = vmatmul.mubr.bf16.vlgmr.msra.gmra.mrb[252].mxu1 %v3469_v5 }
 0x4ea   :  { %v3410_v35 = vpop.f32.mrb[228].mxu1 }
 0x4eb   :  { %v3412_v11 = vpop.f32.mrb[229].mxu1 }
 0x4ec   :  { %v3414_v2 = vpop.f32.mrb[230].mxu1 }
 0x4ed   :  { %v3471_v3 = vpack.c.bf16 %v3414_v2, %v3410_v35  ;;  %v3416_v42 = vpop.f32.mrb[231].mxu1 }
 0x4ee   :  { %v3472_v60 = vpack.c.bf16 %v3416_v42, %v3412_v11 }
 0x4f0   :  { %6828 = vmatprep.mubr.msk.bf16.mxu1 %vm3567_vm3, %v3472_v60 }
 0x4f1   :  { %3634 = vmatmul.mubr.bf16.gmra.mrb[0].mxu1 %v3471_v3 }
 0x4f2   :  { %v3420_v7 = vpop.f32.mrb[232].mxu1 }
 0x4f3   :  { %v3422_v26 = vpop.f32.mrb[233].mxu1 }
 0x4f4   :  { %v3424_v20 = vpop.f32.mrb[234].mxu1 }
 0x4f5   :  { %v3473_v36 = vpack.c.bf16 %v3424_v20, %v3420_v7  ;;  %v3426_v15 = vpop.f32.mrb[235].mxu1 }
 0x4f6   :  { %v3474_v16 = vpack.c.bf16 %v3426_v15, %v3422_v26 }
 0x4f8   :  { %6829 = vmatprep.mubr.msk.bf16.mxu1 %vm3567_vm3, %v3474_v16 }
 0x4f9   :  { %3642 = vmatmul.mubr.bf16.gmra.mrb[4].mxu1 %v3473_v36 }
 0x4fa   :  { %v3430_v55 = vpop.f32.mrb[236].mxu1 }
 0x4fb   :  { %v3432_v41 = vpop.f32.mrb[237].mxu1 }
 0x4fc   :  { %v3434_v8 = vpop.f32.mrb[238].mxu1 }
 0x4fd   :  { %v3475_v9 = vpack.c.bf16 %v3434_v8, %v3430_v55  ;;  %v3436_v62 = vpop.f32.mrb[239].mxu1  ;;  %v8706_v55 = vld [vmem:[%s11419_s6] sm:$0xff]   ;;  %v8708_v8 = vld [vmem:[%s11419_s6 + $0x8] sm:$0xff]  }
 0x4fe   :  { %v3476_v46 = vpack.c.bf16 %v3436_v62, %v3432_v41  ;;  %v8707_v41 = vld [vmem:[%s11419_s6 + $0x50] sm:$0xff]  }
 0x4ff   :  { %v8710_v62 = vld [vmem:[%s11419_s6 + $0x10] sm:$0xff]  }
 0x500   :  { %6830 = vmatprep.mubr.msk.bf16.mxu1 %vm3567_vm3, %v3476_v46  ;;  %v8711_v46 = vld [vmem:[%s11419_s6 + $0x60] sm:$0xff]  }
 0x501   :  { %3650 = vmatmul.mubr.bf16.gmra.mrb[8].mxu1 %v3475_v9  ;;  %v8709_v9 = vld [vmem:[%s11419_s6 + $0x58] sm:$0xff]  }
 0x502   :  { %v3440_v34 = vpop.f32.mrb[240].mxu1 }
 0x503   :  { %v3442_v29 = vpop.f32.mrb[241].mxu1 }
 0x504   :  { %v3444_v14 = vpop.f32.mrb[242].mxu1 }
 0x505   :  { %v3477_v50 = vpack.c.bf16 %v3444_v14, %v3440_v34  ;;  %v3446_v17 = vpop.f32.mrb[243].mxu1  ;;  %v8712_v34 = vld [vmem:[%s11419_s6 + $0x18] sm:$0xff]   ;;  %v8714_v14 = vld [vmem:[%s11419_s6 + $0x20] sm:$0xff]  }
 0x506   :  { %v3478_v33 = vpack.c.bf16 %v3446_v17, %v3442_v29  ;;  %v8713_v29 = vld [vmem:[%s11419_s6 + $0x68] sm:$0xff]  }
 0x507   :  { %v8716_v17 = vld [vmem:[%s11419_s6 + $0x28] sm:$0xff]  }
 0x508   :  { %6831 = vmatprep.mubr.msk.bf16.mxu1 %vm3567_vm3, %v3478_v33  ;;  %v8717_v33 = vld [vmem:[%s11419_s6 + $0x78] sm:$0xff]  }
 0x509   :  { %3658 = vmatmul.mubr.bf16.gmra.mrb[12].mxu1 %v3477_v50  ;;  %v8715_v50 = vld [vmem:[%s11419_s6 + $0x70] sm:$0xff]  }
 0x50a   :  { %v3450_v6 = vpop.f32.mrb[244].mxu1 }
 0x50b   :  { %v3452_v24 = vpop.f32.mrb[245].mxu1 }
 0x50c   :  { %v3454_v54 = vpop.f32.mrb[246].mxu1 }
 0x50d   :  { %v3479_v31 = vpack.c.bf16 %v3454_v54, %v3450_v6  ;;  %v3456_v52 = vpop.f32.mrb[247].mxu1  ;;  %v8718_v6 = vld [vmem:[%s11419_s6 + $0x30] sm:$0xff]   ;;  %v8719_v54 = vld [vmem:[%s11419_s6 + $0x38] sm:$0xff]  }
 0x50e   :  { %v3480_v43 = vpack.c.bf16 %v3456_v52, %v3452_v24  ;;  %v8722_v24 = vld [vmem:[%s11419_s6 + $0x80] sm:$0xff]  }
 0x50f   :  { %v8720_v52 = vld [vmem:[%s11419_s6 + $0x40] sm:$0xff]  }
 0x510   :  { %6832 = vmatprep.mubr.msk.bf16.mxu1 %vm3567_vm3, %v3480_v43  ;;  %v8724_v43 = vld [vmem:[%s11419_s6 + $0x90] sm:$0xff]  }
 0x511   :  { %3666 = vmatmul.mubr.bf16.gmra.mrb[16].mxu1 %v3479_v31  ;;  %v8723_v31 = vld [vmem:[%s11419_s6 + $0x88] sm:$0xff]  }
 0x512   :  { %v3460_v37 = vpop.f32.mrb[248].mxu1 }
 0x513   :  { %v3462_v19 = vpop.f32.mrb[249].mxu1 }
 0x514   :  { %v3464_v59 = vpop.f32.mrb[250].mxu1 }
 0x515   :  { %v3481_v58 = vpack.c.bf16 %v3464_v59, %v3460_v37  ;;  %v3466_v57 = vpop.f32.mrb[251].mxu1  ;;  %v8721_v37 = vld [vmem:[%s11419_s6 + $0x48] sm:$0xff]   ;;  %v8726_v59 = vld [vmem:[%s11419_s6 + $0xa0] sm:$0xff]  }
 0x516   :  { %v3482_v4 = vpack.c.bf16 %v3466_v57, %v3462_v19  ;;  %v8725_v19 = vld [vmem:[%s11419_s6 + $0x98] sm:$0xff]   ;;  %v8728_v57 = vld [vmem:[%s11419_s6 + $0xb0] sm:$0xff]  }
 0x518   :  { %6833 = vmatprep.mubr.msk.bf16.mxu1 %vm3567_vm3, %v3482_v4  ;;  %v8729_v4 = vld [vmem:[%s11419_s6 + $0xb8] sm:$0xff]  }
 0x519   :  { %3674 = vmatmul.mubr.bf16.gmra.mrb[20].mxu1 %v3481_v58  ;;  %v8727_v58 = vld [vmem:[%s11419_s6 + $0xa8] sm:$0xff]  }
 0x51a   :  { %7815 = vmatprep.mubr.msk.bf16.mxu1 %vm8870_vm4, %v8869_v25 }
 0x5bc   :  { %v3627_v18 = vpop.f32.mrb[252].mxu1 }
 0x5bd   :  { %v3629_v22 = vpop.f32.mrb[253].mxu1 }
 0x5be   :  { %v3630_v48 = vpop.f32.mrb[254].mxu1  ;;  %v8733_v22 = vld [vmem:[%s11420_s7 + $0x5c] ss:$8 sps:$4 sm:$0xff]  }
 0x5bf   :  { %v10431_v0 = vpack.c.bf16 %v3630_v48, %v3627_v18  ;;  %v3632_v40 = vpop.f32.mrb[255].mxu1  ;;  %v8731_v18 = vld [vmem:[%s11420_s7 + $0x58] ss:$8 sps:$4 sm:$0xff]  }
 0x5c0   :  { %v8730_v48 = vld [vmem:[%s11419_s6 + $0xc0] sm:$0xff]   ;;  %v8734_v40 = vld [vmem:[%s11420_s7 + $0x68] ss:$8 sps:$4 sm:$0xff]  }
 0x5c1   :  { %7802 = vmatpush3.bf16.msra.mxu1 %v10431_v0  ;;  %7870 = vmatpush3.bf16.msra.mxu0 %v10431_v0 }
 0x5c2   :  { %7803 = vmatprep.subr.bf16.mxu1 %v8869_v25  ;;  %7871 = vmatprep.subr.bf16.mxu0 %v8869_v25 }
 0x5c4   :  { %v3635_v27 = vpop.f32.mrb[0].mxu1 }
 0x5c5   :  { %v3637_v38 = vpop.f32.mrb[1].mxu1 }
 0x5c6   :  { %v3638_v39 = vpop.f32.mrb[2].mxu1  ;;  %v8739_v38 = vld [vmem:[%s11420_s7 + $0x7c] ss:$8 sps:$4 sm:$0xff]  }
 0x5c7   :  { %v10437_v51 = vpack.c.bf16 %v3638_v39, %v3635_v27  ;;  %v3640_v53 = vpop.f32.mrb[3].mxu1  ;;  %v8737_v27 = vld [vmem:[%s11420_s7 + $0x78] ss:$8 sps:$4 sm:$0xff]   ;;  %v8742_v39 = vld [vmem:[%s11420_s7 + $0x8c] ss:$8 sps:$4 sm:$0xff]  }
 0x5c8   :  { %v8743_v53 = vld [vmem:[%s11420_s7 + $0x98] ss:$8 sps:$4 sm:$0xff]  }
 0x5c9   :  { %7804 = vmatpush3.bf16.msra.mxu1 %v10437_v51  ;;  %7872 = vmatpush3.bf16.msra.mxu0 %v10437_v51 }
 0x5ca   :  { %7805 = vmatprep.subr.bf16.mxu1 %v8869_v25  ;;  %7873 = vmatprep.subr.bf16.mxu0 %v8869_v25 }
 0x5cc   :  { %v3643_v23 = vpop.f32.mrb[4].mxu1 }
 0x5cd   :  { %v3645_v13 = vpop.f32.mrb[5].mxu1 }
 0x5ce   :  { %v3646_v47 = vpop.f32.mrb[6].mxu1  ;;  %v6874_v13 = vld [vmem:[%s11420_s7 + $0xa8] sm:$0x33] }
 0x5cf   :  { %v10443_v56 = vpack.c.bf16 %v3646_v47, %v3643_v23  ;;  %v3648_v28 = vpop.f32.mrb[7].mxu1  ;;  %v8745_v23 = vld [vmem:[%s11420_s7 + $0x9c] ss:$8 sps:$4 sm:$0xff]   ;;  %v6886_v47 = vcombine.high %v6874_v13, %v6874_v13 }
 0x5d1   :  { %7806 = vmatpush3.bf16.msra.mxu1 %v10443_v56  ;;  %7874 = vmatpush3.bf16.msra.mxu0 %v10443_v56 }
 0x5d2   :  { %7807 = vmatprep.subr.bf16.mxu1 %v8869_v25  ;;  %7875 = vmatprep.subr.bf16.mxu0 %v8869_v25 }
 0x5d4   :  { %v3651_v49 = vpop.f32.mrb[8].mxu1 }
 0x5d5   :  { %v3653_v12 = vpop.f32.mrb[9].mxu1 }
 0x5d6   :  { %v3654_v44 = vpop.f32.mrb[10].mxu1 }
 0x5d7   :  { %v10449_v30 = vpack.c.bf16 %v3654_v44, %v3651_v49  ;;  %v3656_v63 = vpop.f32.mrb[11].mxu1  ;;  %v8750_v49 = vld [vmem:[%s11420_s7 + $0x4] ss:$8 sps:$4 sm:$0xff]  }
 0x5d9   :  { %7808 = vmatpush3.bf16.msra.mxu1 %v10449_v30  ;;  %7876 = vmatpush3.bf16.msra.mxu0 %v10449_v30 }
 0x5da   :  { %7809 = vmatprep.subr.bf16.mxu1 %v8869_v25  ;;  %7877 = vmatprep.subr.bf16.mxu0 %v8869_v25 }
 0x5dc   :  { %v3659_v5 = vpop.f32.mrb[12].mxu1 }
 0x5dd   :  { %v3661_v21 = vpop.f32.mrb[13].mxu1 }
 0x5de   :  { %v3662_v32 = vpop.f32.mrb[14].mxu1 }
 0x5df   :  { %v10455_v35 = vpack.c.bf16 %v3662_v32, %v3659_v5  ;;  %v3664_v11 = vpop.f32.mrb[15].mxu1 }
 0x5e1   :  { %7810 = vmatpush3.bf16.msra.mxu1 %v10455_v35  ;;  %7878 = vmatpush3.bf16.msra.mxu0 %v10455_v35 }
 0x5e2   :  { %7811 = vmatprep.subr.bf16.mxu1 %v8869_v25  ;;  %7879 = vmatprep.subr.bf16.mxu0 %v8869_v25 }
 0x5e4   :  { %v3667_v2 = vpop.f32.mrb[16].mxu1 }
 0x5e5   :  { %v3669_v3 = vpop.f32.mrb[17].mxu1 }
 0x5e6   :  { %v3670_v42 = vpop.f32.mrb[18].mxu1 }
 0x5e7   :  { %v10461_v60 = vpack.c.bf16 %v3670_v42, %v3667_v2  ;;  %v3672_v7 = vpop.f32.mrb[19].mxu1 }
 0x5e9   :  { %7812 = vmatpush3.bf16.msra.mxu1 %v10461_v60  ;;  %7880 = vmatpush3.bf16.msra.mxu0 %v10461_v60 }
 0x5ea   :  { %7813 = vmatprep.subr.bf16.mxu1 %v8869_v25  ;;  %7881 = vmatprep.subr.bf16.mxu0 %v8869_v25 }
 0x5ec   :  { %v3675_v26 = vpop.f32.mrb[20].mxu1 }
 0x5ed   :  { %v3677_v20 = vpop.f32.mrb[21].mxu1 }
 0x5ee   :  { %v3678_v36 = vpop.f32.mrb[22].mxu1 }
 0x5ef   :  { %v10467_v15 = vpack.c.bf16 %v3678_v36, %v3675_v26  ;;  %v3680_v16 = vpop.f32.mrb[23].mxu1 }
 0x5f1   :  { %7814 = vmatpush3.bf16.msra.mxu1 %v10467_v15  ;;  %7882 = vmatpush3.bf16.msra.mxu0 %v10467_v15 }
 0x5f2   :  { %7835 = vmatprep.subr.bf16.mxu1 %v8869_v25  ;;  %7903 = vmatprep.subr.bf16.mxu0 %v8869_v25 }
 0x5f4   :  { %7816 = vmatmul.mubr.msk.bf16.vlgmr.msra.gmra.mrb[24].mxu1 %vm3724_vm5, %v8706_v55  ;;  %7884 = vmatmul.mubr.msk.bf16.vlgmr.msra.gmra.mrb[112].mxu0 %vm3724_vm5, %v8707_v41 }
 0x5f5   :  { %7836 = vmatpush3.bf16.msra.mxu1 %v10431_v0  ;;  %7904 = vmatpush3.bf16.msra.mxu0 %v10431_v0 }
 0x5f6   :  { %7837 = vmatprep.subr.bf16.mxu1 %v8869_v25  ;;  %7905 = vmatprep.subr.bf16.mxu0 %v8869_v25 }
 0x5f7   :  { %7819 = vmatprep.mubr.msk.bf16.mxu1 %vm8870_vm4, %v8869_v25  ;;  %7887 = vmatprep.mubr.msk.bf16.mxu0 %vm8870_vm4, %v8869_v25 }
 0x5f9   :  { %7838 = vmatpush3.bf16.msra.mxu1 %v10437_v51  ;;  %7906 = vmatpush3.bf16.msra.mxu0 %v10437_v51 }
 0x5fa   :  { %7839 = vmatprep.subr.bf16.mxu1 %v8869_v25  ;;  %7907 = vmatprep.subr.bf16.mxu0 %v8869_v25 }
 0x5fc   :  { %7820 = vmatmul.mubr.msk.bf16.gmra.mrb[28].mxu1 %vm3724_vm5, %v8708_v8  ;;  %7888 = vmatmul.mubr.msk.bf16.gmra.mrb[116].mxu0 %vm3724_vm5, %v8709_v9 }
 0x5fd   :  { %7840 = vmatpush3.bf16.msra.mxu1 %v10443_v56  ;;  %7908 = vmatpush3.bf16.msra.mxu0 %v10443_v56 }
 0x5fe   :  { %7841 = vmatprep.subr.bf16.mxu1 %v8869_v25  ;;  %7909 = vmatprep.subr.bf16.mxu0 %v8869_v25 }
 0x5ff   :  { %7823 = vmatprep.mubr.msk.bf16.mxu1 %vm8870_vm4, %v8869_v25  ;;  %7891 = vmatprep.mubr.msk.bf16.mxu0 %vm8870_vm4, %v8869_v25 }
 0x601   :  { %7842 = vmatpush3.bf16.msra.mxu1 %v10449_v30  ;;  %7910 = vmatpush3.bf16.msra.mxu0 %v10449_v30 }
 0x602   :  { %7843 = vmatprep.subr.bf16.mxu1 %v8869_v25  ;;  %7911 = vmatprep.subr.bf16.mxu0 %v8869_v25 }
 0x604   :  { %7824 = vmatmul.mubr.msk.bf16.gmra.mrb[32].mxu1 %vm3724_vm5, %v8710_v62  ;;  %7892 = vmatmul.mubr.msk.bf16.gmra.mrb[120].mxu0 %vm3724_vm5, %v8711_v46 }
 0x605   :  { %7844 = vmatpush3.bf16.msra.mxu1 %v10455_v35  ;;  %7912 = vmatpush3.bf16.msra.mxu0 %v10455_v35 }
 0x606   :  { %7845 = vmatprep.subr.bf16.mxu1 %v8869_v25  ;;  %7913 = vmatprep.subr.bf16.mxu0 %v8869_v25 }
 0x607   :  { %7827 = vmatprep.mubr.msk.bf16.mxu1 %vm8870_vm4, %v8869_v25  ;;  %7895 = vmatprep.mubr.msk.bf16.mxu0 %vm8870_vm4, %v8869_v25 }
 0x609   :  { %7846 = vmatpush3.bf16.msra.mxu1 %v10461_v60  ;;  %7914 = vmatpush3.bf16.msra.mxu0 %v10461_v60 }
 0x60a   :  { %7847 = vmatprep.subr.bf16.mxu1 %v8869_v25  ;;  %7915 = vmatprep.subr.bf16.mxu0 %v8869_v25 }
 0x60c   :  { %7828 = vmatmul.mubr.msk.bf16.gmra.mrb[36].mxu1 %vm3724_vm5, %v8712_v34  ;;  %7896 = vmatmul.mubr.msk.bf16.gmra.mrb[124].mxu0 %vm3724_vm5, %v8713_v29 }
 0x60d   :  { %7848 = vmatpush3.bf16.msra.mxu1 %v10467_v15  ;;  %7916 = vmatpush3.bf16.msra.mxu0 %v10467_v15 }
 0x60e   :  { %7831 = vmatprep.mubr.msk.bf16.mxu1 %vm8870_vm4, %v8869_v25  ;;  %7899 = vmatprep.mubr.msk.bf16.mxu0 %vm8870_vm4, %v8869_v25 }
 0x60f   :  { %7937 = vmatprep.subr.bf16.mxu0 %v8869_v25  ;;  %4048 = vmatprep.subr.bf16.mxu1 %v8733_v22 }
 0x614   :  { %7832 = vmatmul.mubr.msk.bf16.gmra.mrb[40].mxu1 %vm3724_vm5, %v8714_v14  ;;  %7900 = vmatmul.mubr.msk.bf16.gmra.mrb[128].mxu0 %vm3724_vm5, %v8715_v50 }
 0x615   :  { %7849 = vmatprep.mubr.msk.bf16.mxu1 %vm8870_vm4, %v8869_v25  ;;  %7917 = vmatprep.mubr.msk.bf16.mxu0 %vm8870_vm4, %v8869_v25 }
 0x61c   :  { %7850 = vmatmul.mubr.msk.bf16.vlgmr.msra.gmra.mrb[44].mxu1 %vm3724_vm5, %v8716_v17  ;;  %7918 = vmatmul.mubr.msk.bf16.vlgmr.msra.gmra.mrb[132].mxu0 %vm3724_vm5, %v8717_v33 }
 0x61d   :  { %7938 = vmatpush3.bf16.msra.mxu0 %v10431_v0  ;;  %7853 = vmatprep.mubr.msk.bf16.mxu1 %vm8870_vm4, %v8869_v25  ;;  %v8736_v0 = vld [vmem:[%s11420_s7 + $0x6c] ss:$8 sps:$4 sm:$0xff]  }
 0x61e   :  { %7939 = vmatprep.subr.bf16.mxu0 %v8869_v25  ;;  %7921 = vmatprep.mubr.msk.bf16.mxu0 %vm8870_vm4, %v8869_v25 }
 0x61f   :  { %4049 = vmatpush1.bf16.msra.mxu1 %v8731_v18 }
 0x620   :  { %4050 = vmatprep.subr.bf16.mxu1 %v8736_v0 }
 0x621   :  { %7940 = vmatpush3.bf16.msra.mxu0 %v10437_v51  ;;  %v8740_v51 = vld [vmem:[%s11420_s7 + $0x88] ss:$8 sps:$4 sm:$0xff]  }
 0x622   :  { %7941 = vmatprep.subr.bf16.mxu0 %v8869_v25 }
 0x623   :  { %4051 = vmatpush1.bf16.msra.mxu1 %v8734_v40 }
 0x624   :  { %7854 = vmatmul.mubr.msk.bf16.gmra.mrb[48].mxu1 %vm3724_vm5, %v8718_v6  ;;  %7922 = vmatmul.mubr.msk.bf16.gmra.mrb[136].mxu0 %vm3724_vm5, %v8722_v24 }
 0x625   :  { %7942 = vmatpush3.bf16.msra.mxu0 %v10443_v56  ;;  %7857 = vmatprep.mubr.msk.bf16.mxu1 %vm8870_vm4, %v8869_v25  ;;  %v6885_v56 = vcombine.low %v6874_v13, %v6874_v13 }
 0x626   :  { %7943 = vmatprep.subr.bf16.mxu0 %v8869_v25  ;;  %7925 = vmatprep.mubr.msk.bf16.mxu0 %vm8870_vm4, %v8869_v25 }
 0x627   :  { %4052 = vmatprep.subr.bf16.mxu1 %v8739_v38  ;;  %v4043_v28 = vsel %vm4041_vm6, %v6885_v56, 0 }
 0x628   :  { %4053 = vmatpush1.bf16.msra.mxu1 %v8737_v27 }
 0x629   :  { %7944 = vmatpush3.bf16.msra.mxu0 %v10449_v30  ;;  %4054 = vmatprep.subr.bf16.mxu1 %v8742_v39 }
 0x62a   :  { %7945 = vmatprep.subr.bf16.mxu0 %v8869_v25 }
 0x62c   :  { %7858 = vmatmul.mubr.msk.bf16.gmra.mrb[52].mxu1 %vm3724_vm5, %v8719_v54  ;;  %7926 = vmatmul.mubr.msk.bf16.gmra.mrb[140].mxu0 %vm3724_vm5, %v8723_v31 }
 0x62d   :  { %7946 = vmatpush3.bf16.msra.mxu0 %v10455_v35  ;;  %7861 = vmatprep.mubr.msk.bf16.mxu1 %vm8870_vm4, %v8869_v25 }
 0x62e   :  { %7947 = vmatprep.subr.bf16.mxu0 %v8869_v25  ;;  %7929 = vmatprep.mubr.msk.bf16.mxu0 %vm8870_vm4, %v8869_v25 }
 0x62f   :  { %4055 = vmatpush1.bf16.msra.mxu1 %v8740_v51 }
 0x630   :  { %4056 = vmatprep.subr.bf16.mxu1 %v8745_v23 }
 0x631   :  { %7948 = vmatpush3.bf16.msra.mxu0 %v10461_v60 }
 0x632   :  { %7949 = vmatprep.subr.bf16.mxu0 %v8869_v25 }
 0x633   :  { %4057 = vmatpush1.bf16.msra.mxu1 %v8743_v53 }
 0x634   :  { %7862 = vmatmul.mubr.msk.bf16.gmra.mrb[56].mxu1 %vm3724_vm5, %v8720_v52  ;;  %7930 = vmatmul.mubr.msk.bf16.gmra.mrb[144].mxu0 %vm3724_vm5, %v8724_v43 }
 0x635   :  { %7950 = vmatpush3.bf16.msra.mxu0 %v10467_v15  ;;  %7865 = vmatprep.mubr.msk.bf16.mxu1 %vm8870_vm4, %v8869_v25 }
 0x636   :  { %7933 = vmatprep.mubr.msk.bf16.mxu0 %vm8870_vm4, %v8869_v25  ;;  %6887 = vmatprep.subr.msk.bf16.mxu1 %vm4041_vm6, %v6886_v47  ;;  %v8748_v47 = vld [vmem:[%s11420_s7] ss:$8 sps:$4 sm:$0xff]  }
 0x637   :  { %4059 = vmatpush1.bf16.msra.mxu1 %v4043_v28 }
 0x638   :  { %4207 = vmatprep.subr.bf16.mxu1 %v8750_v49 }
 0x63c   :  { %7866 = vmatmul.mubr.msk.bf16.gmra.mrb[60].mxu1 %vm3724_vm5, %v8721_v37  ;;  %7934 = vmatmul.mubr.msk.bf16.gmra.mrb[148].mxu0 %vm3724_vm5, %v8725_v19 }
 0x63d   :  { %7951 = vmatprep.mubr.msk.bf16.mxu0 %vm8870_vm4, %v8869_v25  ;;  %4080 = vmatprep.mubr.bf16.mxu1 %v8868_v61 }
 0x644   :  { %7952 = vmatmul.mubr.msk.bf16.vlgmr.msra.gmra.mrb[152].mxu0 %vm3724_vm5, %v8726_v59 }
 0x645   :  { %7955 = vmatprep.mubr.msk.bf16.mxu0 %vm8870_vm4, %v8869_v25 }
 0x64c   :  { %7956 = vmatmul.mubr.msk.bf16.gmra.mrb[156].mxu0 %vm3724_vm5, %v8727_v58 }
 0x64d   :  { %7959 = vmatprep.mubr.msk.bf16.mxu0 %vm8870_vm4, %v8869_v25 }
 0x654   :  { %7960 = vmatmul.mubr.msk.bf16.gmra.mrb[160].mxu0 %vm3724_vm5, %v8728_v57 }
 0x655   :  { %7963 = vmatprep.mubr.msk.bf16.mxu0 %vm8870_vm4, %v8869_v25 }
 0x65c   :  { %7964 = vmatmul.mubr.msk.bf16.gmra.mrb[164].mxu0 %vm3724_vm5, %v8729_v4 }
 0x65d   :  { %7967 = vmatprep.mubr.msk.bf16.mxu0 %vm8870_vm4, %v8869_v25 }
 0x664   :  { %7968 = vmatmul.mubr.msk.bf16.gmra.mrb[168].mxu0 %vm3724_vm5, %v8730_v48 }
 0x665   :  { %5372 = vmatprep.mubr.bf16.mxu0 %v8868_v61 }
 0x6c7   :  { %v10699_v12 = vpop.f32.mrb[24].mxu1  ;;  %v10701_v44 = vpop.f32.mrb[112].mxu0 }
 0x6c8   :  { %v7817_v30 = vpop.f32.mrb[25].mxu1  ;;  %v7885_v63 = vpop.f32.mrb[113].mxu0 }
 0x6c9   :  { %v10703_v5 = vpop.f32.mrb[26].mxu1  ;;  %v10705_v21 = vpop.f32.mrb[114].mxu0  ;;  %v8753_v30 = vld [vmem:[%s11420_s7 + $0x14] ss:$8 sps:$4 sm:$0xff]  }
 0x6ca   :  { %v3813_v32 = vpack.c.bf16 %v10703_v5, %v10699_v12  ;;  %v7818_v35 = vpop.f32.mrb[27].mxu1  ;;  %v4414_v11 = vpack.c.bf16 %v10705_v21, %v10701_v44  ;;  %v7886_v2 = vpop.f32.mrb[115].mxu0  ;;  %v8771_v12 = vld [vmem:[%s11420_s7 + $0xd0] ss:$8 sps:$4 sm:$0xff]   ;;  %v8793_v44 = vld [vmem:[%s11420_s7 + $0x13c] ss:$8 sps:$4 sm:$0xff]  }
 0x6cb   :  { %v8751_v2 = vld [vmem:[%s11420_s7 + $0x10] ss:$8 sps:$4 sm:$0xff]  }
 0x6cc   :  { %v8791_v21 = vld [vmem:[%s11420_s7 + $0x138] ss:$8 sps:$4 sm:$0xff]  }
 0x6cf   :  { %v10711_v3 = vpop.f32.mrb[28].mxu1  ;;  %v10713_v42 = vpop.f32.mrb[116].mxu0 }
 0x6d0   :  { %v7821_v60 = vpop.f32.mrb[29].mxu1  ;;  %v7889_v7 = vpop.f32.mrb[117].mxu0 }
 0x6d1   :  { %v10715_v26 = vpop.f32.mrb[30].mxu1  ;;  %v10717_v20 = vpop.f32.mrb[118].mxu0  ;;  %v8756_v60 = vld [vmem:[%s11420_s7 + $0x24] ss:$8 sps:$4 sm:$0xff]  }
 0x6d2   :  { %v3814_v36 = vpack.c.bf16 %v10715_v26, %v10711_v3  ;;  %v7822_v15 = vpop.f32.mrb[31].mxu1  ;;  %v4415_v16 = vpack.c.bf16 %v10717_v20, %v10713_v42  ;;  %v7890_v55 = vpop.f32.mrb[119].mxu0  ;;  %v8777_v26 = vld [vmem:[%s11420_s7 + $0xf0] ss:$8 sps:$4 sm:$0xff]  }
 0x6d3   :  { %v8794_v42 = vld [vmem:[%s11420_s7 + $0x148] ss:$8 sps:$4 sm:$0xff]  }
 0x6d7   :  { %v10723_v41 = vpop.f32.mrb[32].mxu1  ;;  %v10725_v8 = vpop.f32.mrb[120].mxu0 }
 0x6d8   :  { %v7825_v9 = vpop.f32.mrb[33].mxu1  ;;  %v7893_v62 = vpop.f32.mrb[121].mxu0 }
 0x6d9   :  { %v10727_v46 = vpop.f32.mrb[34].mxu1  ;;  %v10729_v34 = vpop.f32.mrb[122].mxu0 }
 0x6da   :  { %v3815_v29 = vpack.c.bf16 %v10727_v46, %v10723_v41  ;;  %v7826_v14 = vpop.f32.mrb[35].mxu1  ;;  %v4416_v50 = vpack.c.bf16 %v10729_v34, %v10725_v8  ;;  %v7894_v17 = vpop.f32.mrb[123].mxu0  ;;  %v8799_v8 = vld [vmem:[%s11420_s7 + $0x160] ss:$8 sps:$4 sm:$0xff]   ;;  %v8804_v34 = vld [vmem:[%s11420_s7 + $0x174] ss:$8 sps:$4 sm:$0xff]  }
 0x6db   :  { %v8754_v14 = vld [vmem:[%s11420_s7 + $0x20] ss:$8 sps:$4 sm:$0xff]  }
 0x6df   :  { %v10735_v33 = vpop.f32.mrb[36].mxu1  ;;  %v10737_v6 = vpop.f32.mrb[124].mxu0 }
 0x6e0   :  { %v7829_v24 = vpop.f32.mrb[37].mxu1  ;;  %v7897_v54 = vpop.f32.mrb[125].mxu0 }
 0x6e1   :  { %v10739_v31 = vpop.f32.mrb[38].mxu1  ;;  %v10741_v52 = vpop.f32.mrb[126].mxu0 }
 0x6e2   :  { %v3816_v43 = vpack.c.bf16 %v10739_v31, %v10735_v33  ;;  %v7830_v37 = vpop.f32.mrb[39].mxu1  ;;  %v4417_v19 = vpack.c.bf16 %v10741_v52, %v10737_v6  ;;  %v7898_v59 = vpop.f32.mrb[127].mxu0  ;;  %v8782_v33 = vld [vmem:[%s11420_s7 + $0x108] ss:$8 sps:$4 sm:$0xff]   ;;  %v8787_v31 = vld [vmem:[%s11420_s7 + $0x11c] ss:$8 sps:$4 sm:$0xff]  }
 0x6e3   :  { %v8759_v37 = vld [vmem:[%s11420_s7 + $0x34] ss:$8 sps:$4 sm:$0xff]   ;;  %v8807_v6 = vld [vmem:[%s11420_s7 + $0x184] ss:$8 sps:$4 sm:$0xff]   ;;  %v8805_v52 = vld [vmem:[%s11420_s7 + $0x180] ss:$8 sps:$4 sm:$0xff]  }
 0x6e7   :  { %v10747_v58 = vpop.f32.mrb[40].mxu1  ;;  %v10749_v57 = vpop.f32.mrb[128].mxu0 }
 0x6e8   :  { %v7833_v4 = vpop.f32.mrb[41].mxu1  ;;  %v7901_v18 = vpop.f32.mrb[129].mxu0 }
 0x6e9   :  { %v10751_v22 = vpop.f32.mrb[42].mxu1  ;;  %v10753_v48 = vpop.f32.mrb[130].mxu0  ;;  %v8757_v18 = vld [vmem:[%s11420_s7 + $0x30] ss:$8 sps:$4 sm:$0xff]  }
 0x6ea   :  { %v3817_v0 = vpack.c.bf16 %v10751_v22, %v10747_v58  ;;  %v7834_v40 = vpop.f32.mrb[43].mxu1  ;;  %v4418_v27 = vpack.c.bf16 %v10753_v48, %v10749_v57  ;;  %v7902_v38 = vpop.f32.mrb[131].mxu0  ;;  %v8790_v58 = vld [vmem:[%s11420_s7 + $0x12c] ss:$8 sps:$4 sm:$0xff]   ;;  %v8788_v22 = vld [vmem:[%s11420_s7 + $0x128] ss:$8 sps:$4 sm:$0xff]  }
 0x6eb   :  { %v8762_v40 = vld [vmem:[%s11420_s7 + $0x44] ss:$8 sps:$4 sm:$0xff]   ;;  %v8808_v57 = vld [vmem:[%s11420_s7 + $0x190] ss:$8 sps:$4 sm:$0xff]  }
 0x6ec   :  { %v8813_v48 = vld [vmem:[%s11420_s7 + $0x1a4] ss:$8 sps:$4 sm:$0xff]  }
 0x6ef   :  { %v3914_v39 = vpop.f32.mrb[44].mxu1  ;;  %v10759_v51 = vpop.f32.mrb[132].mxu0 }
 0x6f0   :  { %v7851_v53 = vpop.f32.mrb[45].mxu1  ;;  %v7919_v23 = vpop.f32.mrb[133].mxu0 }
 0x6f1   :  { %v3917_v13 = vpop.f32.mrb[46].mxu1  ;;  %v10764_v56 = vpop.f32.mrb[134].mxu0 }
 0x6f2   :  { %v3953_v28 = vpack.c.bf16 %v3917_v13, %v3914_v39  ;;  %v7852_v49 = vpop.f32.mrb[47].mxu1  ;;  %v4734_v63 = vpack.c.bf16 %v10764_v56, %v10759_v51  ;;  %v7920_v35 = vpop.f32.mrb[135].mxu0  ;;  %v3828_v39 = vld [vmem:[%s11420_s7 + $0x50] sm:$0x33]  ;;  %v8811_v51 = vld [vmem:[%s11420_s7 + $0x1a0] ss:$8 sps:$4 sm:$0xff]  }
 0x6f4   :  { %6888 = vmatmul.mubr.msk.bf16.vlgmr.msra.gmra.mrb[64].mxu1 %vm4025_vm7, %v3953_v28  ;;  %v8760_v28 = vld [vmem:[%s11420_s7 + $0x40] ss:$8 sps:$4 sm:$0xff]  }
 0x6f5   :  { %4090 = vmatprep.mubr.bf16.mxu1 %v8868_v61  ;;  %4208 = vmatpush1.bf16.msra.mxu1 %v8748_v47 }
 0x6f6   :  { %4209 = vmatprep.subr.bf16.mxu1 %v8753_v30 }
 0x6f7   :  { %v3922_v7 = vpop.f32.mrb[48].mxu1  ;;  %v10779_v15 = vpop.f32.mrb[136].mxu0 }
 0x6f8   :  { %v7855_v55 = vpop.f32.mrb[49].mxu1  ;;  %v7923_v9 = vpop.f32.mrb[137].mxu0 }
 0x6f9   :  { %v3925_v62 = vpop.f32.mrb[50].mxu1  ;;  %4210 = vmatpush1.bf16.msra.mxu1 %v8751_v2  ;;  %v10784_v17 = vpop.f32.mrb[138].mxu0  ;;  %v6904_v2 = vcombine.high %v3828_v39, %v3828_v39 }
 0x6fa   :  { %v3954_v24 = vpack.c.bf16 %v3925_v62, %v3922_v7  ;;  %v7856_v54 = vpop.f32.mrb[51].mxu1  ;;  %4211 = vmatprep.subr.bf16.mxu1 %v8756_v60  ;;  %v4735_v59 = vpack.c.bf16 %v10784_v17, %v10779_v15  ;;  %v7924_v4 = vpop.f32.mrb[139].mxu0  ;;  %v6903_v60 = vcombine.low %v3828_v39, %v3828_v39  ;;  %v8767_v62 = vld [vmem:[%s11420_s7 + $0xb4] ss:$8 sps:$4 sm:$0xff]   ;;  %v5250_v17 = vld [vmem:[%s11423_s8] sm:$0x3] }
 0x6fc   :  { %6889 = vmatmul.mubr.msk.bf16.gmra.mrb[68].mxu1 %vm4025_vm7, %v3954_v24  ;;  %v4202_v9 = vsel %vm4041_vm6, %v6903_v60, 0 }
 0x6fd   :  { %4100 = vmatprep.mubr.bf16.mxu1 %v8868_v61  ;;  %4212 = vmatpush1.bf16.msra.mxu1 %v8754_v14 }
 0x6fe   :  { %4213 = vmatprep.subr.bf16.mxu1 %v8759_v37 }
 0x6ff   :  { %v3930_v38 = vpop.f32.mrb[52].mxu1  ;;  %v10802_v53 = vpop.f32.mrb[140].mxu0 }
 0x700   :  { %v7859_v23 = vpop.f32.mrb[53].mxu1  ;;  %v7927_v13 = vpop.f32.mrb[141].mxu0 }
 0x701   :  { %v3933_v47 = vpop.f32.mrb[54].mxu1  ;;  %4214 = vmatpush1.bf16.msra.mxu1 %v8757_v18  ;;  %v10807_v49 = vpop.f32.mrb[142].mxu0 }
 0x702   :  { %v3955_v30 = vpack.c.bf16 %v3933_v47, %v3930_v38  ;;  %v7860_v35 = vpop.f32.mrb[55].mxu1  ;;  %4215 = vmatprep.subr.bf16.mxu1 %v8762_v40  ;;  %v4736_v7 = vpack.c.bf16 %v10807_v49, %v10802_v53  ;;  %v7928_v55 = vpop.f32.mrb[143].mxu0  ;;  %v11077_v53 = vrot.slane %v5250_v17, %v3123_v1 }
 0x704   :  { %6890 = vmatmul.mubr.msk.bf16.gmra.mrb[72].mxu1 %vm4025_vm7, %v3955_v30 }
 0x705   :  { %4110 = vmatprep.mubr.bf16.mxu1 %v8868_v61  ;;  %4216 = vmatpush1.bf16.msra.mxu1 %v8760_v28 }
 0x706   :  { %6905 = vmatprep.subr.msk.bf16.mxu1 %vm4041_vm6, %v6904_v2 }
 0x707   :  { %v3938_v14 = vpop.f32.mrb[56].mxu1  ;;  %v10818_v24 = vpop.f32.mrb[144].mxu0 }
 0x708   :  { %v7863_v54 = vpop.f32.mrb[57].mxu1  ;;  %v7931_v37 = vpop.f32.mrb[145].mxu0 }
 0x709   :  { %v3941_v4 = vpop.f32.mrb[58].mxu1  ;;  %4218 = vmatpush1.bf16.msra.mxu1 %v4202_v9  ;;  %v10820_v18 = vpop.f32.mrb[146].mxu0  ;;  %v8765_v37 = vld [vmem:[%s11420_s7 + $0xb0] ss:$8 sps:$4 sm:$0xff]  }
 0x70a   :  { %v3956_v40 = vpack.c.bf16 %v3941_v4, %v3938_v14  ;;  %v7864_v38 = vpop.f32.mrb[59].mxu1  ;;  %4507 = vmatprep.subr.bf16.mxu1 %v8767_v62  ;;  %v4737_v39 = vpack.c.bf16 %v10820_v18, %v10818_v24  ;;  %v7932_v23 = vpop.f32.mrb[147].mxu0 }
 0x70c   :  { %6891 = vmatmul.mubr.msk.bf16.gmra.mrb[76].mxu1 %vm4025_vm7, %v3956_v40  ;;  %v8770_v40 = vld [vmem:[%s11420_s7 + $0xc4] ss:$8 sps:$4 sm:$0xff]  }
 0x70d   :  { %4120 = vmatprep.mubr.bf16.mxu1 %v8868_v61 }
 0x70f   :  { %v3946_v13 = vpop.f32.mrb[60].mxu1  ;;  %v10826_v47 = vpop.f32.mrb[148].mxu0 }
 0x710   :  { %v7867_v28 = vpop.f32.mrb[61].mxu1  ;;  %v7935_v30 = vpop.f32.mrb[149].mxu0 }
 0x711   :  { %v3949_v35 = vpop.f32.mrb[62].mxu1  ;;  %v10828_v2 = vpop.f32.mrb[150].mxu0  ;;  %v8773_v28 = vld [vmem:[%s11420_s7 + $0xd4] ss:$8 sps:$4 sm:$0xff]  }
 0x712   :  { %v3957_v60 = vpack.c.bf16 %v3949_v35, %v3946_v13  ;;  %v7868_v55 = vpop.f32.mrb[63].mxu1  ;;  %v4738_v9 = vpack.c.bf16 %v10828_v2, %v10826_v47  ;;  %v7936_v62 = vpop.f32.mrb[151].mxu0  ;;  %v8768_v13 = vld [vmem:[%s11420_s7 + $0xc0] ss:$8 sps:$4 sm:$0xff]  }
 0x713   :  { %v8774_v62 = vld [vmem:[%s11420_s7 + $0xe0] ss:$8 sps:$4 sm:$0xff]  }
 0x714   :  { %6892 = vmatmul.mubr.msk.bf16.gmra.mrb[80].mxu1 %vm4025_vm7, %v3957_v60 }
 0x715   :  { %4239 = vmatprep.mubr.bf16.mxu1 %v8868_v61 }
 0x717   :  { %v10834_v14 = vpop.f32.mrb[152].mxu0 }
 0x718   :  { %v7953_v54 = vpop.f32.mrb[153].mxu0 }
 0x719   :  { %v10839_v4 = vpop.f32.mrb[154].mxu0  ;;  %v8779_v54 = vld [vmem:[%s11420_s7 + $0xf4] ss:$8 sps:$4 sm:$0xff]  }
 0x71a   :  { %v5054_v38 = vpack.c.bf16 %v10839_v4, %v10834_v14  ;;  %v7954_v23 = vpop.f32.mrb[155].mxu0 }
 0x71c   :  { %6906 = vmatmul.mubr.msk.bf16.vlgmr.msra.gmra.mrb[64].mxu1 %vm4025_vm7, %v3813_v32  ;;  %v8776_v32 = vld [vmem:[%s11420_s7 + $0xe4] ss:$8 sps:$4 sm:$0xff]  }
 0x71d   :  { %4249 = vmatprep.mubr.bf16.mxu1 %v8868_v61  ;;  %4508 = vmatpush1.bf16.msra.mxu1 %v8765_v37  ;;  %v6941_v37 = vld [vmem:[%s11420_s7 + $0x100] sm:$0x33] }
 0x71e   :  { %4509 = vmatprep.subr.bf16.mxu1 %v8770_v40  ;;  %v6953_v23 = vcombine.high %v6941_v37, %v6941_v37 }
 0x71f   :  { %v10857_v30 = vpop.f32.mrb[156].mxu0 }
 0x720   :  { %v7957_v35 = vpop.f32.mrb[157].mxu0 }
 0x721   :  { %4510 = vmatpush1.bf16.msra.mxu1 %v8768_v13  ;;  %v10862_v5 = vpop.f32.mrb[158].mxu0  ;;  %v6952_v13 = vcombine.low %v6941_v37, %v6941_v37 }
 0x722   :  { %4511 = vmatprep.subr.bf16.mxu1 %v8773_v28  ;;  %v5055_v60 = vpack.c.bf16 %v10862_v5, %v10857_v30  ;;  %v7958_v55 = vpop.f32.mrb[159].mxu0 }
 0x724   :  { %6907 = vmatmul.mubr.msk.bf16.gmra.mrb[68].mxu1 %vm4025_vm7, %v3814_v36 }
 0x725   :  { %4259 = vmatprep.mubr.bf16.mxu1 %v8868_v61  ;;  %4512 = vmatpush1.bf16.msra.mxu1 %v8771_v12  ;;  %v4502_v12 = vsel %vm4041_vm6, %v6952_v13, 0 }
 0x726   :  { %4513 = vmatprep.subr.bf16.mxu1 %v8776_v32  ;;  %v8784_v32 = vld [vmem:[%s11420_s7 + $0x10c] ss:$8 sps:$4 sm:$0xff]  }
 0x727   :  { %v10883_v40 = vpop.f32.mrb[160].mxu0 }
 0x728   :  { %v7961_v3 = vpop.f32.mrb[161].mxu0 }
 0x729   :  { %4514 = vmatpush1.bf16.msra.mxu1 %v8774_v62  ;;  %v10888_v36 = vpop.f32.mrb[162].mxu0 }
 0x72a   :  { %4515 = vmatprep.subr.bf16.mxu1 %v8779_v54  ;;  %v5056_v28 = vpack.c.bf16 %v10888_v36, %v10883_v40  ;;  %v7962_v35 = vpop.f32.mrb[163].mxu0 }
 0x72b   :  { %v8801_v35 = vld [vmem:[%s11420_s7 + $0x164] ss:$8 sps:$4 sm:$0xff]  }
 0x72c   :  { %6908 = vmatmul.mubr.msk.bf16.gmra.mrb[72].mxu1 %vm4025_vm7, %v3815_v29 }
 0x72d   :  { %4269 = vmatprep.mubr.bf16.mxu1 %v8868_v61  ;;  %4516 = vmatpush1.bf16.msra.mxu1 %v8777_v26 }
 0x72e   :  { %6954 = vmatprep.subr.msk.bf16.mxu1 %vm4041_vm6, %v6953_v23 }
 0x72f   :  { %v10902_v55 = vpop.f32.mrb[164].mxu0 }
 0x730   :  { %v7965_v62 = vpop.f32.mrb[165].mxu0 }
 0x731   :  { %4518 = vmatpush1.bf16.msra.mxu1 %v4502_v12  ;;  %v10904_v54 = vpop.f32.mrb[166].mxu0 }
 0x732   :  { %4827 = vmatprep.subr.bf16.mxu1 %v8784_v32  ;;  %v5057_v41 = vpack.c.bf16 %v10904_v54, %v10902_v55  ;;  %v7966_v46 = vpop.f32.mrb[167].mxu0 }
 0x734   :  { %6909 = vmatmul.mubr.msk.bf16.gmra.mrb[76].mxu1 %vm4025_vm7, %v3816_v43  ;;  %v8785_v43 = vld [vmem:[%s11420_s7 + $0x118] ss:$8 sps:$4 sm:$0xff]  }
 0x735   :  { %4279 = vmatprep.mubr.bf16.mxu1 %v8868_v61 }
 0x737   :  { %v10913_v29 = vpop.f32.mrb[168].mxu0 }
 0x738   :  { %v7969_v37 = vpop.f32.mrb[169].mxu0 }
 0x739   :  { %v10915_v3 = vpop.f32.mrb[170].mxu0 }
 0x73a   :  { %v5058_v26 = vpack.c.bf16 %v10915_v3, %v10913_v29  ;;  %v7970_v23 = vpop.f32.mrb[171].mxu0 }
 0x73c   :  { %6910 = vmatmul.mubr.msk.bf16.gmra.mrb[80].mxu1 %vm4025_vm7, %v3817_v0  ;;  %v6990_v0 = vld [vmem:[%s11420_s7 + $0x158] sm:$0x33] }
 0x73d   :  { %4539 = vmatprep.mubr.bf16.mxu1 %v8868_v61  ;;  %v7002_v20 = vcombine.high %v6990_v0, %v6990_v0 }
 0x744   :  { %6955 = vmatmul.mubr.msk.bf16.vlgmr.msra.gmra.mrb[64].mxu1 %vm4025_vm7, %v4414_v11  ;;  %v8796_v11 = vld [vmem:[%s11420_s7 + $0x14c] ss:$8 sps:$4 sm:$0xff]  }
 0x745   :  { %4549 = vmatprep.mubr.bf16.mxu1 %v8868_v61  ;;  %4828 = vmatpush1.bf16.msra.mxu1 %v8782_v33 }
 0x746   :  { %4829 = vmatprep.subr.bf16.mxu1 %v8787_v31 }
 0x749   :  { %4830 = vmatpush1.bf16.msra.mxu1 %v8785_v43 }
 0x74a   :  { %4831 = vmatprep.subr.bf16.mxu1 %v8790_v58 }
 0x74c   :  { %6956 = vmatmul.mubr.msk.bf16.gmra.mrb[68].mxu1 %vm4025_vm7, %v4415_v16  ;;  %v7001_v16 = vcombine.low %v6990_v0, %v6990_v0 }
 0x74d   :  { %4559 = vmatprep.mubr.bf16.mxu1 %v8868_v61  ;;  %4832 = vmatpush1.bf16.msra.mxu1 %v8788_v22 }
 0x74e   :  { %4833 = vmatprep.subr.bf16.mxu1 %v8793_v44  ;;  %v4822_v13 = vsel %vm4041_vm6, %v7001_v16, 0 }
 0x751   :  { %4834 = vmatpush1.bf16.msra.mxu1 %v8791_v21 }
 0x752   :  { %4835 = vmatprep.subr.bf16.mxu1 %v8796_v11 }
 0x754   :  { %6957 = vmatmul.mubr.msk.bf16.gmra.mrb[72].mxu1 %vm4025_vm7, %v4416_v50  ;;  %v8802_v50 = vld [vmem:[%s11420_s7 + $0x170] ss:$8 sps:$4 sm:$0xff]  }
 0x755   :  { %4569 = vmatprep.mubr.bf16.mxu1 %v8868_v61  ;;  %4836 = vmatpush1.bf16.msra.mxu1 %v8794_v42 }
 0x756   :  { %7003 = vmatprep.subr.msk.bf16.mxu1 %vm4041_vm6, %v7002_v20 }
 0x759   :  { %4838 = vmatpush1.bf16.msra.mxu1 %v4822_v13 }
 0x75a   :  { %5147 = vmatprep.subr.bf16.mxu1 %v8801_v35 }
 0x75c   :  { %6958 = vmatmul.mubr.msk.bf16.gmra.mrb[76].mxu1 %vm4025_vm7, %v4417_v19  ;;  %v8810_v19 = vld [vmem:[%s11420_s7 + $0x194] ss:$8 sps:$4 sm:$0xff]  }
 0x75d   :  { %4579 = vmatprep.mubr.bf16.mxu1 %v8868_v61 }
 0x764   :  { %6959 = vmatmul.mubr.msk.bf16.gmra.mrb[80].mxu1 %vm4025_vm7, %v4418_v27  ;;  %v7039_v27 = vld [vmem:[%s11420_s7 + $0x1b0] sm:$0x33] }
 0x765   :  { %4859 = vmatprep.mubr.bf16.mxu1 %v8868_v61  ;;  %v7051_v56 = vcombine.high %v7039_v27, %v7039_v27 }
 0x76c   :  { %7004 = vmatmul.mubr.msk.bf16.vlgmr.msra.gmra.mrb[64].mxu1 %vm4025_vm7, %v4734_v63  ;;  %v7050_v63 = vcombine.low %v7039_v27, %v7039_v27 }
 0x76d   :  { %4869 = vmatprep.mubr.bf16.mxu1 %v8868_v61  ;;  %5148 = vmatpush1.bf16.msra.mxu1 %v8799_v8 }
 0x76e   :  { %5149 = vmatprep.subr.bf16.mxu1 %v8804_v34  ;;  %v5142_v15 = vsel %vm4041_vm6, %v7050_v63, 0 }
 0x771   :  { %5150 = vmatpush1.bf16.msra.mxu1 %v8802_v50 }
 0x772   :  { %5151 = vmatprep.subr.bf16.mxu1 %v8807_v6 }
 0x774   :  { %7005 = vmatmul.mubr.msk.bf16.gmra.mrb[68].mxu1 %vm4025_vm7, %v4735_v59  ;;  %v11073_v59 = vrot.slane %v5250_v17, %v3119_v10 }
 0x775   :  { %4879 = vmatprep.mubr.bf16.mxu1 %v8868_v61  ;;  %5152 = vmatpush1.bf16.msra.mxu1 %v8805_v52 }
 0x776   :  { %5153 = vmatprep.subr.bf16.mxu1 %v8810_v19 }
 0x779   :  { %5154 = vmatpush1.bf16.msra.mxu1 %v8808_v57 }
 0x77a   :  { %5155 = vmatprep.subr.bf16.mxu1 %v8813_v48 }
 0x77c   :  { %7006 = vmatmul.mubr.msk.bf16.gmra.mrb[72].mxu1 %vm4025_vm7, %v4736_v7 }
 0x77d   :  { %4889 = vmatprep.mubr.bf16.mxu1 %v8868_v61  ;;  %5156 = vmatpush1.bf16.msra.mxu1 %v8811_v51 }
 0x77e   :  { %7052 = vmatprep.subr.msk.bf16.mxu1 %vm4041_vm6, %v7051_v56 }
 0x781   :  { %5158 = vmatpush1.bf16.msra.mxu1 %v5142_v15 }
 0x782   :  { %7971 = vmatprep.subr.bf16.mxu1 %v8869_v25 }
 0x784   :  { %7007 = vmatmul.mubr.msk.bf16.gmra.mrb[76].mxu1 %vm4025_vm7, %v4737_v39 }
 0x785   :  { %4899 = vmatprep.mubr.bf16.mxu1 %v8868_v61 }
 0x78c   :  { %7008 = vmatmul.mubr.msk.bf16.gmra.mrb[80].mxu1 %vm4025_vm7, %v4738_v9 }
 0x78d   :  { %5179 = vmatprep.mubr.bf16.mxu1 %v8868_v61 }
 0x794   :  { %7053 = vmatmul.mubr.msk.bf16.vlgmr.msra.gmra.mrb[64].mxu1 %vm4025_vm7, %v5054_v38 }
 0x795   :  { %5189 = vmatprep.mubr.bf16.mxu1 %v8868_v61 }
 0x79c   :  { %7054 = vmatmul.mubr.msk.bf16.gmra.mrb[68].mxu1 %vm4025_vm7, %v5055_v60 }
 0x79d   :  { %5199 = vmatprep.mubr.bf16.mxu1 %v8868_v61 }
 0x7a4   :  { %7055 = vmatmul.mubr.msk.bf16.gmra.mrb[72].mxu1 %vm4025_vm7, %v5056_v28 }
 0x7a5   :  { %5209 = vmatprep.mubr.bf16.mxu1 %v8868_v61 }
 0x7ac   :  { %7056 = vmatmul.mubr.msk.bf16.gmra.mrb[76].mxu1 %vm4025_vm7, %v5057_v41 }
 0x7ad   :  { %5219 = vmatprep.mubr.bf16.mxu1 %v8868_v61 }
 0x7b4   :  { %7057 = vmatmul.mubr.msk.bf16.gmra.mrb[80].mxu1 %vm4025_vm7, %v5058_v26 }
 0x7b5   :  { %7977 = vmatprep.mubr.msk.bf16.mxu1 %vm8870_vm4, %v8869_v25 }
 0x867   :  { %v5181_v49 = vpop.f32.mrb[64].mxu1 }
 0x868   :  { %v5262_v7 = vadd.f32 %v11073_v59, %v5181_v49  ;;  %v5183_v24 = vpop.f32.mrb[65].mxu1 }
 0x869   :  { %v5263_v18 = vadd.f32 %v11077_v53, %v5183_v24  ;;  %v5185_v39 = vpop.f32.mrb[66].mxu1 }
 0x86a   :  { %v5264_v47 = vadd.f32 %v11073_v59, %v5185_v39  ;;  %v5187_v2 = vpop.f32.mrb[67].mxu1  ;;  %v5282_v14 = vmax.f32 %v5262_v7, 0.0 }
 0x86b   :  { %v5265_v9 = vadd.f32 %v11077_v53, %v5187_v2  ;;  %v5283_v10 = vmax.f32 %v5263_v18, 0.0 }
 0x86c   :  { %v5284_v4 = vmax.f32 %v5264_v47, 0.0 }
 0x86d   :  { %v5285_v38 = vmax.f32 %v5265_v9, 0.0 }
 0x86e   :  { %v5302_v30 = vpack.c.bf16 %v5284_v4, %v5282_v14 }
 0x86f   :  { %v5303_v45 = vpack.c.bf16 %v5285_v38, %v5283_v10  ;;  %v5191_v1 = vpop.f32.mrb[68].mxu1  ;;  %v8816_v10 = vld [vmem:[%s11421_s9] sm:$0xff]   ;;  %v8817_v38 = vld [vmem:[%s11421_s9 + $0x8] sm:$0xff]  }
 0x870   :  { %v5266_v5 = vadd.f32 %v11073_v59, %v5191_v1  ;;  %v5193_v60 = vpop.f32.mrb[69].mxu1  ;;  %v8818_v1 = vld [vmem:[%s11421_s9 + $0x10] ss:$0 sps:$4 sm:$0xff]  }
 0x871   :  { %v5267_v40 = vadd.f32 %v11077_v53, %v5193_v60  ;;  %v5195_v36 = vpop.f32.mrb[70].mxu1  ;;  %5340 = vmatprep.subr.bf16.mxu0 %v5303_v45  ;;  %v8822_v45 = vld [vmem:[%s11422_s10 + $0x18] sm:$0xff]   ;;  %v8824_v60 = vld [vmem:[%s11422_s10 + $0x28] sm:$0xff]  }
 0x872   :  { %v5268_v28 = vadd.f32 %v11073_v59, %v5195_v36  ;;  %v5197_v12 = vpop.f32.mrb[71].mxu1  ;;  %5341 = vmatpush1.bf16.msra.mxu0 %v5302_v30  ;;  %v5286_v55 = vmax.f32 %v5266_v5, 0.0  ;;  %v8821_v30 = vld [vmem:[%s11422_s10 + $0x10] sm:$0xff]   ;;  %v8823_v5 = vld [vmem:[%s11422_s10 + $0x20] sm:$0xff]   ;;  %v8826_v36 = vld [vmem:[%s11422_s10 + $0x38] sm:$0xff]  }
 0x873   :  { %v5269_v32 = vadd.f32 %v11077_v53, %v5197_v12  ;;  %v5287_v54 = vmax.f32 %v5267_v40, 0.0  ;;  %v8825_v40 = vld [vmem:[%s11422_s10 + $0x30] sm:$0xff]   ;;  %v8828_v12 = vld [vmem:[%s11422_s10 + $0x48] sm:$0xff]  }
 0x874   :  { %v5288_v62 = vmax.f32 %v5268_v28, 0.0  ;;  %v8827_v28 = vld [vmem:[%s11422_s10 + $0x40] sm:$0xff]  }
 0x875   :  { %v5289_v41 = vmax.f32 %v5269_v32, 0.0 }
 0x876   :  { %v5304_v46 = vpack.c.bf16 %v5288_v62, %v5286_v55 }
 0x877   :  { %v5305_v29 = vpack.c.bf16 %v5289_v41, %v5287_v54  ;;  %v5201_v37 = vpop.f32.mrb[72].mxu1 }
 0x878   :  { %v5270_v3 = vadd.f32 %v11073_v59, %v5201_v37  ;;  %v5203_v26 = vpop.f32.mrb[73].mxu1 }
 0x879   :  { %v5271_v23 = vadd.f32 %v11077_v53, %v5203_v26  ;;  %v5205_v33 = vpop.f32.mrb[74].mxu1  ;;  %5342 = vmatprep.subr.bf16.mxu0 %v5305_v29 }
 0x87a   :  { %v5272_v31 = vadd.f32 %v11073_v59, %v5205_v33  ;;  %v5207_v43 = vpop.f32.mrb[75].mxu1  ;;  %5343 = vmatpush1.bf16.msra.mxu0 %v5304_v46  ;;  %v5290_v22 = vmax.f32 %v5270_v3, 0.0 }
 0x87b   :  { %v5273_v58 = vadd.f32 %v11077_v53, %v5207_v43  ;;  %v5291_v21 = vmax.f32 %v5271_v23, 0.0 }
 0x87c   :  { %v5292_v44 = vmax.f32 %v5272_v31, 0.0 }
 0x87d   :  { %v5293_v11 = vmax.f32 %v5273_v58, 0.0 }
 0x87e   :  { %v5306_v0 = vpack.c.bf16 %v5292_v44, %v5290_v22 }
 0x87f   :  { %v5307_v42 = vpack.c.bf16 %v5293_v11, %v5291_v21  ;;  %v5211_v20 = vpop.f32.mrb[76].mxu1  ;;  %v8832_v21 = vld [vmem:[%s11424_s12 + $0x28] sm:$0xff]   ;;  %v8834_v11 = vld [vmem:[%s11424_s12 + $0x30] sm:$0xff]  }
 0x880   :  { %v5274_v16 = vadd.f32 %v11073_v59, %v5211_v20  ;;  %v5213_v13 = vpop.f32.mrb[77].mxu1 }
 0x881   :  { %v5275_v35 = vadd.f32 %v11077_v53, %v5213_v13  ;;  %v5215_v8 = vpop.f32.mrb[78].mxu1  ;;  %5344 = vmatprep.subr.bf16.mxu0 %v5307_v42 }
 0x882   :  { %v5276_v34 = vadd.f32 %v11073_v59, %v5215_v8  ;;  %v5217_v50 = vpop.f32.mrb[79].mxu1  ;;  %5345 = vmatpush1.bf16.msra.mxu0 %v5306_v0  ;;  %v5294_v52 = vmax.f32 %v5274_v16, 0.0 }
 0x883   :  { %v5277_v6 = vadd.f32 %v11077_v53, %v5217_v50  ;;  %v5295_v57 = vmax.f32 %v5275_v35, 0.0 }
 0x884   :  { %v5296_v19 = vmax.f32 %v5276_v34, 0.0 }
 0x885   :  { %v5297_v48 = vmax.f32 %v5277_v6, 0.0 }
 0x886   :  { %v5308_v27 = vpack.c.bf16 %v5296_v19, %v5294_v52 }
 0x887   :  { %v5309_v51 = vpack.c.bf16 %v5297_v48, %v5295_v57  ;;  %v5221_v56 = vpop.f32.mrb[80].mxu1 }
 0x888   :  { %v5278_v63 = vadd.f32 %v11073_v59, %v5221_v56  ;;  %v5223_v15 = vpop.f32.mrb[81].mxu1  ;;  %v5555_v56 = vld [vmem:[%s11425_s11] sm:$0xf] }
 0x889   :  { %v5279_v17 = vadd.f32 %v11077_v53, %v5223_v15  ;;  %v5225_v49 = vpop.f32.mrb[82].mxu1  ;;  %5346 = vmatprep.subr.bf16.mxu0 %v5309_v51  ;;  %v8829_v15 = vld [vmem:[%s11424_s12] sm:$0xff]  }
 0x88a   :  { %v5280_v7 = vadd.f32 %v11073_v59, %v5225_v49  ;;  %v5227_v24 = vpop.f32.mrb[83].mxu1  ;;  %5347 = vmatpush1.bf16.msra.mxu0 %v5308_v27  ;;  %v5298_v39 = vmax.f32 %v5278_v63, 0.0  ;;  %v8819_v59 = vld [vmem:[%s11422_s10] sm:$0xff]   ;;  %v8831_v49 = vld [vmem:[%s11424_s12 + $0x10] sm:$0xff]  }
 0x88b   :  { %v5281_v18 = vadd.f32 %v11077_v53, %v5227_v24  ;;  %v5299_v2 = vmax.f32 %v5279_v17, 0.0  ;;  %v8820_v53 = vld [vmem:[%s11422_s10 + $0x8] sm:$0xff]   ;;  %v7078_v63 = vld [vmem:[%s11425_s11 + $0x4] sm:$0xf] }
 0x88c   :  { %v5300_v47 = vmax.f32 %v5280_v7, 0.0  ;;  %v8830_v17 = vld [vmem:[%s11424_s12 + $0x8] sm:$0xff]   ;;  %v8833_v7 = vld [vmem:[%s11424_s12 + $0x18] sm:$0xff]   ;;  %v8835_v24 = vld [vmem:[%s11424_s12 + $0x20] sm:$0xff]  }
 0x88d   :  { %v5301_v9 = vmax.f32 %v5281_v18, 0.0  ;;  %v8836_v18 = vld [vmem:[%s11424_s12 + $0x38] sm:$0xff]  }
 0x88e   :  { %v5310_v14 = vpack.c.bf16 %v5300_v47, %v5298_v39  ;;  %v8837_v39 = vld [vmem:[%s11424_s12 + $0x40] sm:$0xff]   ;;  %v8838_v47 = vld [vmem:[%s11424_s12 + $0x48] sm:$0xff]  }
 0x88f   :  { %v5311_v4 = vpack.c.bf16 %v5301_v9, %v5299_v2 }
 0x891   :  { %5348 = vmatprep.subr.bf16.mxu0 %v5311_v4 }
 0x892   :  { %5349 = vmatpush1.bf16.msra.mxu0 %v5310_v14 }
 0x893   :  { %5496 = vmatprep.subr.bf16.mxu0 %v8868_v61 }
 0x895   :  { %7061 = vmatmul.mubr.msk.bf16.vlgmr.msra.gmra.mrb[172].mxu0 %vm5330_vm8, %v8816_v10 }
 0x896   :  { %5382 = vmatprep.mubr.bf16.mxu0 %v8868_v61  ;;  %5497 = vmatpush1.bf16.msra.mxu0 %v8819_v59 }
 0x897   :  { %5498 = vmatprep.subr.bf16.mxu0 %v8868_v61 }
 0x89a   :  { %5499 = vmatpush1.bf16.msra.mxu0 %v8820_v53  ;;  %v7120_v53 = vld [vmem:[%s11425_s11 + $0xc] sm:$0xf] }
 0x89b   :  { %5500 = vmatprep.subr.bf16.mxu0 %v8868_v61 }
 0x89d   :  { %7062 = vmatmul.mubr.msk.bf16.gmra.mrb[176].mxu0 %vm5330_vm8, %v8817_v38 }
 0x89e   :  { %5392 = vmatprep.mubr.bf16.mxu0 %v8868_v61  ;;  %5501 = vmatpush1.bf16.msra.mxu0 %v8821_v30 }
 0x89f   :  { %5502 = vmatprep.subr.bf16.mxu0 %v8868_v61 }
 0x8a2   :  { %5503 = vmatpush1.bf16.msra.mxu0 %v8822_v45  ;;  %v8840_v45 = vld [vmem:[%s11424_s12 + $0x78] sm:$0xff]  }
 0x8a3   :  { %5504 = vmatprep.subr.bf16.mxu0 %v8868_v61 }
 0x8a5   :  { %7063 = vmatmul.mubr.msk.bf16.gmra.mrb[180].mxu0 %vm5330_vm8, %v8818_v1 }
 0x8a6   :  { %5505 = vmatpush1.bf16.msra.mxu0 %v8823_v5 }
 0x8a7   :  { %5506 = vmatprep.subr.bf16.mxu0 %v8868_v61 }
 0x8aa   :  { %5507 = vmatpush1.bf16.msra.mxu0 %v8824_v60  ;;  %v8842_v60 = vld [vmem:[%s11424_s12 + $0x80] sm:$0xff]  }
 0x8ab   :  { %5508 = vmatprep.subr.bf16.mxu0 %v8868_v61 }
 0x8ae   :  { %5509 = vmatpush1.bf16.msra.mxu0 %v8825_v40  ;;  %v8844_v40 = vld [vmem:[%s11424_s12 + $0x88] sm:$0xff]  }
 0x8af   :  { %5510 = vmatprep.subr.bf16.mxu0 %v8868_v61 }
 0x8b2   :  { %5511 = vmatpush1.bf16.msra.mxu0 %v8826_v36  ;;  %v7102_v36 = vld [vmem:[%s11425_s11 + $0x8] sm:$0xf] }
 0x8b3   :  { %5512 = vmatprep.subr.bf16.mxu0 %v8868_v61 }
 0x8b6   :  { %5513 = vmatpush1.bf16.msra.mxu0 %v8827_v28  ;;  %v8839_v28 = vld [vmem:[%s11424_s12 + $0x50] sm:$0xff]  }
 0x8b7   :  { %5514 = vmatprep.subr.bf16.mxu0 %v8868_v61 }
 0x8ba   :  { %5515 = vmatpush1.bf16.msra.mxu0 %v8828_v12  ;;  %v8841_v12 = vld [vmem:[%s11424_s12 + $0x58] sm:$0xff]  }
 0x8bb   :  { %7991 = vmatprep.subr.bf16.mxu0 %v8869_v25 }
 0x968   :  { %v5374_v32 = vpop.f32.mrb[172].mxu0 }
 0x969   :  { %v5376_v55 = vpop.f32.mrb[173].mxu0 }
 0x96a   :  { %v5378_v62 = vpop.f32.mrb[174].mxu0 }
 0x96b   :  { %v5401_v54 = vpack.c.bf16 %v5378_v62, %v5374_v32  ;;  %v5380_v41 = vpop.f32.mrb[175].mxu0  ;;  %v8843_v32 = vld [vmem:[%s11424_s12 + $0x60] sm:$0xff]   ;;  %v8846_v62 = vld [vmem:[%s11424_s12 + $0x90] sm:$0xff]  }
 0x96c   :  { %v5402_v46 = vpack.c.bf16 %v5380_v41, %v5376_v55  ;;  %v8845_v55 = vld [vmem:[%s11424_s12 + $0x68] sm:$0xff]   ;;  %v8848_v41 = vld [vmem:[%s11424_s12 + $0x98] sm:$0xff]  }
 0x96e   :  { %7074 = vmatprep.mubr.msk.bf16.mxu0 %vm792_vm0, %v5402_v46 }
 0x96f   :  { %5529 = vmatmul.mubr.bf16.vlgmr.msra.gmra.mrb[184].mxu0 %v5401_v54  ;;  %v8847_v54 = vld [vmem:[%s11424_s12 + $0x70] sm:$0xff]  }
 0x970   :  { %v5384_v29 = vpop.f32.mrb[176].mxu0  ;;  %7992 = vmatpush3.bf16.msra.mxu0 %v8832_v21 }
 0x971   :  { %v5386_v37 = vpop.f32.mrb[177].mxu0  ;;  %7993 = vmatprep.subr.bf16.mxu0 %v8869_v25 }
 0x972   :  { %v5388_v3 = vpop.f32.mrb[178].mxu0 }
 0x973   :  { %v5403_v61 = vpack.c.bf16 %v5388_v3, %v5384_v29  ;;  %v5390_v26 = vpop.f32.mrb[179].mxu0 }
 0x974   :  { %v5404_v23 = vpack.c.bf16 %v5390_v26, %v5386_v37  ;;  %7994 = vmatpush3.bf16.msra.mxu0 %v8834_v11 }
 0x975   :  { %7995 = vmatprep.subr.bf16.mxu0 %v8869_v25 }
 0x976   :  { %7075 = vmatprep.mubr.msk.bf16.mxu0 %vm792_vm0, %v5404_v23 }
 0x977   :  { %5537 = vmatmul.mubr.bf16.gmra.mrb[188].mxu0 %v5403_v61 }
 0x978   :  { %v5394_v33 = vpop.f32.mrb[180].mxu0  ;;  %7996 = vmatpush3.bf16.msra.mxu0 %v8836_v18 }
 0x979   :  { %v5396_v31 = vpop.f32.mrb[181].mxu0  ;;  %v5405_v44 = vpack.c.bf16 %v5394_v33, %v5394_v33  ;;  %7997 = vmatprep.subr.bf16.mxu0 %v8869_v25 }
 0x97a   :  { %v5406_v43 = vpack.c.bf16 %v5396_v31, %v5396_v31  ;;  %v5398_v58 = vpop.f32.mrb[182].mxu0 }
 0x97b   :  { %v5399_v22 = vpop.f32.mrb[183].mxu0 }
 0x97c   :  { %7076 = vmatprep.mubr.msk.bf16.mxu0 %vm792_vm0, %v5406_v43  ;;  %7998 = vmatpush3.bf16.msra.mxu0 %v8837_v39 }
 0x97d   :  { %7999 = vmatprep.subr.bf16.mxu0 %v8869_v25 }
 0x97f   :  { %5545 = vmatmul.mubr.bf16.gmra.mrb[192].mxu0 %v5405_v44 }
 0x980   :  { %8001 = vmatprep.mubr.msk.bf16.mxu0 %vm8870_vm4, %v8869_v25  ;;  %8000 = vmatpush3.bf16.msra.mxu0 %v8838_v47 }
 0x981   :  { %8019 = vmatprep.subr.bf16.mxu0 %v8869_v25 }
 0xa42   :  { %v5530_v0 = vpop.f32.mrb[184].mxu0 }
 0xa43   :  { %v5532_v42 = vpop.f32.mrb[185].mxu0 }
 0xa44   :  { %v5533_v20 = vpop.f32.mrb[186].mxu0 }
 0xa45   :  { %v11167_v16 = vpack.c.bf16 %v5533_v20, %v5530_v0  ;;  %v5535_v13 = vpop.f32.mrb[187].mxu0 }
 0xa47   :  { %7972 = vmatpush3.bf16.msra.mxu1 %v11167_v16 }
 0xa48   :  { %7973 = vmatprep.subr.bf16.mxu1 %v8869_v25 }
 0xa4a   :  { %v5538_v35 = vpop.f32.mrb[188].mxu0 }
 0xa4b   :  { %v5540_v8 = vpop.f32.mrb[189].mxu0 }
 0xa4c   :  { %v5541_v34 = vpop.f32.mrb[190].mxu0  ;;  %v8849_v8 = vld [vmem:[%s11424_s12 + $0xa0] sm:$0xff]  }
 0xa4d   :  { %v11171_v50 = vpack.c.bf16 %v5541_v34, %v5538_v35  ;;  %v5543_v6 = vpop.f32.mrb[191].mxu0  ;;  %v7138_v35 = vld [vmem:[%s11425_s11 + $0x10] sm:$0xf] }
 0xa4e   :  { %v8851_v34 = vld [vmem:[%s11424_s12 + $0xb0] sm:$0xff]   ;;  %v8853_v6 = vld [vmem:[%s11424_s12 + $0xc0] sm:$0xff]  }
 0xa4f   :  { %7974 = vmatpush3.bf16.msra.mxu1 %v11171_v50 }
 0xa50   :  { %7975 = vmatprep.subr.bf16.mxu1 %v8869_v25 }
 0xa52   :  { %v5546_v52 = vpop.f32.mrb[192].mxu0 }
 0xa53   :  { %v5554_v19 = vpack.c.bf16 %v5546_v52, %v5546_v52  ;;  %v5548_v57 = vpop.f32.mrb[193].mxu0  ;;  %v8854_v52 = vld [vmem:[%s11426_s14] sm:$0xff]  }
 0xa54   :  { %v5549_v48 = vpop.f32.mrb[194].mxu0  ;;  %v8856_v57 = vld [vmem:[%s11426_s14 + $0x10] sm:$0xff]  }
 0xa55   :  { %v11176_v27 = vsel %vm3589_vm2, %v5554_v19, 0  ;;  %v5550_v51 = vpop.f32.mrb[195].mxu0  ;;  %v8855_v19 = vld [vmem:[%s11426_s14 + $0x8] sm:$0xff]   ;;  %v8857_v48 = vld [vmem:[%s11426_s14 + $0x18] sm:$0xff]  }
 0xa56   :  { %7976 = vmatpush3.bf16.msra.mxu1 %v11176_v27  ;;  %v8859_v51 = vld [vmem:[%s11426_s14 + $0x28] sm:$0xff]  }
 0xa57   :  { %7981 = vmatprep.subr.bf16.mxu1 %v8869_v25 }
 0xa59   :  { %7978 = vmatmul.mubr.msk.bf16.vlgmr.msra.gmra.mrb[84].mxu1 %vm3567_vm3, %v5555_v56 }
 0xa5a   :  { %7982 = vmatpush3.bf16.msra.mxu1 %v11167_v16  ;;  %7987 = vmatprep.mubr.msk.bf16.mxu1 %vm8870_vm4, %v8869_v25 }
 0xa5b   :  { %7983 = vmatprep.subr.bf16.mxu1 %v8869_v25 }
 0xa5e   :  { %7984 = vmatpush3.bf16.msra.mxu1 %v11171_v50 }
 0xa5f   :  { %7985 = vmatprep.subr.bf16.mxu1 %v8869_v25 }
 0xa62   :  { %7986 = vmatpush3.bf16.msra.mxu1 %v11176_v27 }
 0xa63   :  { %8005 = vmatprep.subr.bf16.mxu1 %v8869_v25 }
 0xa65   :  { %7988 = vmatmul.mubr.msk.bf16.vlgmr.msra.gmra.mrb[88].mxu1 %vm3567_vm3, %v7078_v63 }
 0xa66   :  { %8006 = vmatpush3.bf16.msra.mxu1 %v8829_v15  ;;  %8015 = vmatprep.mubr.msk.bf16.mxu1 %vm8870_vm4, %v8869_v25 }
 0xa67   :  { %8007 = vmatprep.subr.bf16.mxu1 %v8869_v25 }
 0xa6a   :  { %8008 = vmatpush3.bf16.msra.mxu1 %v8830_v17 }
 0xa6b   :  { %8009 = vmatprep.subr.bf16.mxu1 %v8869_v25 }
 0xa6e   :  { %8010 = vmatpush3.bf16.msra.mxu1 %v8831_v49 }
 0xa6f   :  { %8011 = vmatprep.subr.bf16.mxu1 %v8869_v25 }
 0xa72   :  { %8012 = vmatpush3.bf16.msra.mxu1 %v8833_v7 }
 0xa73   :  { %8013 = vmatprep.subr.bf16.mxu1 %v8869_v25 }
 0xa76   :  { %8014 = vmatpush3.bf16.msra.mxu1 %v8835_v24 }
 0xa77   :  { %8043 = vmatprep.subr.bf16.mxu1 %v8869_v25 }
 0xb2c   :  { %v5596_v2 = vpop.f32.mrb[84].mxu1 }
 0xb2d   :  { %v5602_v9 = vpack.c.bf16 %v5596_v2, %v5596_v2  ;;  %v7979_v14 = vpop.f32.mrb[85].mxu1 }
 0xb2e   :  { %v5599_v4 = vpop.f32.mrb[86].mxu1 }
 0xb2f   :  { %8016 = vmatmul.mubr.msk.bf16.vlgmr.msra.gmra.mrb[92].mxu1 %vm5330_vm8, %v5602_v9  ;;  %v7980_v10 = vpop.f32.mrb[87].mxu1 }
 0xb30   :  { %8044 = vmatpush3.bf16.msra.mxu1 %v11167_v16  ;;  %8049 = vmatprep.mubr.msk.bf16.mxu1 %vm8870_vm4, %v8869_v25 }
 0xb31   :  { %8045 = vmatprep.subr.bf16.mxu1 %v8869_v25 }
 0xb34   :  { %8046 = vmatpush3.bf16.msra.mxu1 %v11171_v50 }
 0xb35   :  { %8047 = vmatprep.subr.bf16.mxu1 %v8869_v25 }
 0xb38   :  { %8048 = vmatpush3.bf16.msra.mxu1 %v11176_v27  ;;  %v5652_v59 = vpop.f32.mrb[88].mxu1 }
 0xb39   :  { %v5658_v38 = vpack.c.bf16 %v5652_v59, %v5652_v59  ;;  %v7989_v30 = vpop.f32.mrb[89].mxu1  ;;  %8053 = vmatprep.subr.bf16.mxu1 %v8869_v25  ;;  %v8860_v59 = vld [vmem:[%s11426_s14 + $0x30] sm:$0xff]  }
 0xb3a   :  { %v5655_v1 = vpop.f32.mrb[90].mxu1  ;;  %v8862_v30 = vld [vmem:[%s11427_s16] sm:$0xff]  }
 0xb3b   :  { %8002 = vmatmul.mubr.msk.bf16.vlgmr.msra.gmra.mrb[196].mxu0 %vm5330_vm8, %v5658_v38  ;;  %8050 = vmatmul.mubr.msk.bf16.vlgmr.msra.gmra.mrb[96].mxu1 %vm3567_vm3, %v7120_v53  ;;  %v7990_v5 = vpop.f32.mrb[91].mxu1  ;;  %v8861_v53 = vld [vmem:[%s11426_s14 + $0x38] ss:$0 sps:$4 sm:$0xff]   ;;  %v8864_v1 = vld [vmem:[%s11427_s16 + $0x10] sm:$0xff]  }
 0xb3c   :  { %8020 = vmatpush3.bf16.msra.mxu0 %v11167_v16  ;;  %8025 = vmatprep.mubr.msk.bf16.mxu0 %vm8870_vm4, %v8869_v25  ;;  %v6291_v38 = vsel %vm3589_vm2, %v8861_v53, 0  ;;  %v8865_v5 = vld [vmem:[%s11427_s16 + $0x18] sm:$0xff]  }
 0xb3d   :  { %8021 = vmatprep.subr.bf16.mxu0 %v8869_v25  ;;  %8054 = vmatpush3.bf16.msra.mxu1 %v8840_v45  ;;  %v8863_v45 = vld [vmem:[%s11427_s16 + $0x8] sm:$0xff]  }
 0xb3e   :  { %8055 = vmatprep.subr.bf16.mxu1 %v8869_v25  ;;  %8063 = vmatprep.mubr.msk.bf16.mxu1 %vm8870_vm4, %v8869_v25 }
 0xb40   :  { %8022 = vmatpush3.bf16.msra.mxu0 %v11171_v50 }
 0xb41   :  { %8023 = vmatprep.subr.bf16.mxu0 %v8869_v25  ;;  %8056 = vmatpush3.bf16.msra.mxu1 %v8842_v60 }
 0xb42   :  { %8057 = vmatprep.subr.bf16.mxu1 %v8869_v25 }
 0xb44   :  { %8024 = vmatpush3.bf16.msra.mxu0 %v11176_v27 }
 0xb45   :  { %8029 = vmatprep.subr.bf16.mxu0 %v8869_v25  ;;  %8058 = vmatpush3.bf16.msra.mxu1 %v8844_v40  ;;  %v7156_v40 = vld [vmem:[%s11428_s13] ss:$0 sm:$0xff] }
 0xb46   :  { %8059 = vmatprep.subr.bf16.mxu1 %v8869_v25 }
 0xb47   :  { %8026 = vmatmul.mubr.msk.bf16.vlgmr.msra.gmra.mrb[200].mxu0 %vm3567_vm3, %v7102_v36 }
 0xb48   :  { %8030 = vmatpush3.bf16.msra.mxu0 %v8839_v28  ;;  %8039 = vmatprep.mubr.msk.bf16.mxu0 %vm8870_vm4, %v8869_v25 }
 0xb49   :  { %8031 = vmatprep.subr.bf16.mxu0 %v8869_v25  ;;  %8060 = vmatpush3.bf16.msra.mxu1 %v8846_v62 }
 0xb4a   :  { %8061 = vmatprep.subr.bf16.mxu1 %v8869_v25 }
 0xb4c   :  { %8032 = vmatpush3.bf16.msra.mxu0 %v8841_v12 }
 0xb4d   :  { %8033 = vmatprep.subr.bf16.mxu0 %v8869_v25  ;;  %8062 = vmatpush3.bf16.msra.mxu1 %v8848_v41  ;;  %v8866_v41 = vld [vmem:[%s11427_s16 + $0x20] sm:$0xff]  }
 0xb4e   :  { %8091 = vmatprep.subr.bf16.mxu1 %v8869_v25 }
 0xb50   :  { %8034 = vmatpush3.bf16.msra.mxu0 %v8843_v32 }
 0xb51   :  { %8035 = vmatprep.subr.bf16.mxu0 %v8869_v25 }
 0xb54   :  { %8036 = vmatpush3.bf16.msra.mxu0 %v8845_v55 }
 0xb55   :  { %8037 = vmatprep.subr.bf16.mxu0 %v8869_v25 }
 0xb58   :  { %8038 = vmatpush3.bf16.msra.mxu0 %v8847_v54 }
 0xb59   :  { %8067 = vmatprep.subr.bf16.mxu0 %v8869_v25 }
 0xc02   :  { %v5810_v46 = vpop.f32.mrb[92].mxu1 }
 0xc03   :  { %v8017_v29 = vpop.f32.mrb[93].mxu1 }
 0xc04   :  { %v5813_v37 = vpop.f32.mrb[94].mxu1 }
 0xc05   :  { %v8018_v3 = vpop.f32.mrb[95].mxu1  ;;  %v7157_v37 = vld [vmem:[%s11429_s15] ss:$0 sm:$0xff] }
 0xc0e   :  { %v5737_v61 = vpop.f32.mrb[196].mxu0  ;;  %v5986_v26 = vpop.f32.mrb[96].mxu1 }
 0xc0f   :  { %v11300_v23 = vadd.f32 %v5810_v46, %v5737_v61  ;;  %v8003_v33 = vpop.f32.mrb[197].mxu0  ;;  %v5992_v31 = vpack.c.bf16 %v5986_v26, %v5986_v26  ;;  %v8051_v43 = vpop.f32.mrb[97].mxu1  ;;  %v8867_v46 = vld [vmem:[%s11427_s16 + $0x28] ss:$0 sps:$4 sm:$0x33]  }
 0xc10   :  { %v5740_v58 = vpop.f32.mrb[198].mxu0  ;;  %v5989_v22 = vpop.f32.mrb[98].mxu1  ;;  %v6390_v29 = vsel %vm4041_vm6, %v8867_v46, 0 }
 0xc11   :  { %v8004_v44 = vpop.f32.mrb[199].mxu0  ;;  %8064 = vmatmul.mubr.msk.bf16.vlgmr.msra.gmra.mrb[100].mxu1 %vm5330_vm8, %v5992_v31  ;;  %v8052_v21 = vpop.f32.mrb[99].mxu1 }
 0xc12   :  { %8107 = vmatprep.mubr.msk.bf16.mxu1 %vm8870_vm4, %v8869_v25  ;;  %8092 = vmatpush3.bf16.msra.mxu1 %v8854_v52 }
 0xc13   :  { %8093 = vmatprep.subr.bf16.mxu1 %v8869_v25 }
 0xc16   :  { %8094 = vmatpush3.bf16.msra.mxu1 %v8855_v19 }
 0xc17   :  { %8095 = vmatprep.subr.bf16.mxu1 %v8869_v25 }
 0xc1a   :  { %v5855_v11 = vpop.f32.mrb[200].mxu0  ;;  %8096 = vmatpush3.bf16.msra.mxu1 %v8856_v57 }
 0xc1b   :  { %v5861_v0 = vpack.c.bf16 %v5855_v11, %v5855_v11  ;;  %v8027_v42 = vpop.f32.mrb[201].mxu0  ;;  %8097 = vmatprep.subr.bf16.mxu1 %v8869_v25 }
 0xc1c   :  { %v5858_v20 = vpop.f32.mrb[202].mxu0 }
 0xc1d   :  { %8040 = vmatmul.mubr.msk.bf16.vlgmr.msra.gmra.mrb[204].mxu0 %vm5330_vm8, %v5861_v0  ;;  %v8028_v13 = vpop.f32.mrb[203].mxu0 }
 0xc1e   :  { %8068 = vmatpush3.bf16.msra.mxu0 %v11167_v16  ;;  %8073 = vmatprep.mubr.msk.bf16.mxu0 %vm8870_vm4, %v8869_v25  ;;  %v8850_v16 = vld [vmem:[%s11424_s12 + $0xa8] sm:$0xff]  }
 0xc1f   :  { %8069 = vmatprep.subr.bf16.mxu0 %v8869_v25  ;;  %8098 = vmatpush3.bf16.msra.mxu1 %v8857_v48 }
 0xc20   :  { %8099 = vmatprep.subr.bf16.mxu1 %v8869_v25 }
 0xc22   :  { %8070 = vmatpush3.bf16.msra.mxu0 %v11171_v50  ;;  %v8852_v50 = vld [vmem:[%s11424_s12 + $0xb8] sm:$0xff]  }
 0xc23   :  { %8071 = vmatprep.subr.bf16.mxu0 %v8869_v25 }
 0xc26   :  { %8072 = vmatpush3.bf16.msra.mxu0 %v11176_v27  ;;  %v8858_v27 = vld [vmem:[%s11426_s14 + $0x20] sm:$0xff]  }
 0xc27   :  { %8077 = vmatprep.subr.bf16.mxu0 %v8869_v25  ;;  %8100 = vmatpush3.bf16.msra.mxu1 %v8858_v27 }
 0xc28   :  { %8101 = vmatprep.subr.bf16.mxu1 %v8869_v25 }
 0xc29   :  { %8074 = vmatmul.mubr.msk.bf16.vlgmr.msra.gmra.mrb[208].mxu0 %vm3567_vm3, %v7138_v35 }
 0xc2a   :  { %8078 = vmatpush3.bf16.msra.mxu0 %v8849_v8  ;;  %8087 = vmatprep.mubr.msk.bf16.mxu0 %vm8870_vm4, %v8869_v25 }
 0xc2b   :  { %8079 = vmatprep.subr.bf16.mxu0 %v8869_v25  ;;  %8102 = vmatpush3.bf16.msra.mxu1 %v8859_v51 }
 0xc2c   :  { %8103 = vmatprep.subr.bf16.mxu1 %v8869_v25 }
 0xc2e   :  { %8080 = vmatpush3.bf16.msra.mxu0 %v8850_v16 }
 0xc2f   :  { %8081 = vmatprep.subr.bf16.mxu0 %v8869_v25  ;;  %8104 = vmatpush3.bf16.msra.mxu1 %v8860_v59 }
 0xc30   :  { %8105 = vmatprep.subr.bf16.mxu1 %v8869_v25 }
 0xc32   :  { %8082 = vmatpush3.bf16.msra.mxu0 %v8851_v34 }
 0xc33   :  { %8083 = vmatprep.subr.bf16.mxu0 %v8869_v25  ;;  %8106 = vmatpush3.bf16.msra.mxu1 %v6291_v38 }
 0xc36   :  { %8084 = vmatpush3.bf16.msra.mxu0 %v8852_v50 }
 0xc37   :  { %8085 = vmatprep.subr.bf16.mxu0 %v8869_v25 }
 0xc3a   :  { %8086 = vmatpush3.bf16.msra.mxu0 %v8853_v6 }
 0xc3b   :  { %8111 = vmatprep.subr.bf16.mxu0 %v8869_v25 }
 0xce4   :  { %v6071_v56 = vpop.f32.mrb[100].mxu1 }
 0xce5   :  { %v8065_v63 = vpop.f32.mrb[101].mxu1 }
 0xce6   :  { %v6074_v15 = vpop.f32.mrb[102].mxu1 }
 0xce7   :  { %v8066_v17 = vpop.f32.mrb[103].mxu1 }
 0xcf0   :  { %v5940_v49 = vpop.f32.mrb[204].mxu0 }
 0xcf1   :  { %v5946_v7 = vadd.f32 %v5940_v49, %v11300_v23  ;;  %v8041_v24 = vpop.f32.mrb[205].mxu0 }
 0xcf2   :  { %v5943_v18 = vpop.f32.mrb[206].mxu0 }
 0xcf3   :  { %v6077_v39 = vadd.f32 %v6071_v56, %v5946_v7  ;;  %v8042_v47 = vpop.f32.mrb[207].mxu0 }
 0xcfc   :  { %v6117_v2 = vpop.f32.mrb[208].mxu0 }
 0xcfd   :  { %v6123_v9 = vpack.c.bf16 %v6117_v2, %v6117_v2  ;;  %v8075_v14 = vpop.f32.mrb[209].mxu0 }
 0xcfe   :  { %v6120_v4 = vpop.f32.mrb[210].mxu0 }
 0xcff   :  { %8088 = vmatmul.mubr.msk.bf16.vlgmr.msra.gmra.mrb[212].mxu0 %vm5330_vm8, %v6123_v9  ;;  %v8076_v10 = vpop.f32.mrb[211].mxu0 }
 0xd00   :  { %8123 = vmatprep.mubr.msk.bf16.mxu0 %vm8870_vm4, %v8869_v25  ;;  %8112 = vmatpush3.bf16.msra.mxu0 %v8862_v30 }
 0xd01   :  { %8113 = vmatprep.subr.bf16.mxu0 %v8869_v25 }
 0xd04   :  { %8114 = vmatpush3.bf16.msra.mxu0 %v8863_v45 }
 0xd05   :  { %8115 = vmatprep.subr.bf16.mxu0 %v8869_v25 }
 0xd08   :  { %8116 = vmatpush3.bf16.msra.mxu0 %v8864_v1 }
 0xd09   :  { %8117 = vmatprep.subr.bf16.mxu0 %v8869_v25 }
 0xd0c   :  { %8118 = vmatpush3.bf16.msra.mxu0 %v8865_v5 }
 0xd0d   :  { %8119 = vmatprep.subr.bf16.mxu0 %v8869_v25 }
 0xd10   :  { %8120 = vmatpush3.bf16.msra.mxu0 %v8866_v41 }
 0xd11   :  { %8121 = vmatprep.subr.bf16.mxu0 %v8869_v25  ;;  %v7167_v25 = vld [vmem:[%s11430_s17] ss:$0 sm:$0xff] }
 0xd14   :  { %8122 = vmatpush3.bf16.msra.mxu0 %v6390_v29 }
 0xdd2   :  { %v6202_v60 = vpop.f32.mrb[212].mxu0 }
 0xdd3   :  { %v6208_v36 = vadd.f32 %v6202_v60, %v6077_v39  ;;  %v8089_v28 = vpop.f32.mrb[213].mxu0 }
 0xdd4   :  { %v6205_v12 = vpop.f32.mrb[214].mxu0 }
 0xdd5   :  { %v6216_v32 = vadd.f32 %v7156_v40, %v6208_v36  ;;  %v8090_v55 = vpop.f32.mrb[215].mxu0 }
 0xdd7   :  { %v6217_v62 = vmax.f32 %v6216_v32, 0.0 }
 0xdd9   :  { %v6218_v54 = vpack.c.bf16 %v6217_v62, %v6217_v62 }
 0xddb   :  { %8108 = vmatmul.mubr.msk.bf16.vlgmr.msra.gmra.mrb[104].mxu1 %vm6286_vm9, %v6218_v54 }
 0xeae   :  { %v6327_v3 = vpop.f32.mrb[104].mxu1 }
 0xeaf   :  { %v6328_v61 = vadd.f32 %v7157_v37, %v6327_v3  ;;  %v8109_v26 = vpop.f32.mrb[105].mxu1 }
 0xeb0   :  { %v6330_v23 = vpop.f32.mrb[106].mxu1 }
 0xeb1   :  { %v6333_v33 = vmax.f32 %v6328_v61, 0.0  ;;  %v8110_v31 = vpop.f32.mrb[107].mxu1 }
 0xeb3   :  { %v6334_v43 = vpack.c.bf16 %v6333_v33, %v6333_v33 }
 0xeb5   :  { %8124 = vmatmul.mubr.msk.bf16.vlgmr.msra.gmra.mrb[216].mxu0 %vm4025_vm7, %v6334_v43 }
 0xf88   :  { %v6426_v58 = vpop.f32.mrb[216].mxu0 }
 0xf89   :  { %v6427_v22 = vadd.f32 %v7167_v25, %v6426_v58  ;;  %v8125_v44 = vpop.f32.mrb[217].mxu0 }
 0xf8a   :  { %v6429_v21 = vpop.f32.mrb[218].mxu0 }
 0xf8b   :  { %6432 = vst [vmem:[%s11431_s18] sm:$0xff] %v6427_v22  ;;  %v8126_v11 = vpop.f32.mrb[219].mxu0 }

</bundles_post_ra>
